<compile_context>
chip_gen: v7x
topology: tpu7x:2x2x1
jax: 0.10.0
libtpu: 0.0.40
codegen_flags: <defaults>
</compile_context>

<pallas_src>
import functools

import jax
import jax.numpy as jnp
from jax import lax
from jax.experimental import pallas as pl
from jax.experimental.pallas import tpu as pltpu


def _spatial_gate_kernel(w_ref, shift_ref, xp_ref, o_ref):
    """One batch element per grid step.

    w_ref:     SMEM (2*K*K,) f32       conv weights with BN scale folded, [c, kh, kw] order
    shift_ref: SMEM (1,)     f32       folded eval-mode BN shift
    xp_ref:    VMEM (1, C, H+2P, W+2P) spatially zero-padded input (NCHW)
    o_ref:     VMEM (1, C, H, W)       gated output (NCHW)
    """
    C = xp_ref.shape[1]
    H, W = o_ref.shape[2], o_ref.shape[3]
    P = (xp_ref.shape[2] - H) // 2
    K = 2 * P + 1

    xp = xp_ref[0].astype(jnp.float32)               # (C, Hp, Wp)

    # ChannelPool on the padded frame. Pooling the zero pad gives 0, which is
    # exactly the conv's zero padding, so no separate halo handling is needed.
    pooled = (jnp.max(xp, axis=0),                   # max over channels
              jnp.sum(xp, axis=0) * (1.0 / C))       # mean over channels

    # 7x7 / 2-in / 1-out conv as 98 shifted FMAs on the VPU: scalar weights
    # broadcast from SMEM, shifts are static value slices (XLU). No MXU, no
    # per-tap reshape/relayout, no im2col buffer. Two accumulators (one per
    # pooled map) halve the f32 add dependency chain.
    acc = [jnp.zeros((H, W), jnp.float32), jnp.zeros((H, W), jnp.float32)]
    for c in range(2):
        p = pooled[c]
        for kh in range(K):
            rows = p[kh:kh + H, :]                   # (H, Wp) sublane-shifted slice
            for kw in range(K):
                acc[c] = acc[c] + w_ref[(c * K + kh) * K + kw] * rows[:, kw:kw + W]
    conv = acc[0] + acc[1] + shift_ref[0]            # fused eval-mode BatchNorm

    gate = 1.0 / (1.0 + jnp.exp(-conv))              # sigmoid (EUP exp + divide)

    x_center = xp[:, P:P + H, P:P + W]               # un-padded input for gating
    o_ref[0] = (x_center * gate[None, :, :]).astype(o_ref.dtype)


@functools.partial(jax.jit, static_argnames=("eps",))
def spatial_gate_forward(x, conv_w, gamma, beta, running_mean, running_var,
                         eps=1e-5):
    """x: (N, C, H, W); conv_w: (1, 2, K, K) OIHW; BN params: (1,)."""
    N, C, H, W = x.shape
    Cout, Cin, KH, KW = conv_w.shape
    assert (Cout, Cin) == (1, 2) and KH == KW, (Cout, Cin, KH, KW)
    K = KH
    P = (K - 1) // 2

    # Fold eval-mode BatchNorm: scale into the conv weights, shift as a scalar.
    bn_scale = gamma / jnp.sqrt(running_var + eps)                  # (1,)
    bn_shift = beta - running_mean * bn_scale                       # (1,)
    w_folded = (conv_w[0] * bn_scale[0]).astype(jnp.float32).reshape(Cin * K * K)
    bn_shift = bn_shift.astype(jnp.float32).reshape(1)

    # Spatial zero-pad once (tiny): channel-pooling zeros == conv zero padding.
    xp = jnp.pad(x, ((0, 0), (0, 0), (P, P), (P, P)))
    Hp, Wp = H + 2 * P, W + 2 * P

    out = pl.pallas_call(
        _spatial_gate_kernel,
        out_shape=jax.ShapeDtypeStruct((N, C, H, W), x.dtype),
        grid=(N,),
        in_specs=[
            pl.BlockSpec(memory_space=pltpu.MemorySpace.SMEM),      # folded weights
            pl.BlockSpec(memory_space=pltpu.MemorySpace.SMEM),      # BN shift
            pl.BlockSpec((1, C, Hp, Wp), lambda n: (n, 0, 0, 0)),
        ],
        out_specs=pl.BlockSpec((1, C, H, W), lambda n: (n, 0, 0, 0)),
        compiler_params=pltpu.CompilerParams(
            dimension_semantics=("parallel",)),
    )(w_folded, bn_shift, xp)
    return out


def _reference_forward(x, conv_w, gamma, beta, running_mean, running_var,
                       eps=1e-5):
    K = conv_w.shape[-1]
    P = (K - 1) // 2
    pooled = jnp.concatenate(
        [jnp.max(x, axis=1, keepdims=True), jnp.mean(x, axis=1, keepdims=True)],
        axis=1)                                                     # (N, 2, H, W)
    conv = lax.conv_general_dilated(
        pooled, conv_w, window_strides=(1, 1),
        padding=[(P, P), (P, P)],
        dimension_numbers=("NCHW", "OIHW", "NCHW"))                 # (N, 1, H, W)
    bn_scale = (gamma / jnp.sqrt(running_var + eps)).reshape(1, -1, 1, 1)
    bn_shift = (beta - running_mean * gamma / jnp.sqrt(running_var + eps)
                ).reshape(1, -1, 1, 1)
    gate = jax.nn.sigmoid(conv * bn_scale + bn_shift)
    return x * gate


if __name__ == "__main__":
    key = jax.random.PRNGKey(0)
    k_x, k_w, k_g, k_b, k_m, k_v = jax.random.split(key, 6)

    N, C, H, W = 2, 4, 16, 16
    K = 7

    x = jax.random.normal(k_x, (N, C, H, W), jnp.float32)
    # Conv2d(2, 1, 7, padding=3, bias=False) weight + BatchNorm2d(1) eval stats.
    conv_w = jax.random.normal(k_w, (1, 2, K, K), jnp.float32) * 0.1
    gamma = jax.random.normal(k_g, (1,), jnp.float32) * 0.1 + 1.0
    beta = jax.random.normal(k_b, (1,), jnp.float32) * 0.1
    running_mean = jax.random.normal(k_m, (1,), jnp.float32) * 0.1
    running_var = jax.random.uniform(k_v, (1,), jnp.float32, 0.5, 1.5)

    out = spatial_gate_forward(x, conv_w, gamma, beta, running_mean, running_var)
    out = jax.block_until_ready(out)

    ref = _reference_forward(x, conv_w, gamma, beta, running_mean, running_var)
    assert out.shape == (N, C, H, W), out.shape
    max_err = float(jnp.max(jnp.abs(out - ref)))
    assert jnp.allclose(out, ref, atol=1e-4, rtol=1e-4), max_err

    print("KERNEL_OK")
</pallas_src>

<mosaic_0001>
module attributes {stable_mosaic.version = 11 : i64} {
  func.func @_spatial_gate_kernel(%arg0: i32, %arg1: memref<98xf32, #tpu.memory_space<smem>>, %arg2: memref<1xf32, #tpu.memory_space<smem>>, %arg3: memref<1x4x22x22xf32, #tpu.memory_space<vmem>>, %arg4: memref<1x4x16x16xf32, #tpu.memory_space<vmem>>) attributes {dimension_semantics = [#tpu.dimension_semantics<parallel>], iteration_bounds = array<i64: 2>, scalar_prefetch = 0 : i64, scratch_operands = 0 : i64, tpu.core_type = #tpu.core_type<tc>, window_params = [{transform_indices = @transform_0, window_bounds = array<i64: 98>}, {transform_indices = @transform_1, window_bounds = array<i64: 1>}, {transform_indices = @transform_2, window_bounds = array<i64: 1, 4, 22, 22>}, {transform_indices = @transform_3, window_bounds = array<i64: 1, 4, 16, 16>}]} {
    %c0 = arith.constant 0 : index
    %c0_0 = arith.constant 0 : index
    %c0_1 = arith.constant 0 : index
    %c0_2 = arith.constant 0 : index
    %0 = vector.load %arg3[%c0, %c0_0, %c0_1, %c0_2] : memref<1x4x22x22xf32, #tpu.memory_space<vmem>>, vector<1x4x22x22xf32>
    %1 = vector.shape_cast %0 : vector<1x4x22x22xf32> to vector<4x22x22xf32>
    %cst = arith.constant dense<0xFF800000> : vector<22x22xf32>
    %2 = vector.multi_reduction <maximumf>, %1, %cst [0] : vector<4x22x22xf32> to vector<22x22xf32>
    %cst_3 = arith.constant dense<0.000000e+00> : vector<22x22xf32>
    %3 = vector.multi_reduction <add>, %1, %cst_3 [0] : vector<4x22x22xf32> to vector<22x22xf32>
    %cst_4 = arith.constant 2.500000e-01 : f32
    %4 = vector.broadcast %cst_4 : f32 to vector<22x22xf32>
    %5 = arith.mulf %3, %4 : vector<22x22xf32>
    %cst_5 = arith.constant 0.000000e+00 : f32
    %6 = vector.broadcast %cst_5 : f32 to vector<16x16xf32>
    %cst_6 = arith.constant 0.000000e+00 : f32
    %7 = vector.broadcast %cst_6 : f32 to vector<16x16xf32>
    %8 = vector.extract_strided_slice %2 {offsets = [0, 0], sizes = [16, 22], strides = [1, 1]} : vector<22x22xf32> to vector<16x22xf32>
    %c0_7 = arith.constant 0 : index
    %9 = memref.load %arg1[%c0_7] : memref<98xf32, #tpu.memory_space<smem>>
    %10 = vector.extract_strided_slice %8 {offsets = [0, 0], sizes = [16, 16], strides = [1, 1]} : vector<16x22xf32> to vector<16x16xf32>
    %11 = vector.broadcast %9 : f32 to vector<16x16xf32>
    %12 = arith.mulf %11, %10 : vector<16x16xf32>
    %13 = arith.addf %6, %12 : vector<16x16xf32>
    %c1 = arith.constant 1 : index
    %14 = memref.load %arg1[%c1] : memref<98xf32, #tpu.memory_space<smem>>
    %15 = vector.extract_strided_slice %8 {offsets = [0, 1], sizes = [16, 16], strides = [1, 1]} : vector<16x22xf32> to vector<16x16xf32>
    %16 = vector.broadcast %14 : f32 to vector<16x16xf32>
    %17 = arith.mulf %16, %15 : vector<16x16xf32>
    %18 = arith.addf %13, %17 : vector<16x16xf32>
    %c2 = arith.constant 2 : index
    %19 = memref.load %arg1[%c2] : memref<98xf32, #tpu.memory_space<smem>>
    %20 = vector.extract_strided_slice %8 {offsets = [0, 2], sizes = [16, 16], strides = [1, 1]} : vector<16x22xf32> to vector<16x16xf32>
    %21 = vector.broadcast %19 : f32 to vector<16x16xf32>
    %22 = arith.mulf %21, %20 : vector<16x16xf32>
    %23 = arith.addf %18, %22 : vector<16x16xf32>
    %c3 = arith.constant 3 : index
    %24 = memref.load %arg1[%c3] : memref<98xf32, #tpu.memory_space<smem>>
    %25 = vector.extract_strided_slice %8 {offsets = [0, 3], sizes = [16, 16], strides = [1, 1]} : vector<16x22xf32> to vector<16x16xf32>
    %26 = vector.broadcast %24 : f32 to vector<16x16xf32>
    %27 = arith.mulf %26, %25 : vector<16x16xf32>
    %28 = arith.addf %23, %27 : vector<16x16xf32>
    %c4 = arith.constant 4 : index
    %29 = memref.load %arg1[%c4] : memref<98xf32, #tpu.memory_space<smem>>
    %30 = vector.extract_strided_slice %8 {offsets = [0, 4], sizes = [16, 16], strides = [1, 1]} : vector<16x22xf32> to vector<16x16xf32>
    %31 = vector.broadcast %29 : f32 to vector<16x16xf32>
    %32 = arith.mulf %31, %30 : vector<16x16xf32>
    %33 = arith.addf %28, %32 : vector<16x16xf32>
    %c5 = arith.constant 5 : index
    %34 = memref.load %arg1[%c5] : memref<98xf32, #tpu.memory_space<smem>>
    %35 = vector.extract_strided_slice %8 {offsets = [0, 5], sizes = [16, 16], strides = [1, 1]} : vector<16x22xf32> to vector<16x16xf32>
    %36 = vector.broadcast %34 : f32 to vector<16x16xf32>
    %37 = arith.mulf %36, %35 : vector<16x16xf32>
    %38 = arith.addf %33, %37 : vector<16x16xf32>
    %c6 = arith.constant 6 : index
    %39 = memref.load %arg1[%c6] : memref<98xf32, #tpu.memory_space<smem>>
    %40 = vector.extract_strided_slice %8 {offsets = [0, 6], sizes = [16, 16], strides = [1, 1]} : vector<16x22xf32> to vector<16x16xf32>
    %41 = vector.broadcast %39 : f32 to vector<16x16xf32>
    %42 = arith.mulf %41, %40 : vector<16x16xf32>
    %43 = arith.addf %38, %42 : vector<16x16xf32>
    %44 = vector.extract_strided_slice %2 {offsets = [1, 0], sizes = [16, 22], strides = [1, 1]} : vector<22x22xf32> to vector<16x22xf32>
    %c7 = arith.constant 7 : index
    %45 = memref.load %arg1[%c7] : memref<98xf32, #tpu.memory_space<smem>>
    %46 = vector.extract_strided_slice %44 {offsets = [0, 0], sizes = [16, 16], strides = [1, 1]} : vector<16x22xf32> to vector<16x16xf32>
    %47 = vector.broadcast %45 : f32 to vector<16x16xf32>
    %48 = arith.mulf %47, %46 : vector<16x16xf32>
    %49 = arith.addf %43, %48 : vector<16x16xf32>
    %c8 = arith.constant 8 : index
    %50 = memref.load %arg1[%c8] : memref<98xf32, #tpu.memory_space<smem>>
    %51 = vector.extract_strided_slice %44 {offsets = [0, 1], sizes = [16, 16], strides = [1, 1]} : vector<16x22xf32> to vector<16x16xf32>
    %52 = vector.broadcast %50 : f32 to vector<16x16xf32>
    %53 = arith.mulf %52, %51 : vector<16x16xf32>
    %54 = arith.addf %49, %53 : vector<16x16xf32>
    %c9 = arith.constant 9 : index
    %55 = memref.load %arg1[%c9] : memref<98xf32, #tpu.memory_space<smem>>
    %56 = vector.extract_strided_slice %44 {offsets = [0, 2], sizes = [16, 16], strides = [1, 1]} : vector<16x22xf32> to vector<16x16xf32>
    %57 = vector.broadcast %55 : f32 to vector<16x16xf32>
    %58 = arith.mulf %57, %56 : vector<16x16xf32>
    %59 = arith.addf %54, %58 : vector<16x16xf32>
    %c10 = arith.constant 10 : index
    %60 = memref.load %arg1[%c10] : memref<98xf32, #tpu.memory_space<smem>>
    %61 = vector.extract_strided_slice %44 {offsets = [0, 3], sizes = [16, 16], strides = [1, 1]} : vector<16x22xf32> to vector<16x16xf32>
    %62 = vector.broadcast %60 : f32 to vector<16x16xf32>
    %63 = arith.mulf %62, %61 : vector<16x16xf32>
    %64 = arith.addf %59, %63 : vector<16x16xf32>
    %c11 = arith.constant 11 : index
    %65 = memref.load %arg1[%c11] : memref<98xf32, #tpu.memory_space<smem>>
    %66 = vector.extract_strided_slice %44 {offsets = [0, 4], sizes = [16, 16], strides = [1, 1]} : vector<16x22xf32> to vector<16x16xf32>
    %67 = vector.broadcast %65 : f32 to vector<16x16xf32>
    %68 = arith.mulf %67, %66 : vector<16x16xf32>
    %69 = arith.addf %64, %68 : vector<16x16xf32>
    %c12 = arith.constant 12 : index
    %70 = memref.load %arg1[%c12] : memref<98xf32, #tpu.memory_space<smem>>
    %71 = vector.extract_strided_slice %44 {offsets = [0, 5], sizes = [16, 16], strides = [1, 1]} : vector<16x22xf32> to vector<16x16xf32>
    %72 = vector.broadcast %70 : f32 to vector<16x16xf32>
    %73 = arith.mulf %72, %71 : vector<16x16xf32>
    %74 = arith.addf %69, %73 : vector<16x16xf32>
    %c13 = arith.constant 13 : index
    %75 = memref.load %arg1[%c13] : memref<98xf32, #tpu.memory_space<smem>>
    %76 = vector.extract_strided_slice %44 {offsets = [0, 6], sizes = [16, 16], strides = [1, 1]} : vector<16x22xf32> to vector<16x16xf32>
    %77 = vector.broadcast %75 : f32 to vector<16x16xf32>
    %78 = arith.mulf %77, %76 : vector<16x16xf32>
    %79 = arith.addf %74, %78 : vector<16x16xf32>
    %80 = vector.extract_strided_slice %2 {offsets = [2, 0], sizes = [16, 22], strides = [1, 1]} : vector<22x22xf32> to vector<16x22xf32>
    %c14 = arith.constant 14 : index
    %81 = memref.load %arg1[%c14] : memref<98xf32, #tpu.memory_space<smem>>
    %82 = vector.extract_strided_slice %80 {offsets = [0, 0], sizes = [16, 16], strides = [1, 1]} : vector<16x22xf32> to vector<16x16xf32>
    %83 = vector.broadcast %81 : f32 to vector<16x16xf32>
    %84 = arith.mulf %83, %82 : vector<16x16xf32>
    %85 = arith.addf %79, %84 : vector<16x16xf32>
    %c15 = arith.constant 15 : index
    %86 = memref.load %arg1[%c15] : memref<98xf32, #tpu.memory_space<smem>>
    %87 = vector.extract_strided_slice %80 {offsets = [0, 1], sizes = [16, 16], strides = [1, 1]} : vector<16x22xf32> to vector<16x16xf32>
    %88 = vector.broadcast %86 : f32 to vector<16x16xf32>
    %89 = arith.mulf %88, %87 : vector<16x16xf32>
    %90 = arith.addf %85, %89 : vector<16x16xf32>
    %c16 = arith.constant 16 : index
    %91 = memref.load %arg1[%c16] : memref<98xf32, #tpu.memory_space<smem>>
    %92 = vector.extract_strided_slice %80 {offsets = [0, 2], sizes = [16, 16], strides = [1, 1]} : vector<16x22xf32> to vector<16x16xf32>
    %93 = vector.broadcast %91 : f32 to vector<16x16xf32>
    %94 = arith.mulf %93, %92 : vector<16x16xf32>
    %95 = arith.addf %90, %94 : vector<16x16xf32>
    %c17 = arith.constant 17 : index
    %96 = memref.load %arg1[%c17] : memref<98xf32, #tpu.memory_space<smem>>
    %97 = vector.extract_strided_slice %80 {offsets = [0, 3], sizes = [16, 16], strides = [1, 1]} : vector<16x22xf32> to vector<16x16xf32>
    %98 = vector.broadcast %96 : f32 to vector<16x16xf32>
    %99 = arith.mulf %98, %97 : vector<16x16xf32>
    %100 = arith.addf %95, %99 : vector<16x16xf32>
    %c18 = arith.constant 18 : index
    %101 = memref.load %arg1[%c18] : memref<98xf32, #tpu.memory_space<smem>>
    %102 = vector.extract_strided_slice %80 {offsets = [0, 4], sizes = [16, 16], strides = [1, 1]} : vector<16x22xf32> to vector<16x16xf32>
    %103 = vector.broadcast %101 : f32 to vector<16x16xf32>
    %104 = arith.mulf %103, %102 : vector<16x16xf32>
    %105 = arith.addf %100, %104 : vector<16x16xf32>
    %c19 = arith.constant 19 : index
    %106 = memref.load %arg1[%c19] : memref<98xf32, #tpu.memory_space<smem>>
    %107 = vector.extract_strided_slice %80 {offsets = [0, 5], sizes = [16, 16], strides = [1, 1]} : vector<16x22xf32> to vector<16x16xf32>
    %108 = vector.broadcast %106 : f32 to vector<16x16xf32>
    %109 = arith.mulf %108, %107 : vector<16x16xf32>
    %110 = arith.addf %105, %109 : vector<16x16xf32>
    %c20 = arith.constant 20 : index
    %111 = memref.load %arg1[%c20] : memref<98xf32, #tpu.memory_space<smem>>
    %112 = vector.extract_strided_slice %80 {offsets = [0, 6], sizes = [16, 16], strides = [1, 1]} : vector<16x22xf32> to vector<16x16xf32>
    %113 = vector.broadcast %111 : f32 to vector<16x16xf32>
    %114 = arith.mulf %113, %112 : vector<16x16xf32>
    %115 = arith.addf %110, %114 : vector<16x16xf32>
    %116 = vector.extract_strided_slice %2 {offsets = [3, 0], sizes = [16, 22], strides = [1, 1]} : vector<22x22xf32> to vector<16x22xf32>
    %c21 = arith.constant 21 : index
    %117 = memref.load %arg1[%c21] : memref<98xf32, #tpu.memory_space<smem>>
    %118 = vector.extract_strided_slice %116 {offsets = [0, 0], sizes = [16, 16], strides = [1, 1]} : vector<16x22xf32> to vector<16x16xf32>
    %119 = vector.broadcast %117 : f32 to vector<16x16xf32>
    %120 = arith.mulf %119, %118 : vector<16x16xf32>
    %121 = arith.addf %115, %120 : vector<16x16xf32>
    %c22 = arith.constant 22 : index
    %122 = memref.load %arg1[%c22] : memref<98xf32, #tpu.memory_space<smem>>
    %123 = vector.extract_strided_slice %116 {offsets = [0, 1], sizes = [16, 16], strides = [1, 1]} : vector<16x22xf32> to vector<16x16xf32>
    %124 = vector.broadcast %122 : f32 to vector<16x16xf32>
    %125 = arith.mulf %124, %123 : vector<16x16xf32>
    %126 = arith.addf %121, %125 : vector<16x16xf32>
    %c23 = arith.constant 23 : index
    %127 = memref.load %arg1[%c23] : memref<98xf32, #tpu.memory_space<smem>>
    %128 = vector.extract_strided_slice %116 {offsets = [0, 2], sizes = [16, 16], strides = [1, 1]} : vector<16x22xf32> to vector<16x16xf32>
    %129 = vector.broadcast %127 : f32 to vector<16x16xf32>
    %130 = arith.mulf %129, %128 : vector<16x16xf32>
    %131 = arith.addf %126, %130 : vector<16x16xf32>
    %c24 = arith.constant 24 : index
    %132 = memref.load %arg1[%c24] : memref<98xf32, #tpu.memory_space<smem>>
    %133 = vector.extract_strided_slice %116 {offsets = [0, 3], sizes = [16, 16], strides = [1, 1]} : vector<16x22xf32> to vector<16x16xf32>
    %134 = vector.broadcast %132 : f32 to vector<16x16xf32>
    %135 = arith.mulf %134, %133 : vector<16x16xf32>
    %136 = arith.addf %131, %135 : vector<16x16xf32>
    %c25 = arith.constant 25 : index
    %137 = memref.load %arg1[%c25] : memref<98xf32, #tpu.memory_space<smem>>
    %138 = vector.extract_strided_slice %116 {offsets = [0, 4], sizes = [16, 16], strides = [1, 1]} : vector<16x22xf32> to vector<16x16xf32>
    %139 = vector.broadcast %137 : f32 to vector<16x16xf32>
    %140 = arith.mulf %139, %138 : vector<16x16xf32>
    %141 = arith.addf %136, %140 : vector<16x16xf32>
    %c26 = arith.constant 26 : index
    %142 = memref.load %arg1[%c26] : memref<98xf32, #tpu.memory_space<smem>>
    %143 = vector.extract_strided_slice %116 {offsets = [0, 5], sizes = [16, 16], strides = [1, 1]} : vector<16x22xf32> to vector<16x16xf32>
    %144 = vector.broadcast %142 : f32 to vector<16x16xf32>
    %145 = arith.mulf %144, %143 : vector<16x16xf32>
    %146 = arith.addf %141, %145 : vector<16x16xf32>
    %c27 = arith.constant 27 : index
    %147 = memref.load %arg1[%c27] : memref<98xf32, #tpu.memory_space<smem>>
    %148 = vector.extract_strided_slice %116 {offsets = [0, 6], sizes = [16, 16], strides = [1, 1]} : vector<16x22xf32> to vector<16x16xf32>
    %149 = vector.broadcast %147 : f32 to vector<16x16xf32>
    %150 = arith.mulf %149, %148 : vector<16x16xf32>
    %151 = arith.addf %146, %150 : vector<16x16xf32>
    %152 = vector.extract_strided_slice %2 {offsets = [4, 0], sizes = [16, 22], strides = [1, 1]} : vector<22x22xf32> to vector<16x22xf32>
    %c28 = arith.constant 28 : index
    %153 = memref.load %arg1[%c28] : memref<98xf32, #tpu.memory_space<smem>>
    %154 = vector.extract_strided_slice %152 {offsets = [0, 0], sizes = [16, 16], strides = [1, 1]} : vector<16x22xf32> to vector<16x16xf32>
    %155 = vector.broadcast %153 : f32 to vector<16x16xf32>
    %156 = arith.mulf %155, %154 : vector<16x16xf32>
    %157 = arith.addf %151, %156 : vector<16x16xf32>
    %c29 = arith.constant 29 : index
    %158 = memref.load %arg1[%c29] : memref<98xf32, #tpu.memory_space<smem>>
    %159 = vector.extract_strided_slice %152 {offsets = [0, 1], sizes = [16, 16], strides = [1, 1]} : vector<16x22xf32> to vector<16x16xf32>
    %160 = vector.broadcast %158 : f32 to vector<16x16xf32>
    %161 = arith.mulf %160, %159 : vector<16x16xf32>
    %162 = arith.addf %157, %161 : vector<16x16xf32>
    %c30 = arith.constant 30 : index
    %163 = memref.load %arg1[%c30] : memref<98xf32, #tpu.memory_space<smem>>
    %164 = vector.extract_strided_slice %152 {offsets = [0, 2], sizes = [16, 16], strides = [1, 1]} : vector<16x22xf32> to vector<16x16xf32>
    %165 = vector.broadcast %163 : f32 to vector<16x16xf32>
    %166 = arith.mulf %165, %164 : vector<16x16xf32>
    %167 = arith.addf %162, %166 : vector<16x16xf32>
    %c31 = arith.constant 31 : index
    %168 = memref.load %arg1[%c31] : memref<98xf32, #tpu.memory_space<smem>>
    %169 = vector.extract_strided_slice %152 {offsets = [0, 3], sizes = [16, 16], strides = [1, 1]} : vector<16x22xf32> to vector<16x16xf32>
    %170 = vector.broadcast %168 : f32 to vector<16x16xf32>
    %171 = arith.mulf %170, %169 : vector<16x16xf32>
    %172 = arith.addf %167, %171 : vector<16x16xf32>
    %c32 = arith.constant 32 : index
    %173 = memref.load %arg1[%c32] : memref<98xf32, #tpu.memory_space<smem>>
    %174 = vector.extract_strided_slice %152 {offsets = [0, 4], sizes = [16, 16], strides = [1, 1]} : vector<16x22xf32> to vector<16x16xf32>
    %175 = vector.broadcast %173 : f32 to vector<16x16xf32>
    %176 = arith.mulf %175, %174 : vector<16x16xf32>
    %177 = arith.addf %172, %176 : vector<16x16xf32>
    %c33 = arith.constant 33 : index
    %178 = memref.load %arg1[%c33] : memref<98xf32, #tpu.memory_space<smem>>
    %179 = vector.extract_strided_slice %152 {offsets = [0, 5], sizes = [16, 16], strides = [1, 1]} : vector<16x22xf32> to vector<16x16xf32>
    %180 = vector.broadcast %178 : f32 to vector<16x16xf32>
    %181 = arith.mulf %180, %179 : vector<16x16xf32>
    %182 = arith.addf %177, %181 : vector<16x16xf32>
    %c34 = arith.constant 34 : index
    %183 = memref.load %arg1[%c34] : memref<98xf32, #tpu.memory_space<smem>>
    %184 = vector.extract_strided_slice %152 {offsets = [0, 6], sizes = [16, 16], strides = [1, 1]} : vector<16x22xf32> to vector<16x16xf32>
    %185 = vector.broadcast %183 : f32 to vector<16x16xf32>
    %186 = arith.mulf %185, %184 : vector<16x16xf32>
    %187 = arith.addf %182, %186 : vector<16x16xf32>
    %188 = vector.extract_strided_slice %2 {offsets = [5, 0], sizes = [16, 22], strides = [1, 1]} : vector<22x22xf32> to vector<16x22xf32>
    %c35 = arith.constant 35 : index
    %189 = memref.load %arg1[%c35] : memref<98xf32, #tpu.memory_space<smem>>
    %190 = vector.extract_strided_slice %188 {offsets = [0, 0], sizes = [16, 16], strides = [1, 1]} : vector<16x22xf32> to vector<16x16xf32>
    %191 = vector.broadcast %189 : f32 to vector<16x16xf32>
    %192 = arith.mulf %191, %190 : vector<16x16xf32>
    %193 = arith.addf %187, %192 : vector<16x16xf32>
    %c36 = arith.constant 36 : index
    %194 = memref.load %arg1[%c36] : memref<98xf32, #tpu.memory_space<smem>>
    %195 = vector.extract_strided_slice %188 {offsets = [0, 1], sizes = [16, 16], strides = [1, 1]} : vector<16x22xf32> to vector<16x16xf32>
    %196 = vector.broadcast %194 : f32 to vector<16x16xf32>
    %197 = arith.mulf %196, %195 : vector<16x16xf32>
    %198 = arith.addf %193, %197 : vector<16x16xf32>
    %c37 = arith.constant 37 : index
    %199 = memref.load %arg1[%c37] : memref<98xf32, #tpu.memory_space<smem>>
    %200 = vector.extract_strided_slice %188 {offsets = [0, 2], sizes = [16, 16], strides = [1, 1]} : vector<16x22xf32> to vector<16x16xf32>
    %201 = vector.broadcast %199 : f32 to vector<16x16xf32>
    %202 = arith.mulf %201, %200 : vector<16x16xf32>
    %203 = arith.addf %198, %202 : vector<16x16xf32>
    %c38 = arith.constant 38 : index
    %204 = memref.load %arg1[%c38] : memref<98xf32, #tpu.memory_space<smem>>
    %205 = vector.extract_strided_slice %188 {offsets = [0, 3], sizes = [16, 16], strides = [1, 1]} : vector<16x22xf32> to vector<16x16xf32>
    %206 = vector.broadcast %204 : f32 to vector<16x16xf32>
    %207 = arith.mulf %206, %205 : vector<16x16xf32>
    %208 = arith.addf %203, %207 : vector<16x16xf32>
    %c39 = arith.constant 39 : index
    %209 = memref.load %arg1[%c39] : memref<98xf32, #tpu.memory_space<smem>>
    %210 = vector.extract_strided_slice %188 {offsets = [0, 4], sizes = [16, 16], strides = [1, 1]} : vector<16x22xf32> to vector<16x16xf32>
    %211 = vector.broadcast %209 : f32 to vector<16x16xf32>
    %212 = arith.mulf %211, %210 : vector<16x16xf32>
    %213 = arith.addf %208, %212 : vector<16x16xf32>
    %c40 = arith.constant 40 : index
    %214 = memref.load %arg1[%c40] : memref<98xf32, #tpu.memory_space<smem>>
    %215 = vector.extract_strided_slice %188 {offsets = [0, 5], sizes = [16, 16], strides = [1, 1]} : vector<16x22xf32> to vector<16x16xf32>
    %216 = vector.broadcast %214 : f32 to vector<16x16xf32>
    %217 = arith.mulf %216, %215 : vector<16x16xf32>
    %218 = arith.addf %213, %217 : vector<16x16xf32>
    %c41 = arith.constant 41 : index
    %219 = memref.load %arg1[%c41] : memref<98xf32, #tpu.memory_space<smem>>
    %220 = vector.extract_strided_slice %188 {offsets = [0, 6], sizes = [16, 16], strides = [1, 1]} : vector<16x22xf32> to vector<16x16xf32>
    %221 = vector.broadcast %219 : f32 to vector<16x16xf32>
    %222 = arith.mulf %221, %220 : vector<16x16xf32>
    %223 = arith.addf %218, %222 : vector<16x16xf32>
    %224 = vector.extract_strided_slice %2 {offsets = [6, 0], sizes = [16, 22], strides = [1, 1]} : vector<22x22xf32> to vector<16x22xf32>
    %c42 = arith.constant 42 : index
    %225 = memref.load %arg1[%c42] : memref<98xf32, #tpu.memory_space<smem>>
    %226 = vector.extract_strided_slice %224 {offsets = [0, 0], sizes = [16, 16], strides = [1, 1]} : vector<16x22xf32> to vector<16x16xf32>
    %227 = vector.broadcast %225 : f32 to vector<16x16xf32>
    %228 = arith.mulf %227, %226 : vector<16x16xf32>
    %229 = arith.addf %223, %228 : vector<16x16xf32>
    %c43 = arith.constant 43 : index
    %230 = memref.load %arg1[%c43] : memref<98xf32, #tpu.memory_space<smem>>
    %231 = vector.extract_strided_slice %224 {offsets = [0, 1], sizes = [16, 16], strides = [1, 1]} : vector<16x22xf32> to vector<16x16xf32>
    %232 = vector.broadcast %230 : f32 to vector<16x16xf32>
    %233 = arith.mulf %232, %231 : vector<16x16xf32>
    %234 = arith.addf %229, %233 : vector<16x16xf32>
    %c44 = arith.constant 44 : index
    %235 = memref.load %arg1[%c44] : memref<98xf32, #tpu.memory_space<smem>>
    %236 = vector.extract_strided_slice %224 {offsets = [0, 2], sizes = [16, 16], strides = [1, 1]} : vector<16x22xf32> to vector<16x16xf32>
    %237 = vector.broadcast %235 : f32 to vector<16x16xf32>
    %238 = arith.mulf %237, %236 : vector<16x16xf32>
    %239 = arith.addf %234, %238 : vector<16x16xf32>
    %c45 = arith.constant 45 : index
    %240 = memref.load %arg1[%c45] : memref<98xf32, #tpu.memory_space<smem>>
    %241 = vector.extract_strided_slice %224 {offsets = [0, 3], sizes = [16, 16], strides = [1, 1]} : vector<16x22xf32> to vector<16x16xf32>
    %242 = vector.broadcast %240 : f32 to vector<16x16xf32>
    %243 = arith.mulf %242, %241 : vector<16x16xf32>
    %244 = arith.addf %239, %243 : vector<16x16xf32>
    %c46 = arith.constant 46 : index
    %245 = memref.load %arg1[%c46] : memref<98xf32, #tpu.memory_space<smem>>
    %246 = vector.extract_strided_slice %224 {offsets = [0, 4], sizes = [16, 16], strides = [1, 1]} : vector<16x22xf32> to vector<16x16xf32>
    %247 = vector.broadcast %245 : f32 to vector<16x16xf32>
    %248 = arith.mulf %247, %246 : vector<16x16xf32>
    %249 = arith.addf %244, %248 : vector<16x16xf32>
    %c47 = arith.constant 47 : index
    %250 = memref.load %arg1[%c47] : memref<98xf32, #tpu.memory_space<smem>>
    %251 = vector.extract_strided_slice %224 {offsets = [0, 5], sizes = [16, 16], strides = [1, 1]} : vector<16x22xf32> to vector<16x16xf32>
    %252 = vector.broadcast %250 : f32 to vector<16x16xf32>
    %253 = arith.mulf %252, %251 : vector<16x16xf32>
    %254 = arith.addf %249, %253 : vector<16x16xf32>
    %c48 = arith.constant 48 : index
    %255 = memref.load %arg1[%c48] : memref<98xf32, #tpu.memory_space<smem>>
    %256 = vector.extract_strided_slice %224 {offsets = [0, 6], sizes = [16, 16], strides = [1, 1]} : vector<16x22xf32> to vector<16x16xf32>
    %257 = vector.broadcast %255 : f32 to vector<16x16xf32>
    %258 = arith.mulf %257, %256 : vector<16x16xf32>
    %259 = arith.addf %254, %258 : vector<16x16xf32>
    %260 = vector.extract_strided_slice %5 {offsets = [0, 0], sizes = [16, 22], strides = [1, 1]} : vector<22x22xf32> to vector<16x22xf32>
    %c49 = arith.constant 49 : index
    %261 = memref.load %arg1[%c49] : memref<98xf32, #tpu.memory_space<smem>>
    %262 = vector.extract_strided_slice %260 {offsets = [0, 0], sizes = [16, 16], strides = [1, 1]} : vector<16x22xf32> to vector<16x16xf32>
    %263 = vector.broadcast %261 : f32 to vector<16x16xf32>
    %264 = arith.mulf %263, %262 : vector<16x16xf32>
    %265 = arith.addf %7, %264 : vector<16x16xf32>
    %c50 = arith.constant 50 : index
    %266 = memref.load %arg1[%c50] : memref<98xf32, #tpu.memory_space<smem>>
    %267 = vector.extract_strided_slice %260 {offsets = [0, 1], sizes = [16, 16], strides = [1, 1]} : vector<16x22xf32> to vector<16x16xf32>
    %268 = vector.broadcast %266 : f32 to vector<16x16xf32>
    %269 = arith.mulf %268, %267 : vector<16x16xf32>
    %270 = arith.addf %265, %269 : vector<16x16xf32>
    %c51 = arith.constant 51 : index
    %271 = memref.load %arg1[%c51] : memref<98xf32, #tpu.memory_space<smem>>
    %272 = vector.extract_strided_slice %260 {offsets = [0, 2], sizes = [16, 16], strides = [1, 1]} : vector<16x22xf32> to vector<16x16xf32>
    %273 = vector.broadcast %271 : f32 to vector<16x16xf32>
    %274 = arith.mulf %273, %272 : vector<16x16xf32>
    %275 = arith.addf %270, %274 : vector<16x16xf32>
    %c52 = arith.constant 52 : index
    %276 = memref.load %arg1[%c52] : memref<98xf32, #tpu.memory_space<smem>>
    %277 = vector.extract_strided_slice %260 {offsets = [0, 3], sizes = [16, 16], strides = [1, 1]} : vector<16x22xf32> to vector<16x16xf32>
    %278 = vector.broadcast %276 : f32 to vector<16x16xf32>
    %279 = arith.mulf %278, %277 : vector<16x16xf32>
    %280 = arith.addf %275, %279 : vector<16x16xf32>
    %c53 = arith.constant 53 : index
    %281 = memref.load %arg1[%c53] : memref<98xf32, #tpu.memory_space<smem>>
    %282 = vector.extract_strided_slice %260 {offsets = [0, 4], sizes = [16, 16], strides = [1, 1]} : vector<16x22xf32> to vector<16x16xf32>
    %283 = vector.broadcast %281 : f32 to vector<16x16xf32>
    %284 = arith.mulf %283, %282 : vector<16x16xf32>
    %285 = arith.addf %280, %284 : vector<16x16xf32>
    %c54 = arith.constant 54 : index
    %286 = memref.load %arg1[%c54] : memref<98xf32, #tpu.memory_space<smem>>
    %287 = vector.extract_strided_slice %260 {offsets = [0, 5], sizes = [16, 16], strides = [1, 1]} : vector<16x22xf32> to vector<16x16xf32>
    %288 = vector.broadcast %286 : f32 to vector<16x16xf32>
    %289 = arith.mulf %288, %287 : vector<16x16xf32>
    %290 = arith.addf %285, %289 : vector<16x16xf32>
    %c55 = arith.constant 55 : index
    %291 = memref.load %arg1[%c55] : memref<98xf32, #tpu.memory_space<smem>>
    %292 = vector.extract_strided_slice %260 {offsets = [0, 6], sizes = [16, 16], strides = [1, 1]} : vector<16x22xf32> to vector<16x16xf32>
    %293 = vector.broadcast %291 : f32 to vector<16x16xf32>
    %294 = arith.mulf %293, %292 : vector<16x16xf32>
    %295 = arith.addf %290, %294 : vector<16x16xf32>
    %296 = vector.extract_strided_slice %5 {offsets = [1, 0], sizes = [16, 22], strides = [1, 1]} : vector<22x22xf32> to vector<16x22xf32>
    %c56 = arith.constant 56 : index
    %297 = memref.load %arg1[%c56] : memref<98xf32, #tpu.memory_space<smem>>
    %298 = vector.extract_strided_slice %296 {offsets = [0, 0], sizes = [16, 16], strides = [1, 1]} : vector<16x22xf32> to vector<16x16xf32>
    %299 = vector.broadcast %297 : f32 to vector<16x16xf32>
    %300 = arith.mulf %299, %298 : vector<16x16xf32>
    %301 = arith.addf %295, %300 : vector<16x16xf32>
    %c57 = arith.constant 57 : index
    %302 = memref.load %arg1[%c57] : memref<98xf32, #tpu.memory_space<smem>>
    %303 = vector.extract_strided_slice %296 {offsets = [0, 1], sizes = [16, 16], strides = [1, 1]} : vector<16x22xf32> to vector<16x16xf32>
    %304 = vector.broadcast %302 : f32 to vector<16x16xf32>
    %305 = arith.mulf %304, %303 : vector<16x16xf32>
    %306 = arith.addf %301, %305 : vector<16x16xf32>
    %c58 = arith.constant 58 : index
    %307 = memref.load %arg1[%c58] : memref<98xf32, #tpu.memory_space<smem>>
    %308 = vector.extract_strided_slice %296 {offsets = [0, 2], sizes = [16, 16], strides = [1, 1]} : vector<16x22xf32> to vector<16x16xf32>
    %309 = vector.broadcast %307 : f32 to vector<16x16xf32>
    %310 = arith.mulf %309, %308 : vector<16x16xf32>
    %311 = arith.addf %306, %310 : vector<16x16xf32>
    %c59 = arith.constant 59 : index
    %312 = memref.load %arg1[%c59] : memref<98xf32, #tpu.memory_space<smem>>
    %313 = vector.extract_strided_slice %296 {offsets = [0, 3], sizes = [16, 16], strides = [1, 1]} : vector<16x22xf32> to vector<16x16xf32>
    %314 = vector.broadcast %312 : f32 to vector<16x16xf32>
    %315 = arith.mulf %314, %313 : vector<16x16xf32>
    %316 = arith.addf %311, %315 : vector<16x16xf32>
    %c60 = arith.constant 60 : index
    %317 = memref.load %arg1[%c60] : memref<98xf32, #tpu.memory_space<smem>>
    %318 = vector.extract_strided_slice %296 {offsets = [0, 4], sizes = [16, 16], strides = [1, 1]} : vector<16x22xf32> to vector<16x16xf32>
    %319 = vector.broadcast %317 : f32 to vector<16x16xf32>
    %320 = arith.mulf %319, %318 : vector<16x16xf32>
    %321 = arith.addf %316, %320 : vector<16x16xf32>
    %c61 = arith.constant 61 : index
    %322 = memref.load %arg1[%c61] : memref<98xf32, #tpu.memory_space<smem>>
    %323 = vector.extract_strided_slice %296 {offsets = [0, 5], sizes = [16, 16], strides = [1, 1]} : vector<16x22xf32> to vector<16x16xf32>
    %324 = vector.broadcast %322 : f32 to vector<16x16xf32>
    %325 = arith.mulf %324, %323 : vector<16x16xf32>
    %326 = arith.addf %321, %325 : vector<16x16xf32>
    %c62 = arith.constant 62 : index
    %327 = memref.load %arg1[%c62] : memref<98xf32, #tpu.memory_space<smem>>
    %328 = vector.extract_strided_slice %296 {offsets = [0, 6], sizes = [16, 16], strides = [1, 1]} : vector<16x22xf32> to vector<16x16xf32>
    %329 = vector.broadcast %327 : f32 to vector<16x16xf32>
    %330 = arith.mulf %329, %328 : vector<16x16xf32>
    %331 = arith.addf %326, %330 : vector<16x16xf32>
    %332 = vector.extract_strided_slice %5 {offsets = [2, 0], sizes = [16, 22], strides = [1, 1]} : vector<22x22xf32> to vector<16x22xf32>
    %c63 = arith.constant 63 : index
    %333 = memref.load %arg1[%c63] : memref<98xf32, #tpu.memory_space<smem>>
    %334 = vector.extract_strided_slice %332 {offsets = [0, 0], sizes = [16, 16], strides = [1, 1]} : vector<16x22xf32> to vector<16x16xf32>
    %335 = vector.broadcast %333 : f32 to vector<16x16xf32>
    %336 = arith.mulf %335, %334 : vector<16x16xf32>
    %337 = arith.addf %331, %336 : vector<16x16xf32>
    %c64 = arith.constant 64 : index
    %338 = memref.load %arg1[%c64] : memref<98xf32, #tpu.memory_space<smem>>
    %339 = vector.extract_strided_slice %332 {offsets = [0, 1], sizes = [16, 16], strides = [1, 1]} : vector<16x22xf32> to vector<16x16xf32>
    %340 = vector.broadcast %338 : f32 to vector<16x16xf32>
    %341 = arith.mulf %340, %339 : vector<16x16xf32>
    %342 = arith.addf %337, %341 : vector<16x16xf32>
    %c65 = arith.constant 65 : index
    %343 = memref.load %arg1[%c65] : memref<98xf32, #tpu.memory_space<smem>>
    %344 = vector.extract_strided_slice %332 {offsets = [0, 2], sizes = [16, 16], strides = [1, 1]} : vector<16x22xf32> to vector<16x16xf32>
    %345 = vector.broadcast %343 : f32 to vector<16x16xf32>
    %346 = arith.mulf %345, %344 : vector<16x16xf32>
    %347 = arith.addf %342, %346 : vector<16x16xf32>
    %c66 = arith.constant 66 : index
    %348 = memref.load %arg1[%c66] : memref<98xf32, #tpu.memory_space<smem>>
    %349 = vector.extract_strided_slice %332 {offsets = [0, 3], sizes = [16, 16], strides = [1, 1]} : vector<16x22xf32> to vector<16x16xf32>
    %350 = vector.broadcast %348 : f32 to vector<16x16xf32>
    %351 = arith.mulf %350, %349 : vector<16x16xf32>
    %352 = arith.addf %347, %351 : vector<16x16xf32>
    %c67 = arith.constant 67 : index
    %353 = memref.load %arg1[%c67] : memref<98xf32, #tpu.memory_space<smem>>
    %354 = vector.extract_strided_slice %332 {offsets = [0, 4], sizes = [16, 16], strides = [1, 1]} : vector<16x22xf32> to vector<16x16xf32>
    %355 = vector.broadcast %353 : f32 to vector<16x16xf32>
    %356 = arith.mulf %355, %354 : vector<16x16xf32>
    %357 = arith.addf %352, %356 : vector<16x16xf32>
    %c68 = arith.constant 68 : index
    %358 = memref.load %arg1[%c68] : memref<98xf32, #tpu.memory_space<smem>>
    %359 = vector.extract_strided_slice %332 {offsets = [0, 5], sizes = [16, 16], strides = [1, 1]} : vector<16x22xf32> to vector<16x16xf32>
    %360 = vector.broadcast %358 : f32 to vector<16x16xf32>
    %361 = arith.mulf %360, %359 : vector<16x16xf32>
    %362 = arith.addf %357, %361 : vector<16x16xf32>
    %c69 = arith.constant 69 : index
    %363 = memref.load %arg1[%c69] : memref<98xf32, #tpu.memory_space<smem>>
    %364 = vector.extract_strided_slice %332 {offsets = [0, 6], sizes = [16, 16], strides = [1, 1]} : vector<16x22xf32> to vector<16x16xf32>
    %365 = vector.broadcast %363 : f32 to vector<16x16xf32>
    %366 = arith.mulf %365, %364 : vector<16x16xf32>
    %367 = arith.addf %362, %366 : vector<16x16xf32>
    %368 = vector.extract_strided_slice %5 {offsets = [3, 0], sizes = [16, 22], strides = [1, 1]} : vector<22x22xf32> to vector<16x22xf32>
    %c70 = arith.constant 70 : index
    %369 = memref.load %arg1[%c70] : memref<98xf32, #tpu.memory_space<smem>>
    %370 = vector.extract_strided_slice %368 {offsets = [0, 0], sizes = [16, 16], strides = [1, 1]} : vector<16x22xf32> to vector<16x16xf32>
    %371 = vector.broadcast %369 : f32 to vector<16x16xf32>
    %372 = arith.mulf %371, %370 : vector<16x16xf32>
    %373 = arith.addf %367, %372 : vector<16x16xf32>
    %c71 = arith.constant 71 : index
    %374 = memref.load %arg1[%c71] : memref<98xf32, #tpu.memory_space<smem>>
    %375 = vector.extract_strided_slice %368 {offsets = [0, 1], sizes = [16, 16], strides = [1, 1]} : vector<16x22xf32> to vector<16x16xf32>
    %376 = vector.broadcast %374 : f32 to vector<16x16xf32>
    %377 = arith.mulf %376, %375 : vector<16x16xf32>
    %378 = arith.addf %373, %377 : vector<16x16xf32>
    %c72 = arith.constant 72 : index
    %379 = memref.load %arg1[%c72] : memref<98xf32, #tpu.memory_space<smem>>
    %380 = vector.extract_strided_slice %368 {offsets = [0, 2], sizes = [16, 16], strides = [1, 1]} : vector<16x22xf32> to vector<16x16xf32>
    %381 = vector.broadcast %379 : f32 to vector<16x16xf32>
    %382 = arith.mulf %381, %380 : vector<16x16xf32>
    %383 = arith.addf %378, %382 : vector<16x16xf32>
    %c73 = arith.constant 73 : index
    %384 = memref.load %arg1[%c73] : memref<98xf32, #tpu.memory_space<smem>>
    %385 = vector.extract_strided_slice %368 {offsets = [0, 3], sizes = [16, 16], strides = [1, 1]} : vector<16x22xf32> to vector<16x16xf32>
    %386 = vector.broadcast %384 : f32 to vector<16x16xf32>
    %387 = arith.mulf %386, %385 : vector<16x16xf32>
    %388 = arith.addf %383, %387 : vector<16x16xf32>
    %c74 = arith.constant 74 : index
    %389 = memref.load %arg1[%c74] : memref<98xf32, #tpu.memory_space<smem>>
    %390 = vector.extract_strided_slice %368 {offsets = [0, 4], sizes = [16, 16], strides = [1, 1]} : vector<16x22xf32> to vector<16x16xf32>
    %391 = vector.broadcast %389 : f32 to vector<16x16xf32>
    %392 = arith.mulf %391, %390 : vector<16x16xf32>
    %393 = arith.addf %388, %392 : vector<16x16xf32>
    %c75 = arith.constant 75 : index
    %394 = memref.load %arg1[%c75] : memref<98xf32, #tpu.memory_space<smem>>
    %395 = vector.extract_strided_slice %368 {offsets = [0, 5], sizes = [16, 16], strides = [1, 1]} : vector<16x22xf32> to vector<16x16xf32>
    %396 = vector.broadcast %394 : f32 to vector<16x16xf32>
    %397 = arith.mulf %396, %395 : vector<16x16xf32>
    %398 = arith.addf %393, %397 : vector<16x16xf32>
    %c76 = arith.constant 76 : index
    %399 = memref.load %arg1[%c76] : memref<98xf32, #tpu.memory_space<smem>>
    %400 = vector.extract_strided_slice %368 {offsets = [0, 6], sizes = [16, 16], strides = [1, 1]} : vector<16x22xf32> to vector<16x16xf32>
    %401 = vector.broadcast %399 : f32 to vector<16x16xf32>
    %402 = arith.mulf %401, %400 : vector<16x16xf32>
    %403 = arith.addf %398, %402 : vector<16x16xf32>
    %404 = vector.extract_strided_slice %5 {offsets = [4, 0], sizes = [16, 22], strides = [1, 1]} : vector<22x22xf32> to vector<16x22xf32>
    %c77 = arith.constant 77 : index
    %405 = memref.load %arg1[%c77] : memref<98xf32, #tpu.memory_space<smem>>
    %406 = vector.extract_strided_slice %404 {offsets = [0, 0], sizes = [16, 16], strides = [1, 1]} : vector<16x22xf32> to vector<16x16xf32>
    %407 = vector.broadcast %405 : f32 to vector<16x16xf32>
    %408 = arith.mulf %407, %406 : vector<16x16xf32>
    %409 = arith.addf %403, %408 : vector<16x16xf32>
    %c78 = arith.constant 78 : index
    %410 = memref.load %arg1[%c78] : memref<98xf32, #tpu.memory_space<smem>>
    %411 = vector.extract_strided_slice %404 {offsets = [0, 1], sizes = [16, 16], strides = [1, 1]} : vector<16x22xf32> to vector<16x16xf32>
    %412 = vector.broadcast %410 : f32 to vector<16x16xf32>
    %413 = arith.mulf %412, %411 : vector<16x16xf32>
    %414 = arith.addf %409, %413 : vector<16x16xf32>
    %c79 = arith.constant 79 : index
    %415 = memref.load %arg1[%c79] : memref<98xf32, #tpu.memory_space<smem>>
    %416 = vector.extract_strided_slice %404 {offsets = [0, 2], sizes = [16, 16], strides = [1, 1]} : vector<16x22xf32> to vector<16x16xf32>
    %417 = vector.broadcast %415 : f32 to vector<16x16xf32>
    %418 = arith.mulf %417, %416 : vector<16x16xf32>
    %419 = arith.addf %414, %418 : vector<16x16xf32>
    %c80 = arith.constant 80 : index
    %420 = memref.load %arg1[%c80] : memref<98xf32, #tpu.memory_space<smem>>
    %421 = vector.extract_strided_slice %404 {offsets = [0, 3], sizes = [16, 16], strides = [1, 1]} : vector<16x22xf32> to vector<16x16xf32>
    %422 = vector.broadcast %420 : f32 to vector<16x16xf32>
    %423 = arith.mulf %422, %421 : vector<16x16xf32>
    %424 = arith.addf %419, %423 : vector<16x16xf32>
    %c81 = arith.constant 81 : index
    %425 = memref.load %arg1[%c81] : memref<98xf32, #tpu.memory_space<smem>>
    %426 = vector.extract_strided_slice %404 {offsets = [0, 4], sizes = [16, 16], strides = [1, 1]} : vector<16x22xf32> to vector<16x16xf32>
    %427 = vector.broadcast %425 : f32 to vector<16x16xf32>
    %428 = arith.mulf %427, %426 : vector<16x16xf32>
    %429 = arith.addf %424, %428 : vector<16x16xf32>
    %c82 = arith.constant 82 : index
    %430 = memref.load %arg1[%c82] : memref<98xf32, #tpu.memory_space<smem>>
    %431 = vector.extract_strided_slice %404 {offsets = [0, 5], sizes = [16, 16], strides = [1, 1]} : vector<16x22xf32> to vector<16x16xf32>
    %432 = vector.broadcast %430 : f32 to vector<16x16xf32>
    %433 = arith.mulf %432, %431 : vector<16x16xf32>
    %434 = arith.addf %429, %433 : vector<16x16xf32>
    %c83 = arith.constant 83 : index
    %435 = memref.load %arg1[%c83] : memref<98xf32, #tpu.memory_space<smem>>
    %436 = vector.extract_strided_slice %404 {offsets = [0, 6], sizes = [16, 16], strides = [1, 1]} : vector<16x22xf32> to vector<16x16xf32>
    %437 = vector.broadcast %435 : f32 to vector<16x16xf32>
    %438 = arith.mulf %437, %436 : vector<16x16xf32>
    %439 = arith.addf %434, %438 : vector<16x16xf32>
    %440 = vector.extract_strided_slice %5 {offsets = [5, 0], sizes = [16, 22], strides = [1, 1]} : vector<22x22xf32> to vector<16x22xf32>
    %c84 = arith.constant 84 : index
    %441 = memref.load %arg1[%c84] : memref<98xf32, #tpu.memory_space<smem>>
    %442 = vector.extract_strided_slice %440 {offsets = [0, 0], sizes = [16, 16], strides = [1, 1]} : vector<16x22xf32> to vector<16x16xf32>
    %443 = vector.broadcast %441 : f32 to vector<16x16xf32>
    %444 = arith.mulf %443, %442 : vector<16x16xf32>
    %445 = arith.addf %439, %444 : vector<16x16xf32>
    %c85 = arith.constant 85 : index
    %446 = memref.load %arg1[%c85] : memref<98xf32, #tpu.memory_space<smem>>
    %447 = vector.extract_strided_slice %440 {offsets = [0, 1], sizes = [16, 16], strides = [1, 1]} : vector<16x22xf32> to vector<16x16xf32>
    %448 = vector.broadcast %446 : f32 to vector<16x16xf32>
    %449 = arith.mulf %448, %447 : vector<16x16xf32>
    %450 = arith.addf %445, %449 : vector<16x16xf32>
    %c86 = arith.constant 86 : index
    %451 = memref.load %arg1[%c86] : memref<98xf32, #tpu.memory_space<smem>>
    %452 = vector.extract_strided_slice %440 {offsets = [0, 2], sizes = [16, 16], strides = [1, 1]} : vector<16x22xf32> to vector<16x16xf32>
    %453 = vector.broadcast %451 : f32 to vector<16x16xf32>
    %454 = arith.mulf %453, %452 : vector<16x16xf32>
    %455 = arith.addf %450, %454 : vector<16x16xf32>
    %c87 = arith.constant 87 : index
    %456 = memref.load %arg1[%c87] : memref<98xf32, #tpu.memory_space<smem>>
    %457 = vector.extract_strided_slice %440 {offsets = [0, 3], sizes = [16, 16], strides = [1, 1]} : vector<16x22xf32> to vector<16x16xf32>
    %458 = vector.broadcast %456 : f32 to vector<16x16xf32>
    %459 = arith.mulf %458, %457 : vector<16x16xf32>
    %460 = arith.addf %455, %459 : vector<16x16xf32>
    %c88 = arith.constant 88 : index
    %461 = memref.load %arg1[%c88] : memref<98xf32, #tpu.memory_space<smem>>
    %462 = vector.extract_strided_slice %440 {offsets = [0, 4], sizes = [16, 16], strides = [1, 1]} : vector<16x22xf32> to vector<16x16xf32>
    %463 = vector.broadcast %461 : f32 to vector<16x16xf32>
    %464 = arith.mulf %463, %462 : vector<16x16xf32>
    %465 = arith.addf %460, %464 : vector<16x16xf32>
    %c89 = arith.constant 89 : index
    %466 = memref.load %arg1[%c89] : memref<98xf32, #tpu.memory_space<smem>>
    %467 = vector.extract_strided_slice %440 {offsets = [0, 5], sizes = [16, 16], strides = [1, 1]} : vector<16x22xf32> to vector<16x16xf32>
    %468 = vector.broadcast %466 : f32 to vector<16x16xf32>
    %469 = arith.mulf %468, %467 : vector<16x16xf32>
    %470 = arith.addf %465, %469 : vector<16x16xf32>
    %c90 = arith.constant 90 : index
    %471 = memref.load %arg1[%c90] : memref<98xf32, #tpu.memory_space<smem>>
    %472 = vector.extract_strided_slice %440 {offsets = [0, 6], sizes = [16, 16], strides = [1, 1]} : vector<16x22xf32> to vector<16x16xf32>
    %473 = vector.broadcast %471 : f32 to vector<16x16xf32>
    %474 = arith.mulf %473, %472 : vector<16x16xf32>
    %475 = arith.addf %470, %474 : vector<16x16xf32>
    %476 = vector.extract_strided_slice %5 {offsets = [6, 0], sizes = [16, 22], strides = [1, 1]} : vector<22x22xf32> to vector<16x22xf32>
    %c91 = arith.constant 91 : index
    %477 = memref.load %arg1[%c91] : memref<98xf32, #tpu.memory_space<smem>>
    %478 = vector.extract_strided_slice %476 {offsets = [0, 0], sizes = [16, 16], strides = [1, 1]} : vector<16x22xf32> to vector<16x16xf32>
    %479 = vector.broadcast %477 : f32 to vector<16x16xf32>
    %480 = arith.mulf %479, %478 : vector<16x16xf32>
    %481 = arith.addf %475, %480 : vector<16x16xf32>
    %c92 = arith.constant 92 : index
    %482 = memref.load %arg1[%c92] : memref<98xf32, #tpu.memory_space<smem>>
    %483 = vector.extract_strided_slice %476 {offsets = [0, 1], sizes = [16, 16], strides = [1, 1]} : vector<16x22xf32> to vector<16x16xf32>
    %484 = vector.broadcast %482 : f32 to vector<16x16xf32>
    %485 = arith.mulf %484, %483 : vector<16x16xf32>
    %486 = arith.addf %481, %485 : vector<16x16xf32>
    %c93 = arith.constant 93 : index
    %487 = memref.load %arg1[%c93] : memref<98xf32, #tpu.memory_space<smem>>
    %488 = vector.extract_strided_slice %476 {offsets = [0, 2], sizes = [16, 16], strides = [1, 1]} : vector<16x22xf32> to vector<16x16xf32>
    %489 = vector.broadcast %487 : f32 to vector<16x16xf32>
    %490 = arith.mulf %489, %488 : vector<16x16xf32>
    %491 = arith.addf %486, %490 : vector<16x16xf32>
    %c94 = arith.constant 94 : index
    %492 = memref.load %arg1[%c94] : memref<98xf32, #tpu.memory_space<smem>>
    %493 = vector.extract_strided_slice %476 {offsets = [0, 3], sizes = [16, 16], strides = [1, 1]} : vector<16x22xf32> to vector<16x16xf32>
    %494 = vector.broadcast %492 : f32 to vector<16x16xf32>
    %495 = arith.mulf %494, %493 : vector<16x16xf32>
    %496 = arith.addf %491, %495 : vector<16x16xf32>
    %c95 = arith.constant 95 : index
    %497 = memref.load %arg1[%c95] : memref<98xf32, #tpu.memory_space<smem>>
    %498 = vector.extract_strided_slice %476 {offsets = [0, 4], sizes = [16, 16], strides = [1, 1]} : vector<16x22xf32> to vector<16x16xf32>
    %499 = vector.broadcast %497 : f32 to vector<16x16xf32>
    %500 = arith.mulf %499, %498 : vector<16x16xf32>
    %501 = arith.addf %496, %500 : vector<16x16xf32>
    %c96 = arith.constant 96 : index
    %502 = memref.load %arg1[%c96] : memref<98xf32, #tpu.memory_space<smem>>
    %503 = vector.extract_strided_slice %476 {offsets = [0, 5], sizes = [16, 16], strides = [1, 1]} : vector<16x22xf32> to vector<16x16xf32>
    %504 = vector.broadcast %502 : f32 to vector<16x16xf32>
    %505 = arith.mulf %504, %503 : vector<16x16xf32>
    %506 = arith.addf %501, %505 : vector<16x16xf32>
    %c97 = arith.constant 97 : index
    %507 = memref.load %arg1[%c97] : memref<98xf32, #tpu.memory_space<smem>>
    %508 = vector.extract_strided_slice %476 {offsets = [0, 6], sizes = [16, 16], strides = [1, 1]} : vector<16x22xf32> to vector<16x16xf32>
    %509 = vector.broadcast %507 : f32 to vector<16x16xf32>
    %510 = arith.mulf %509, %508 : vector<16x16xf32>
    %511 = arith.addf %506, %510 : vector<16x16xf32>
    %512 = arith.addf %259, %511 : vector<16x16xf32>
    %c0_8 = arith.constant 0 : index
    %513 = memref.load %arg2[%c0_8] : memref<1xf32, #tpu.memory_space<smem>>
    %514 = vector.broadcast %513 : f32 to vector<16x16xf32>
    %515 = arith.addf %512, %514 : vector<16x16xf32>
    %cst_9 = arith.constant 0.000000e+00 : f32
    %516 = vector.broadcast %cst_9 : f32 to vector<16x16xf32>
    %517 = arith.subf %516, %515 : vector<16x16xf32>
    %518 = math.exp %517 : vector<16x16xf32>
    %cst_10 = arith.constant 1.000000e+00 : f32
    %519 = vector.broadcast %cst_10 : f32 to vector<16x16xf32>
    %520 = arith.addf %519, %518 : vector<16x16xf32>
    %cst_11 = arith.constant 1.000000e+00 : f32
    %521 = vector.broadcast %cst_11 : f32 to vector<16x16xf32>
    %522 = arith.divf %521, %520 : vector<16x16xf32>
    %523 = vector.extract_strided_slice %1 {offsets = [0, 3, 3], sizes = [4, 16, 16], strides = [1, 1, 1]} : vector<4x22x22xf32> to vector<4x16x16xf32>
    %524 = vector.shape_cast %522 : vector<16x16xf32> to vector<1x16x16xf32>
    %525 = vector.broadcast %524 : vector<1x16x16xf32> to vector<4x16x16xf32>
    %526 = arith.mulf %523, %525 : vector<4x16x16xf32>
    %c0_12 = arith.constant 0 : index
    %c0_13 = arith.constant 0 : index
    %c0_14 = arith.constant 0 : index
    %c0_15 = arith.constant 0 : index
    %527 = vector.load %arg4[%c0_12, %c0_13, %c0_14, %c0_15] : memref<1x4x16x16xf32, #tpu.memory_space<vmem>>, vector<1x4x16x16xf32>
    %528 = vector.shape_cast %527 : vector<1x4x16x16xf32> to vector<4x16x16xf32>
    %529 = vector.shape_cast %526 : vector<4x16x16xf32> to vector<1x4x16x16xf32>
    tpu.vector_store %arg4[%c0_12, %c0_13, %c0_14, %c0_15], %529 {strides = array<i32>} : memref<1x4x16x16xf32, #tpu.memory_space<vmem>>, vector<1x4x16x16xf32>,
    return
  }
  func.func @transform_0(%arg0: i32) -> i32 {
    %c0_i32 = arith.constant 0 : i32
    %c0_i32_0 = arith.constant 0 : i32
    return %c0_i32 : i32
  }
  func.func @transform_1(%arg0: i32) -> i32 {
    %c0_i32 = arith.constant 0 : i32
    %c0_i32_0 = arith.constant 0 : i32
    return %c0_i32 : i32
  }
  func.func @transform_2(%arg0: i32) -> (i32, i32, i32, i32) {
    %c0_i32 = arith.constant 0 : i32
    %c0_i32_0 = arith.constant 0 : i32
    %c0_i32_1 = arith.constant 0 : i32
    %c0_i32_2 = arith.constant 0 : i32
    return %arg0, %c0_i32, %c0_i32_0, %c0_i32_1 : i32, i32, i32, i32
  }
  func.func @transform_3(%arg0: i32) -> (i32, i32, i32, i32) {
    %c0_i32 = arith.constant 0 : i32
    %c0_i32_0 = arith.constant 0 : i32
    %c0_i32_1 = arith.constant 0 : i32
    %c0_i32_2 = arith.constant 0 : i32
    return %arg0, %c0_i32, %c0_i32_0, %c0_i32_1 : i32, i32, i32, i32
  }
}

</mosaic_0001>

<bundles_post_ra>
// kernel: spatial_gate_forward.1
= control target key start
LH: loop header
LB: loop body
LE: loop exit
PB: predicated region body
PF: predicated region fallthrough
CT: control target
= control target key end

     0   :  { %s4034_s0 = inlined_call_operand.vmem [shape: f32[98], index: 0, kind: input, shape index: {}]   ;;  %s4035_s1 = inlined_call_operand.<no memory space> [shape: f32[1], index: 1, kind: input, shape index: {}]   ;;  %s4036_s2 = inlined_call_operand.vmem [shape: f32[2,4,22,22], index: 2, kind: input, shape index: {}]   ;;  %s4037_s3 = inlined_call_operand.hbm [shape: f32[2,4,16,16], index: 3, kind: output, shape index: {}]  }
   0x1   :  { %8 = sst [smem:[#allocation2]] %s4035_s1 }
   0x2   :  { %9 = vsyncpa [#allocation5], 0 }
   0x3   :  { %10 = vsyncpa [#allocation4], 0 }
   0x4   :  { %12 = vsyncpa [#allocation4 + $0x1], 0  ;;  %s2648_s14 = smov 0   ;;  %s2650_s15 = smov 0  }
   0x5   :  { %s2652_s16 = smov 0   ;;  %s2654_s17 = smov 0  }
   0x6 LB: > { %s2669_s1 = sadd.s32 4294967295, %s2612_s17   ;;  %s2340_s18 = sadd.s32 4294967294, %s2612_s17   ;;  %s2612_s17 = sphi %s2654_s17, %s4104_s17   ;;  %s2608_s16 = sphi %s2652_s16, %s4103_s16   ;;  %s2604_s15 = sphi %s2650_s15, %s4102_s15   ;;  %s2600_s14 = sphi %s2648_s14, %s4101_s14  }
   0x7   : > { %s2673_s19 = sadd.s32 1, %s2612_s17   ;;  %s93_s20 = sadd.s32 1, %s2608_s16 }
   0x8   : > { %s90_s21 = ssub.s32 %s2612_s17, %s2673_s19  ;;  %p103_p0 = scmp.ne.s32.totalorder %s2608_s16, %s2604_s15 }
   0x9   : > { %p91_p1 = scmp.eq.s32.totalorder %s90_s21, 0  ;;  %p104_p2 = scmp.eq.s32.totalorder %s2669_s1, 1 }
   0xa   : > { %p109_p3 = scmp.ne.s32.totalorder %s2604_s15, %s2600_s14  ;;  %p110_p4 = scmp.eq.s32.totalorder %s2340_s18, 1 }
   0xb   : > { %s2684_s22 = scalar_select %p91_p1, %s2608_s16, %s93_s20  }
   0xc   : > { %p2686_p5 = por %p104_p2, %p103_p0  ;;  %p2690_p6 = por %p110_p4, %p109_p3 }
   0xd   : > { %p2341_p7 = scmp.ge.s32.totalorder %s2612_s17, 1  ;;  %p117_p8 = scmp.lt.s32.totalorder %s2612_s17, 3 }
   0xe   : > { %p2466_p9 = scmp.eq.s32.totalorder %s2669_s1, 0  ;;  %s130_s28 = sshll.u32 %s4034_s0, 4  ;;  %s131_s28 = int_to_ptr.vmem [resolvable:$true] %s130_s28 }
   0xf   : > { %p2697_p10 = pnand %p2341_p7, %p117_p8  ;;  %s2531_s29 = scalar_lea.vmem %s131_s28, 16 }
  0x10   : > { %p2532_p13 = scmp.ne.s32.totalorder %s131_s28, %s2531_s29  ;;  %p2539_p3 = scmp.lt.s32.totalorder %s131_s28, %s131_s28 }
  0x11   : > { %p2458_p11 = pneg %p2697_p10  ;;  %p2540_p4 = scmp.lt.s32.totalorder %s2531_s29, %s2531_s29 }
  0x13   : > { %p2459_p12 = pnand %p2466_p9, %p2458_p11  ;;  %p2541_p7 = por %p2540_p4, %p2539_p3 }
  0x15   : > { %p2533_p0 = pneg %p2459_p12 }
  0x17   : > { %p2534_p1 = pnand %p2533_p0, %p2532_p13 }
  0x19   : > { %p2535_p2 = pneg %p2534_p1 }
  0x1b   : > { %p2542_p8 = pnand %p2541_p7, %p2535_p2 }
  0x1d   : > { %2545 = shalt.err (!%p2542_p8)
}
  0x1e   : > { %s2614_s30 = smov [#allocation3]   ;;  %154 = sbr.rel (%p2697_p10) target bundleno = 809 (0x329), region = 32 }
  0x1f   : > { %2461 = dma.vmem_to_smem (!%p2459_p12), %s131_s28, 16, %s2614_s30, [#allocation5]  }
  0x25   : > { %2591 = dma.done.wait (%p2466_p9), [#allocation5], 16  }
  0x26   : > { %2593 = vsyncadd (%p2466_p9), [#allocation5], 4294967280 }
  0x27   : > { %160 = sfence }
  0x28   : > { %p179_p11 = scmp.lt.s32.totalorder %s2669_s1, 1  ;;  %s2716_s5 = sld [smem:[#allocation3 + $0x2]]  ;;  %vm196_vm0 = vcmask 179200   ;;  %vm211_vm1 = vcmask 177152   ;;  %vm341_vm2 = vcmask 1046528   ;;  %vm485_vm3 = vcmask 1045504  }
  0x29   : > { %s2718_s7 = sld [smem:[#allocation3 + $0x1]]  ;;  %s2765_s11 = sld [smem:[#allocation3 + $0x3]]  ;;  %vm629_vm4 = vcmask 1044480   ;;  %vm773_vm5 = vcmask 1043456   ;;  %vm917_vm6 = vcmask 1042432   ;;  %vm1061_vm7 = vcmask 1041408  }
  0x2a   : > { %s180_s4 = scalar_select %p179_p11, %s2669_s1, 1  ;;  %vm2237_vm8 = vcmask 130051   ;;  %vm2241_vm9 = vcmask 124928   ;;  %vm2239_vm10 = vcmask 130048  }
  0x2b   : > { %s2773_s12 = sld [smem:[#allocation3 + $0x4]]  ;;  %s2615_s13 = smov 126  }
  0x2c   : > { %s2451_s6 = smul.u32 96, %s180_s4  ;;  %s2616_s18 = smov 127  }
  0x2d   : > { %s2352_s20 = sld [smem:[#allocation3 + $0x5]]  ;;  %s2355_s21 = sld [smem:[#allocation3 + $0x8]] }
  0x2e   : > { %s2723_s10 = scalar_lea.vmem %s4036_s2, %s2451_s6  ;;  %v264_v20 = vstv %s2716_s5  ;;  %s2353_s25 = sld [smem:[#allocation3 + $0x6]] }
  0x2f   : > { %v2726_v0 = vld [vmem:[%s2723_s10] sm:$0xff]  ;;  %v2729_v1 = vld [vmem:[%s2723_s10 + $0x8] sm:$0xff]  ;;  %v2732_v2 = vld [vmem:[%s2723_s10 + $0x18] sm:$0xff]  ;;  %v250_v21 = vstv %s2718_s7  ;;  %s2356_s26 = sld [smem:[#allocation3 + $0x9]]  ;;  %s2617_s27 = smov 125  }
  0x30   : > { %v2735_v3 = vld [vmem:[%s2723_s10 + $0x20] sm:$0xff]  ;;  %v2738_v4 = vld [vmem:[%s2723_s10 + $0x30] sm:$0xff]  ;;  %v2741_v5 = vld [vmem:[%s2723_s10 + $0x38] sm:$0xff]  ;;  %v197_v6 = vsel %vm196_vm0, %v2726_v0, -inf  ;;  %v198_v7 = vsel %vm196_vm0, %v2732_v2, -inf  ;;  %v204_v8 = vsel %vm196_vm0, %v2729_v1, -inf  ;;  %v278_v32 = vstv %s2765_s11 }
  0x31   : > { %v2750_v9 = vld [vmem:[%s2723_s10 + $0x48] sm:$0xff]  ;;  %v2753_v10 = vld [vmem:[%s2723_s10 + $0x50] sm:$0xff]  ;;  %v199_v11 = vsel %vm196_vm0, %v2738_v4, -inf  ;;  %v205_v12 = vsel %vm196_vm0, %v2735_v3, -inf  ;;  %v206_v13 = vsel %vm196_vm0, %v2741_v5, -inf  ;;  %v292_v39 = vstv %s2773_s12  ;;  %s2357_s28 = sld [smem:[#allocation3 + $0xa]] }
  0x32   : > { %v200_v14 = vmax.f32 %v197_v6, %v199_v11  ;;  %v201_v15 = vsel %vm196_vm0, %v2750_v9, -inf  ;;  %v207_v16 = vmax.f32 %v204_v8, %v206_v13  ;;  %v208_v17 = vsel %vm196_vm0, %v2753_v10, -inf  ;;  %v2778_v26 = vld [vmem:[%s2723_s10 + $0x10] sm:$0x3f]  ;;  %v2781_v27 = vld [vmem:[%s2723_s10 + $0x28] sm:$0x3f] }
  0x33   : > { %v202_v18 = vmax.f32 %v198_v7, %v201_v15  ;;  %v209_v19 = vmax.f32 %v205_v12, %v208_v17  ;;  %v2784_v28 = vld [vmem:[%s2723_s10 + $0x40] sm:$0x3f]  ;;  %v2787_v29 = vld [vmem:[%s2723_s10 + $0x58] sm:$0x3f]  ;;  %v212_v33 = vsel %vm211_vm1, %v2778_v26, -inf  ;;  %v213_v34 = vsel %vm211_vm1, %v2781_v27, -inf }
  0x34   : > { %v214_v35 = vsel %vm211_vm1, %v2784_v28, -inf  ;;  %v216_v36 = vsel %vm211_vm1, %v2787_v29, -inf  ;;  %v306_v44 = vstv %s2352_s20  ;;  %v352_v46 = vstv %s2355_s21  ;;  %s2618_s29 = smov 124   ;;  %s2358_s30 = sld [smem:[#allocation3 + $0xb]] }
  0x35   : > { %v2769_v22 = vmax.f32 %v200_v14, %v202_v18  ;;  %v2771_v23 = vmax.f32 %v207_v16, %v209_v19  ;;  %v215_v40 = vmax.f32 %v212_v33, %v214_v35  ;;  %v217_v41 = vmax.f32 %v213_v34, %v216_v36  ;;  %s2619_s4 = smov 123   ;;  %s2359_s5 = sld [smem:[#allocation3 + $0xc]] }
  0x36   : > { %v320_v49 = vstv %s2353_s25  ;;  %v373_v53 = vstv %s2356_s26  ;;  %s2620_s6 = smov 122   ;;  %s2360_s7 = sld [smem:[#allocation3 + $0xd]] }
  0x37   : > { %v265_v24 = vmul.f32 %v264_v20, %v2769_v22  ;;  %v251_v25 = vmul.f32 %v250_v21, %v2769_v22  ;;  %v266_v30 = vmul.f32 %v264_v20, %v2771_v23  ;;  %v252_v31 = vmul.f32 %v250_v21, %v2771_v23  ;;  %s2362_s8 = sld [smem:[#allocation3 + $0xf]]  ;;  %s2363_s9 = sld [smem:[#allocation3 + $0x10]] }
  0x38   : > { %v280_v37 = vmul.f32 %v278_v32, %v2771_v23  ;;  %v279_v38 = vmul.f32 %v278_v32, %v2769_v22  ;;  %v294_v42 = vmul.f32 %v292_v39, %v2771_v23  ;;  %v293_v43 = vmul.f32 %v292_v39, %v2769_v22  ;;  %s2859_s11 = sld [smem:[#allocation3 + $0x11]]  ;;  %s2880_s12 = sld [smem:[#allocation3 + $0x32]] }
  0x39   : > { %269 = vrot.lane.b32.xlu1 %v265_v24, %s2615_s13  ;;  %255 = vrot.lane.b32.xlu0 %v251_v25, %s2616_s18  ;;  %v2811_v45 = vmax.f32 %v215_v40, %v217_v41  ;;  %v308_v47 = vmul.f32 %v306_v44, %v2771_v23  ;;  %v307_v48 = vmul.f32 %v306_v44, %v2769_v22  ;;  %v394_v58 = vstv %s2357_s28  ;;  %s2900_s20 = sld [smem:[#allocation3 + $0x33]]  ;;  %s2912_s21 = sld [smem:[#allocation3 + $0x34]] }
  0x3a   : > { %v354_v50 = vmul.f32 %v352_v46, %v2771_v23  ;;  %v353_v52 = vmul.f32 %v352_v46, %v2769_v22  ;;  %v322_v54 = vmul.f32 %v320_v49, %v2771_v23  ;;  %v321_v55 = vmul.f32 %v320_v49, %v2769_v22  ;;  %s2923_s25 = sld [smem:[#allocation3 + $0x35]]  ;;  %s2934_s26 = sld [smem:[#allocation3 + $0x36]] }
  0x3b   : > { %v355_v51 = vmul.f32 %v352_v46, %v2811_v45  ;;  %v375_v56 = vmul.f32 %v373_v53, %v2771_v23  ;;  %v374_v57 = vmul.f32 %v373_v53, %v2769_v22  ;;  %v376_v62 = vmul.f32 %v373_v53, %v2811_v45  ;;  %s2404_s28 = sld [smem:[#allocation3 + $0x39]] }
  0x3c   : > { %v360_v59 = vrot.slane %v354_v50, 1  ;;  %v359_v61 = vrot.slane %v353_v52, 1  ;;  %v396_v63 = vmul.f32 %v394_v58, %v2771_v23  ;;  %v395_v8 = vmul.f32 %v394_v58, %v2769_v22 }
  0x3d   : > { %271 = vrot.lane.b32.xlu1 %v266_v30, %s2615_s13  ;;  %257 = vrot.lane.b32.xlu0 %v252_v31, %s2616_s18  ;;  %v362_v60 = vrot.slane %v355_v51, 1  ;;  %v381_v6 = vrot.slane %v375_v56, 1  ;;  %v380_v7 = vrot.slane %v374_v57, 1  ;;  %v415_v11 = vstv %s2358_s30  ;;  %s2405_s30 = sld [smem:[#allocation3 + $0x3a]] }
  0x3e   : > { %v361_v13 = vsel %vm341_vm2, %v359_v61, %v360_v59  ;;  %v383_v14 = vrot.slane %v376_v62, 1  ;;  %v397_v15 = vmul.f32 %v394_v58, %v2811_v45  ;;  %v402_v16 = vrot.slane %v396_v63, 1 }
  0x3f   : > { %v363_v12 = vsel %vm341_vm2, %v360_v59, %v362_v60  ;;  %v382_v17 = vsel %vm341_vm2, %v380_v7, %v381_v6  ;;  %v401_v18 = vrot.slane %v395_v8, 1  ;;  %v417_v19 = vmul.f32 %v415_v11, %v2771_v23 }
  0x40   : > { %v436_v20 = vstv %s2359_s5  ;;  %v384_v21 = vsel %vm341_vm2, %v381_v6, %v383_v14  ;;  %v404_v24 = vrot.slane %v397_v15, 1  ;;  %v418_v25 = vmul.f32 %v415_v11, %v2811_v45  ;;  %s2943_s5 = sld [smem:[#allocation3 + $0x37]] }
  0x41   : > { %285 = vrot.lane.b32.xlu1 %v280_v37, %s2617_s27  ;;  %283 = vrot.lane.b32.xlu0 %v279_v38, %s2617_s27  ;;  %v416_v30 = vmul.f32 %v415_v11, %v2769_v22  ;;  %v438_v31 = vmul.f32 %v436_v20, %v2771_v23  ;;  %v403_v32 = vsel %vm341_vm2, %v401_v18, %v402_v16  ;;  %v423_v33 = vrot.slane %v417_v19, 1 }
  0x42   : > { %v439_v34 = vmul.f32 %v436_v20, %v2811_v45  ;;  %v437_v35 = vmul.f32 %v436_v20, %v2769_v22  ;;  %v405_v36 = vsel %vm341_vm2, %v402_v16, %v404_v24  ;;  %v425_v37 = vrot.slane %v418_v25, 1 }
  0x43   : > { %v422_v38 = vrot.slane %v416_v30, 1  ;;  %v457_v39 = vstv %s2360_s7  ;;  %v219_v40 = vsel %vm196_vm0, %v2726_v0, 0.0  ;;  %v220_v41 = vsel %vm196_vm0, %v2732_v2, 0.0  ;;  %s2406_s7 = sld [smem:[#allocation3 + $0x3b]] }
  0x44   : > { %v446_v44 = vrot.slane %v439_v34, 1  ;;  %v443_v46 = vrot.slane %v437_v35, 1  ;;  %v426_v49 = vsel %vm341_vm2, %v423_v33, %v425_v37  ;;  %v458_v0 = vmul.f32 %v457_v39, %v2769_v22 }
  0x45   : > { %299 = vrot.lane.b32.xlu1 %v294_v42, %s2618_s29  ;;  %297 = vrot.lane.b32.xlu0 %v293_v43, %s2618_s29  ;;  %v444_v42 = vrot.slane %v438_v31, 1  ;;  %v496_v43 = vstv %s2362_s8  ;;  %v424_v50 = vsel %vm341_vm2, %v422_v38, %v423_v33  ;;  %v221_v51 = vadd.f32 %v220_v41, %v219_v40  ;;  %s2407_s8 = sld [smem:[#allocation3 + $0x3c]] }
  0x46   : > { %v498_v2 = vmul.f32 %v496_v43, %v2771_v23  ;;  %v499_v52 = vmul.f32 %v496_v43, %v2811_v45  ;;  %v497_v53 = vmul.f32 %v496_v43, %v2769_v22  ;;  %v464_v59 = vrot.slane %v458_v0, 1 }
  0x47   : > { %v445_v56 = vsel %vm341_vm2, %v443_v46, %v444_v42  ;;  %v517_v60 = vstv %s2363_s9  ;;  %v226_v61 = vsel %vm196_vm0, %v2729_v1, 0.0  ;;  %v227_v62 = vsel %vm196_vm0, %v2735_v3, 0.0  ;;  %s2408_s9 = sld [smem:[#allocation3 + $0x3d]] }
  0x48   : > { %v506_v63 = vrot.slane %v499_v52, 2  ;;  %v503_v6 = vrot.slane %v497_v53, 2  ;;  %v519_v8 = vmul.f32 %v517_v60, %v2771_v23  ;;  %v520_v11 = vmul.f32 %v517_v60, %v2811_v45 }
  0x49   : > { %313 = vrot.lane.b32.xlu1 %v308_v47, %s2619_s4  ;;  %311 = vrot.lane.b32.xlu0 %v307_v48, %s2619_s4  ;;  %v459_v47 = vmul.f32 %v457_v39, %v2771_v23  ;;  %v460_v48 = vmul.f32 %v457_v39, %v2811_v45  ;;  %v224_v1 = vsel %vm196_vm0, %v2750_v9, 0.0  ;;  %v228_v3 = vadd.f32 %v227_v62, %v226_v61 }
  0x4a   : > { %v518_v14 = vmul.f32 %v517_v60, %v2769_v22  ;;  %v229_v15 = vsel %vm196_vm0, %v2741_v5, 0.0  ;;  %v2888_v16 = vstv %s2859_s11  ;;  %v525_v9 = vrot.slane %v519_v8, 2  ;;  %s2409_s11 = sld [smem:[#allocation3 + $0x3e]] }
  0x4b   : > { %v465_v57 = vrot.slane %v459_v47, 1  ;;  %v467_v58 = vrot.slane %v460_v48, 1  ;;  %v527_v19 = vrot.slane %v520_v11, 2  ;;  %v539_v25 = vmul.f32 %v2888_v16, %v2769_v22 }
  0x4c   : > { %v524_v24 = vrot.slane %v518_v14, 2  ;;  %v2898_v5 = vmul.f32 %v2888_v16, %v2771_v23  ;;  %v231_v30 = vsel %vm196_vm0, %v2753_v10, 0.0  ;;  %v1218_v40 = vstv %s2900_s20  ;;  %s2412_s20 = sld [smem:[#allocation3 + $0x41]] }
  0x4d   : > { %327 = vrot.lane.b32.xlu1 %v322_v54, %s2620_s6  ;;  %325 = vrot.lane.b32.xlu0 %v321_v55, %s2620_s6  ;;  %v222_v54 = vsel %vm196_vm0, %v2738_v4, 0.0  ;;  %v447_v55 = vsel %vm341_vm2, %v444_v42, %v446_v44  ;;  %v504_v4 = vrot.slane %v498_v2, 2  ;;  %v528_v34 = vsel %vm485_vm3, %v525_v9, %v527_v19 }
  0x4e   : > { %v223_v7 = vadd.f32 %v222_v54, %v221_v51  ;;  %v526_v35 = vsel %vm485_vm3, %v524_v24, %v525_v9  ;;  %v546_v37 = vrot.slane %v2898_v5, 2  ;;  %v233_v41 = vsel %vm211_vm1, %v2778_v26, 0.0 }
  0x4f   : > { %v505_v18 = vsel %vm485_vm3, %v503_v6, %v504_v4  ;;  %v234_v42 = vsel %vm211_vm1, %v2781_v27, 0.0  ;;  %v1232_v46 = vstv %s2912_s21  ;;  %v236_v26 = vsel %vm211_vm1, %v2784_v28, 0.0  ;;  %s2413_s21 = sld [smem:[#allocation3 + $0x42]] }
  0x50   : > { %v225_v20 = vadd.f32 %v224_v1, %v223_v7  ;;  %v235_v47 = vadd.f32 %v234_v42, %v233_v41  ;;  %v238_v0 = vsel %vm211_vm1, %v2787_v29, 0.0  ;;  %v1260_v2 = vstv %s2934_s26  ;;  %s2414_s26 = sld [smem:[#allocation3 + $0x43]] }
  0x51   : > { %366 = vrot.lane.b32.xlu1 %v363_v12, %s2616_s18  ;;  %364 = vrot.lane.b32.xlu0 %v361_v13, %s2616_s18  ;;  %v468_v12 = vsel %vm341_vm2, %v465_v57, %v467_v58  ;;  %v466_v13 = vsel %vm341_vm2, %v464_v59, %v465_v57  ;;  %v1305_v53 = vstv %s2404_s28  ;;  %v1389_v9 = vstv %s2408_s9  ;;  %s2366_s28 = sld [smem:[#allocation3 + $0x13]]  ;;  %s2418_s9 = sld [smem:[#allocation3 + $0x47]] }
  0x52   : > { %v2906_v31 = vmul.f32 0.25, %v225_v20 }
  0x54   : > { %v1219_v43 = vmul.f32 %v1218_v40, %v2906_v31  ;;  %v1233_v27 = vmul.f32 %v1232_v46, %v2906_v31  ;;  %v1261_v54 = vmul.f32 %v1260_v2, %v2906_v31  ;;  %v1306_v57 = vmul.f32 %v1305_v53, %v2906_v31 }
  0x55   : > { %387 = vrot.lane.b32.xlu1 %v384_v21, %s2615_s13  ;;  %385 = vrot.lane.b32.xlu0 %v382_v17, %s2615_s13  ;;  %v507_v17 = vsel %vm485_vm3, %v504_v4, %v506_v63  ;;  %v230_v21 = vadd.f32 %v229_v15, %v228_v3  ;;  %v1347_v4 = vstv %s2406_s7  ;;  %s2416_s7 = sld [smem:[#allocation3 + $0x45]] }
  0x56   : > { %v1312_v63 = vrot.slane %v1306_v57, 1  ;;  %v1348_v3 = vmul.f32 %v1347_v4, %v2906_v31 }
  0x57   : > { %v232_v33 = vadd.f32 %v231_v30, %v230_v21 }
  0x58   : > { %v1354_v19 = vrot.slane %v1348_v3, 1 }
  0x59   : > { %408 = vrot.lane.b32.xlu1 %v405_v36, %s2617_s27  ;;  %406 = vrot.lane.b32.xlu0 %v403_v32, %s2617_s27  ;;  %v1204_v32 = vstv %s2880_s12  ;;  %v545_v36 = vrot.slane %v539_v25, 2  ;;  %v2917_v38 = vmul.f32 0.25, %v232_v33  ;;  %s2411_s12 = sld [smem:[#allocation3 + $0x40]] }
  0x5a   : > { %v1205_v10 = vmul.f32 %v1204_v32, %v2906_v31 }
  0x5b   : > { %v547_v39 = vsel %vm485_vm3, %v545_v36, %v546_v37  ;;  %v1206_v44 = vmul.f32 %v1204_v32, %v2917_v38  ;;  %v1220_v48 = vmul.f32 %v1218_v40, %v2917_v38  ;;  %v1234_v51 = vmul.f32 %v1232_v46, %v2917_v38 }
  0x5c   : > { %v1307_v58 = vmul.f32 %v1305_v53, %v2917_v38  ;;  %v1262_v62 = vmul.f32 %v1260_v2, %v2917_v38 }
  0x5d   : > { %429 = vrot.lane.b32.xlu1 %v426_v49, %s2618_s29  ;;  %427 = vrot.lane.b32.xlu0 %v424_v50, %s2618_s29  ;;  %v1246_v49 = vstv %s2923_s25  ;;  %v237_v50 = vadd.f32 %v236_v26, %v235_v47  ;;  %s2365_s25 = sld [smem:[#allocation3 + $0x12]] }
  0x5e   : > { %v1247_v28 = vmul.f32 %v1246_v49, %v2906_v31  ;;  %v1248_v29 = vmul.f32 %v1246_v49, %v2917_v38  ;;  %v1313_v6 = vrot.slane %v1307_v58, 1 }
  0x5f   : > { %v239_v52 = vadd.f32 %v238_v0, %v237_v50  ;;  %v1448_v0 = vstv %s2411_s12  ;;  %s2419_s12 = sld [smem:[#allocation3 + $0x48]] }
  0x60   : > { %v1314_v14 = vsel %vm341_vm2, %v1312_v63, %v1313_v6 }
  0x61   : > { %450 = vrot.lane.b32.xlu1 %v447_v55, %s2619_s4  ;;  %448 = vrot.lane.b32.xlu0 %v445_v56, %s2619_s4  ;;  %v1326_v55 = vstv %s2405_s30  ;;  %v1274_v56 = vstv %s2943_s5  ;;  %v2959_v59 = vmul.f32 0.25, %v239_v52  ;;  %v1449_v52 = vmul.f32 %v1448_v0, %v2906_v31  ;;  %s2415_s30 = sld [smem:[#allocation3 + $0x44]] }
  0x62   : > { %v1327_v60 = vmul.f32 %v1326_v55, %v2906_v31  ;;  %v1275_v61 = vmul.f32 %v1274_v56, %v2906_v31  ;;  %v1328_v7 = vmul.f32 %v1326_v55, %v2917_v38  ;;  %v1276_v1 = vmul.f32 %v1274_v56, %v2917_v38  ;;  %s2367_s5 = sld [smem:[#allocation3 + $0x14]] }
  0x63   : > { %v1308_v8 = vmul.f32 %v1305_v53, %v2959_v59  ;;  %v1350_v33 = vmul.f32 %v1347_v4, %v2959_v59  ;;  %v1392_v50 = vmul.f32 %v1389_v9, %v2959_v59  ;;  %v1450_v53 = vmul.f32 %v1448_v0, %v2917_v38 }
  0x64   : > { %v1333_v11 = vrot.slane %v1327_v60, 1  ;;  %v1334_v15 = vrot.slane %v1328_v7, 1  ;;  %v1469_v56 = vstv %s2412_s20  ;;  %v1455_v58 = vrot.slane %v1449_v52, 2  ;;  %s2371_s20 = sld [smem:[#allocation3 + $0x18]] }
  0x65   : > { %471 = vrot.lane.b32.xlu1 %v468_v12, %s2620_s6  ;;  %469 = vrot.lane.b32.xlu0 %v466_v13, %s2620_s6  ;;  %v1349_v12 = vmul.f32 %v1347_v4, %v2917_v38  ;;  %v1368_v13 = vstv %s2407_s8  ;;  %v1357_v42 = vrot.slane %v1350_v33, 1  ;;  %v1456_v60 = vrot.slane %v1450_v53, 2  ;;  %s2369_s8 = sld [smem:[#allocation3 + $0x16]] }
  0x66   : > { %v1369_v21 = vmul.f32 %v1368_v13, %v2906_v31  ;;  %v1370_v24 = vmul.f32 %v1368_v13, %v2917_v38  ;;  %v1335_v25 = vsel %vm341_vm2, %v1333_v11, %v1334_v15  ;;  %v1471_v63 = vmul.f32 %v1469_v56, %v2917_v38 }
  0x67   : > { %v1355_v20 = vrot.slane %v1349_v12, 1  ;;  %v541_v7 = vmul.f32 %v2888_v16, %v2811_v45  ;;  %v1511_v33 = vstv %s2414_s26  ;;  %v1532_v52 = vstv %s2415_s30  ;;  %s2421_s26 = sld [smem:[#allocation3 + $0x4a]]  ;;  %s2422_s30 = sld [smem:[#allocation3 + $0x4b]] }
  0x68   : > { %v1375_v36 = vrot.slane %v1369_v21, 1  ;;  %v1477_v12 = vrot.slane %v1471_v63, 2  ;;  %v559_v21 = vstv %s2365_s25  ;;  %v1513_v5 = vmul.f32 %v1511_v33, %v2917_v38  ;;  %s2372_s25 = sld [smem:[#allocation3 + $0x19]] }
  0x69   : > { %510 = vrot.lane.b32.xlu1 %v507_v17, %s2616_s18  ;;  %508 = vrot.lane.b32.xlu0 %v505_v18, %s2616_s18  ;;  %v1315_v17 = vrot.slane %v1308_v8, 1  ;;  %v1329_v18 = vmul.f32 %v1326_v55, %v2959_v59  ;;  %v1356_v40 = vsel %vm341_vm2, %v1354_v19, %v1355_v20  ;;  %v1457_v8 = vsel %vm485_vm3, %v1455_v58, %v1456_v60 }
  0x6a   : > { %v601_v58 = vstv %s2367_s5  ;;  %s2374_s5 = sld [smem:[#allocation3 + $0x1b]] }
  0x6b   : > { %v1316_v30 = vsel %vm341_vm2, %v1313_v6, %v1315_v17  ;;  %v1336_v32 = vrot.slane %v1329_v18, 1  ;;  %v1451_v6 = vmul.f32 %v1448_v0, %v2959_v59 }
  0x6d   : > { %531 = vrot.lane.b32.xlu1 %v528_v34, %s2615_s13  ;;  %529 = vrot.lane.b32.xlu0 %v526_v35, %s2615_s13  ;;  %v1390_v34 = vmul.f32 %v1389_v9, %v2906_v31  ;;  %v1391_v35 = vmul.f32 %v1389_v9, %v2917_v38  ;;  %v1337_v41 = vsel %vm341_vm2, %v1334_v15, %v1336_v32  ;;  %v548_v15 = vrot.slane %v541_v7, 2 }
  0x6e   : > { %v603_v7 = vmul.f32 %v601_v58, %v2771_v23 }
  0x6f   : > { %v1397_v46 = vrot.slane %v1391_v35, 1  ;;  %v561_v35 = vmul.f32 %v559_v21, %v2771_v23 }
  0x71   : > { %1209 = vrot.lane.b32.xlu1 %v1205_v10, %s2616_s18  ;;  %550 = vrot.lane.b32.xlu0 %v547_v39, %s2617_s27  ;;  %v1376_v10 = vrot.slane %v1370_v24, 1  ;;  %v1410_v39 = vstv %s2409_s11  ;;  %v549_v24 = vsel %vm485_vm3, %v546_v37, %v548_v15  ;;  %v1514_v37 = vmul.f32 %v1511_v33, %v2959_v59  ;;  %s2370_s11 = sld [smem:[#allocation3 + $0x17]] }
  0x72   : > { %v1411_v26 = vmul.f32 %v1410_v39, %v2906_v31  ;;  %v1413_v55 = vmul.f32 %v1410_v39, %v2959_v59  ;;  %v1553_v15 = vstv %s2416_s7  ;;  %s2423_s7 = sld [smem:[#allocation3 + $0x4c]] }
  0x73   : > { %v1377_v47 = vsel %vm341_vm2, %v1375_v36, %v1376_v10  ;;  %v562_v36 = vmul.f32 %v559_v21, %v2811_v45 }
  0x74   : > { %v1420_v4 = vrot.slane %v1413_v55, 1 }
  0x75   : > { %1223 = vrot.lane.b32.xlu1 %v1219_v43, %s2615_s13  ;;  %1211 = vrot.lane.b32.xlu0 %v1206_v44, %s2616_s18  ;;  %v1371_v43 = vmul.f32 %v1368_v13, %v2959_v59  ;;  %v1396_v44 = vrot.slane %v1390_v34, 1  ;;  %v1458_v13 = vrot.slane %v1451_v6, 2 }
  0x77   : > { %v1378_v49 = vrot.slane %v1371_v43, 1  ;;  %v1459_v19 = vsel %vm485_vm3, %v1456_v60, %v1458_v13  ;;  %v567_v43 = vrot.slane %v561_v35, 2 }
  0x79   : > { %1237 = vrot.lane.b32.xlu1 %v1233_v27, %s2617_s27  ;;  %1225 = vrot.lane.b32.xlu0 %v1220_v48, %s2615_s13  ;;  %v1412_v27 = vmul.f32 %v1410_v39, %v2917_v38  ;;  %v1358_v48 = vsel %vm341_vm2, %v1355_v20, %v1357_v42 }
  0x7b   : > { %v1418_v2 = vrot.slane %v1412_v27, 1  ;;  %v1519_v27 = vrot.slane %v1513_v5, 2 }
  0x7d   : > { %1251 = vrot.lane.b32.xlu1 %v1247_v28, %s2618_s29  ;;  %1239 = vrot.lane.b32.xlu0 %v1234_v51, %s2617_s27  ;;  %v1398_v28 = vsel %vm341_vm2, %v1396_v44, %v1397_v46  ;;  %v1417_v51 = vrot.slane %v1411_v26, 1  ;;  %v1421_v3 = vsel %vm341_vm2, %v1418_v2, %v1420_v4  ;;  %v569_v44 = vrot.slane %v562_v36, 2 }
  0x7e   : > { %v1533_v4 = vmul.f32 %v1532_v52, %v2906_v31 }
  0x7f   : > { %v1419_v57 = vsel %vm341_vm2, %v1417_v51, %v1418_v2 }
  0x81   : > { %1265 = vrot.lane.b32.xlu1 %v1261_v54, %s2619_s4  ;;  %1253 = vrot.lane.b32.xlu0 %v1248_v29, %s2618_s29  ;;  %v1379_v54 = vsel %vm341_vm2, %v1376_v10, %v1378_v49  ;;  %v1399_v29 = vrot.slane %v1392_v50, 1  ;;  %v560_v10 = vmul.f32 %v559_v21, %v2769_v22  ;;  %v640_v21 = vstv %s2369_s8  ;;  %s2376_s8 = sld [smem:[#allocation3 + $0x1d]] }
  0x82   : > { %v642_v35 = vmul.f32 %v640_v21, %v2771_v23 }
  0x85   : > { %1279 = vrot.lane.b32.xlu1 %v1275_v61, %s2620_s6  ;;  %1267 = vrot.lane.b32.xlu0 %v1262_v62, %s2619_s4  ;;  %v1470_v61 = vmul.f32 %v1469_v56, %v2906_v31  ;;  %v1400_v62 = vsel %vm341_vm2, %v1397_v46, %v1399_v29  ;;  %v566_v46 = vrot.slane %v560_v10, 2 }
  0x87   : > { %v1476_v11 = vrot.slane %v1470_v61, 2  ;;  %v568_v51 = vsel %vm485_vm3, %v566_v46, %v567_v43  ;;  %v648_v46 = vrot.slane %v642_v35, 3 }
  0x89   : > { %1317 = vrot.lane.b32.xlu1 %v1314_v14, %s2616_s18  ;;  %1281 = vrot.lane.b32.xlu0 %v1276_v1, %s2620_s6  ;;  %v1472_v1 = vmul.f32 %v1469_v56, %v2959_v59  ;;  %v1490_v14 = vstv %s2413_s21  ;;  %v1478_v9 = vsel %vm485_vm3, %v1476_v11, %v1477_v12  ;;  %s2420_s21 = sld [smem:[#allocation3 + $0x49]] }
  0x8a   : > { %v1492_v17 = vmul.f32 %v1490_v14, %v2917_v38  ;;  %v1493_v18 = vmul.f32 %v1490_v14, %v2959_v59  ;;  %v1491_v20 = vmul.f32 %v1490_v14, %v2906_v31  ;;  %v1539_v14 = vrot.slane %v1533_v4, 2 }
  0x8b   : > { %v1479_v16 = vrot.slane %v1472_v1, 2  ;;  %v604_v1 = vmul.f32 %v601_v58, %v2811_v45 }
  0x8c   : > { %v1500_v32 = vrot.slane %v1493_v18, 2  ;;  %v1497_v34 = vrot.slane %v1491_v20, 2  ;;  %v609_v18 = vrot.slane %v603_v7, 2  ;;  %v1555_v20 = vmul.f32 %v1553_v15, %v2917_v38 }
  0x8d   : > { %1338 = vrot.lane.b32.xlu1 %v1335_v25, %s2615_s13  ;;  %1319 = vrot.lane.b32.xlu0 %v1316_v30, %s2616_s18  ;;  %v1480_v25 = vsel %vm485_vm3, %v1477_v12, %v1479_v16  ;;  %v1498_v30 = vrot.slane %v1492_v17, 2  ;;  %v1612_v7 = vstv %s2419_s12  ;;  %s3231_s12 = sld [smem:[#allocation3 + $0x4f]] }
  0x8e   : > { %v1561_v5 = vrot.slane %v1555_v20, 2 }
  0x8f   : > { %v1501_v39 = vsel %vm485_vm3, %v1498_v30, %v1500_v32  ;;  %v1499_v42 = vsel %vm485_vm3, %v1497_v34, %v1498_v30  ;;  %v1556_v30 = vmul.f32 %v1553_v15, %v2959_v59  ;;  %v1554_v32 = vmul.f32 %v1553_v15, %v2906_v31 }
  0x91   : > { %1359 = vrot.lane.b32.xlu1 %v1356_v40, %s2617_s27  ;;  %1340 = vrot.lane.b32.xlu0 %v1337_v41, %s2615_s13  ;;  %v1512_v40 = vmul.f32 %v1511_v33, %v2906_v31  ;;  %v580_v41 = vstv %s2366_s28  ;;  %s2373_s28 = sld [smem:[#allocation3 + $0x1a]] }
  0x92   : > { %v582_v50 = vmul.f32 %v580_v41, %v2771_v23  ;;  %v583_v0 = vmul.f32 %v580_v41, %v2811_v45  ;;  %v581_v2 = vmul.f32 %v580_v41, %v2769_v22  ;;  %v641_v41 = vmul.f32 %v640_v21, %v2769_v22 }
  0x93   : > { %v1518_v49 = vrot.slane %v1512_v40, 2  ;;  %v1560_v40 = vrot.slane %v1554_v32, 2 }
  0x94   : > { %v588_v55 = vrot.slane %v582_v50, 2  ;;  %v590_v56 = vrot.slane %v583_v0, 2  ;;  %v587_v61 = vrot.slane %v581_v2, 2  ;;  %v661_v50 = vstv %s2370_s11  ;;  %s2377_s11 = sld [smem:[#allocation3 + $0x1e]] }
  0x95   : > { %1380 = vrot.lane.b32.xlu1 %v1377_v47, %s2618_s29  ;;  %1361 = vrot.lane.b32.xlu0 %v1358_v48, %s2617_s27  ;;  %v1521_v48 = vrot.slane %v1514_v37, 2  ;;  %v1520_v60 = vsel %vm485_vm3, %v1518_v49, %v1519_v27  ;;  %v643_v37 = vmul.f32 %v640_v21, %v2811_v45 }
  0x96   : > { %v589_v12 = vsel %vm485_vm3, %v587_v61, %v588_v55 }
  0x97   : > { %v1522_v29 = vsel %vm485_vm3, %v1519_v27, %v1521_v48  ;;  %v650_v27 = vrot.slane %v643_v37, 3  ;;  %v1633_v37 = vstv %s2420_s21  ;;  %s3242_s21 = sld [smem:[#allocation3 + $0x1f]] }
  0x99   : > { %1401 = vrot.lane.b32.xlu1 %v1398_v28, %s2619_s4  ;;  %1382 = vrot.lane.b32.xlu0 %v1379_v54, %s2618_s29  ;;  %v570_v28 = vsel %vm485_vm3, %v567_v43, %v569_v44  ;;  %v651_v61 = vsel %vm629_vm4, %v648_v46, %v650_v27  ;;  %v1635_v27 = vmul.f32 %v1633_v37, %v2917_v38 }
  0x9d   : > { %1422 = vrot.lane.b32.xlu1 %v1419_v57, %s2620_s6  ;;  %1403 = vrot.lane.b32.xlu0 %v1400_v62, %s2619_s4  ;;  %v1534_v57 = vmul.f32 %v1532_v52, %v2917_v38  ;;  %v1535_v62 = vmul.f32 %v1532_v52, %v2959_v59 }
  0x9f   : > { %v1540_v11 = vrot.slane %v1534_v57, 2  ;;  %v1542_v13 = vrot.slane %v1535_v62, 2 }
  0xa1   : > { %1460 = vrot.lane.b32.xlu1 %v1457_v8, %s2616_s18  ;;  %1424 = vrot.lane.b32.xlu0 %v1421_v3, %s2620_s6  ;;  %v591_v8 = vsel %vm485_vm3, %v588_v55, %v590_v56  ;;  %v602_v3 = vmul.f32 %v601_v58, %v2769_v22  ;;  %v663_v55 = vmul.f32 %v661_v50, %v2771_v23 }
  0xa2   : > { %v664_v56 = vmul.f32 %v661_v50, %v2811_v45 }
  0xa5   : > { %1481 = vrot.lane.b32.xlu1 %v1478_v9, %s2615_s13  ;;  %1462 = vrot.lane.b32.xlu0 %v1459_v19, %s2616_s18  ;;  %v611_v9 = vrot.slane %v604_v1, 2  ;;  %v608_v19 = vrot.slane %v602_v3, 2  ;;  %v669_v1 = vrot.slane %v663_v55, 3  ;;  %v671_v3 = vrot.slane %v664_v56, 3 }
  0xa7   : > { %v612_v36 = vsel %vm485_vm3, %v609_v18, %v611_v9  ;;  %v610_v10 = vsel %vm485_vm3, %v608_v19, %v609_v18  ;;  %v1615_v18 = vmul.f32 %v1612_v7, %v2959_v59  ;;  %v1613_v9 = vmul.f32 %v1612_v7, %v2906_v31 }
  0xa8   : > { %v682_v19 = vstv %s2371_s20  ;;  %s3233_s20 = sld [smem:[#allocation3 + $0x7]] }
  0xa9   : > { %552 = vrot.lane.b32.xlu1 %v549_v24, %s2617_s27  ;;  %1483 = vrot.lane.b32.xlu0 %v1480_v25, %s2615_s13  ;;  %v1543_v24 = vsel %vm485_vm3, %v1540_v11, %v1542_v13  ;;  %v1541_v25 = vsel %vm485_vm3, %v1539_v14, %v1540_v11  ;;  %v1614_v14 = vmul.f32 %v1612_v7, %v2917_v38  ;;  %v1654_v7 = vstv %s2421_s26  ;;  %s3255_s26 = sld [smem:[#allocation3 + $0x50]] }
  0xaa   : > { %v684_v32 = vmul.f32 %v682_v19, %v2771_v23  ;;  %v685_v35 = vmul.f32 %v682_v19, %v2811_v45 }
  0xab   : > { %v3040_v47 = vpop.permute.xlu1 %269  ;;  %v3042_v26 = vpop.permute.xlu0 %255 }
  0xad   : > { %1504 = vrot.lane.b32.xlu1 %v1501_v39, %s2617_s27  ;;  %1502 = vrot.lane.b32.xlu0 %v1499_v42, %s2617_s27  ;;  %v1563_v39 = vrot.slane %v1556_v30, 2  ;;  %v1591_v42 = vstv %s2418_s9  ;;  %v1620_v30 = vrot.slane %v1614_v14, 3  ;;  %v1656_v14 = vmul.f32 %v1654_v7, %v2917_v38  ;;  %s2425_s9 = sld [smem:[#allocation3 + $0x4e]] }
  0xae   : > { %v1593_v48 = vmul.f32 %v1591_v42, %v2917_v38  ;;  %v1594_v49 = vmul.f32 %v1591_v42, %v2959_v59  ;;  %v1592_v2 = vmul.f32 %v1591_v42, %v2906_v31  ;;  %v690_v42 = vrot.slane %v684_v32, 3 }
  0xaf   : > { %v3051_v53 = vpop.permute.xlu1 %271  ;;  %v3053_v54 = vpop.permute.xlu0 %257  ;;  %v1564_v0 = vsel %vm485_vm3, %v1561_v5, %v1563_v39  ;;  %v724_v32 = vstv %s2373_s28  ;;  %s3264_s28 = sld [smem:[#allocation3]] }
  0xb0   : > { %v1599_v57 = vrot.slane %v1593_v48, 3  ;;  %v1601_v58 = vrot.slane %v1594_v49, 3  ;;  %v1598_v4 = vrot.slane %v1592_v2, 3  ;;  %v1636_v48 = vmul.f32 %v1633_v37, %v2959_v59 }
  0xb1   : > { %573 = vrot.lane.b32.xlu1 %v570_v28, %s2618_s29  ;;  %571 = vrot.lane.b32.xlu0 %v568_v51, %s2618_s29  ;;  %v1562_v28 = vsel %vm485_vm3, %v1560_v40, %v1561_v5  ;;  %v647_v51 = vrot.slane %v641_v41, 3  ;;  %v683_v5 = vmul.f32 %v682_v19, %v2769_v22  ;;  %v703_v41 = vstv %s2372_s25  ;;  %s3248_s25 = sld [smem:[#allocation3 + $0xe]] }
  0xb2   : > { %v1600_v15 = vsel %vm629_vm4, %v1598_v4, %v1599_v57  ;;  %v705_v55 = vmul.f32 %v703_v41, %v2771_v23  ;;  %v706_v56 = vmul.f32 %v703_v41, %v2811_v45  ;;  %v704_v4 = vmul.f32 %v703_v41, %v2769_v22 }
  0xb3   : > { %v3062_v63 = vpop.permute.xlu1 %285  ;;  %v3064_v6 = vpop.permute.xlu0 %283  ;;  %v649_v62 = vsel %vm629_vm4, %v647_v51, %v648_v46  ;;  %v692_v46 = vrot.slane %v685_v35, 3 }
  0xb5   : > { %1525 = vrot.lane.b32.xlu1 %v1522_v29, %s2618_s29  ;;  %1523 = vrot.lane.b32.xlu0 %v1520_v60, %s2618_s29  ;;  %v662_v60 = vmul.f32 %v661_v50, %v2769_v22 }
  0xb7   : > { %v3073_v16 = vpop.permute.xlu1 %299  ;;  %v3075_v17 = vpop.permute.xlu0 %297  ;;  %v668_v13 = vrot.slane %v662_v60, 3  ;;  %v1643_v60 = vrot.slane %v1636_v48, 3 }
  0xb9   : > { %594 = vrot.lane.b32.xlu1 %v591_v8, %s2619_s4  ;;  %592 = vrot.lane.b32.xlu0 %v589_v12, %s2619_s4  ;;  %v1602_v12 = vsel %vm629_vm4, %v1599_v57, %v1601_v58  ;;  %v693_v57 = vsel %vm629_vm4, %v690_v42, %v692_v46  ;;  %v1641_v58 = vrot.slane %v1635_v27, 3  ;;  %v727_v46 = vmul.f32 %v724_v32, %v2811_v45 }
  0xba   : > { %v725_v27 = vmul.f32 %v724_v32, %v2769_v22 }
  0xbb   : > { %v3084_v33 = vpop.permute.xlu1 %313  ;;  %v3086_v34 = vpop.permute.xlu0 %311 }
  0xbd   : > { %1546 = vrot.lane.b32.xlu1 %v1543_v24, %s2619_s4  ;;  %1544 = vrot.lane.b32.xlu0 %v1541_v25, %s2619_s4  ;;  %v672_v24 = vsel %vm629_vm4, %v669_v1, %v671_v3  ;;  %v670_v25 = vsel %vm629_vm4, %v668_v13, %v669_v1  ;;  %v713_v13 = vrot.slane %v706_v56, 3 }
  0xbf   : > { %v3095_v43 = vpop.permute.xlu1 %327  ;;  %v3097_v44 = vpop.permute.xlu0 %325 }
  0xc1   : > { %615 = vrot.lane.b32.xlu1 %v612_v36, %s2620_s6  ;;  %613 = vrot.lane.b32.xlu0 %v610_v10, %s2620_s6  ;;  %v1622_v36 = vrot.slane %v1615_v18, 3  ;;  %v1619_v10 = vrot.slane %v1613_v9, 3  ;;  %v1655_v18 = vmul.f32 %v1654_v7, %v2906_v31  ;;  %v1644_v9 = vsel %vm629_vm4, %v1641_v58, %v1643_v60 }
  0xc2   : > { %v731_v60 = vrot.slane %v725_v27, 3 }
  0xc3   : > { %v3106_v52 = vpop.permute.xlu1 %366  ;;  %v3108_v29 = vpop.permute.xlu0 %364  ;;  %v1623_v49 = vsel %vm629_vm4, %v1620_v30, %v1622_v36  ;;  %v1621_v50 = vsel %vm629_vm4, %v1619_v10, %v1620_v30  ;;  %v1662_v36 = vrot.slane %v1656_v14, 3 }
  0xc5   : > { %1567 = vrot.lane.b32.xlu1 %v1564_v0, %s2620_s6  ;;  %1565 = vrot.lane.b32.xlu0 %v1562_v28, %s2620_s6  ;;  %v689_v0 = vrot.slane %v683_v5, 3  ;;  %v1634_v28 = vmul.f32 %v1633_v37, %v2906_v31  ;;  %v1661_v5 = vrot.slane %v1655_v18, 3  ;;  %v1675_v37 = vstv %s2422_s30  ;;  %s3282_s30 = sld [smem:[#allocation3 + $0x20]] }
  0xc6   : > { %v1676_v56 = vmul.f32 %v1675_v37, %v2906_v31 }
  0xc7   : > { %v3117_v8 = vpop.permute.xlu1 %387  ;;  %v3119_v11 = vpop.permute.xlu0 %385 }
  0xc9   : > { %654 = vrot.lane.b32.xlu1 %v651_v61, %s2616_s18  ;;  %652 = vrot.lane.b32.xlu0 %v649_v62, %s2616_s18  ;;  %v691_v61 = vsel %vm629_vm4, %v689_v0, %v690_v42  ;;  %v1640_v62 = vrot.slane %v1634_v28, 3  ;;  %v726_v42 = vmul.f32 %v724_v32, %v2771_v23  ;;  %v1678_v0 = vmul.f32 %v1675_v37, %v2959_v59 }
  0xcb   : > { %v3128_v20 = vpop.permute.xlu1 %408  ;;  %v3130_v21 = vpop.permute.xlu0 %406  ;;  %v1642_v19 = vsel %vm629_vm4, %v1640_v62, %v1641_v58  ;;  %v734_v58 = vrot.slane %v727_v46, 3 }
  0xcc   : > { %4042 = vst [vmem:[#allocation9_spill] sm:$0xff] %v3128_v20  ;;  %4043 = vst [vmem:[#allocation10_spill] sm:$0xff] %v3130_v21 }
  0xcd   : > { %1605 = vrot.lane.b32.xlu1 %v1602_v12, %s2616_s18  ;;  %1603 = vrot.lane.b32.xlu0 %v1600_v15, %s2616_s18  ;;  %v711_v12 = vrot.slane %v705_v55, 3  ;;  %v1657_v15 = vmul.f32 %v1654_v7, %v2959_v59  ;;  %v1663_v55 = vsel %vm629_vm4, %v1661_v5, %v1662_v36 }
  0xcf   : > { %v3139_v39 = vpop.permute.xlu1 %429  ;;  %v3141_v40 = vpop.permute.xlu0 %427  ;;  %v714_v35 = vsel %vm629_vm4, %v711_v12, %v713_v13  ;;  %v1664_v10 = vrot.slane %v1657_v15, 3  ;;  %v1696_v15 = vstv %s2423_s7  ;;  %s3296_s7 = sld [smem:[#allocation3 + $0x51]] }
  0xd0   : > { %4044 = vst [vmem:[#allocation11_spill] sm:$0xff] %v3139_v39  ;;  %4045 = vst [vmem:[#allocation12_spill] sm:$0xff] %v3141_v40  ;;  %v847_v40 = vstv %s3282_s30  ;;  %s3468_s30 = sld [smem:[#allocation3 + $0x56]] }
  0xd1   : > { %675 = vrot.lane.b32.xlu1 %v672_v24, %s2615_s13  ;;  %673 = vrot.lane.b32.xlu0 %v670_v25, %s2615_s13  ;;  %v710_v24 = vrot.slane %v704_v4, 3  ;;  %v1665_v28 = vsel %vm629_vm4, %v1662_v36, %v1664_v10  ;;  %v1698_v36 = vmul.f32 %v1696_v15, %v2917_v38  ;;  %v1699_v10 = vmul.f32 %v1696_v15, %v2959_v59 }
  0xd3   : > { %v3150_v51 = vpop.permute.xlu1 %450  ;;  %v3152_v2 = vpop.permute.xlu0 %448  ;;  %v712_v41 = vsel %vm629_vm4, %v710_v24, %v711_v12  ;;  %v1682_v24 = vrot.slane %v1676_v56, 3  ;;  %v1706_v56 = vrot.slane %v1699_v10, 3 }
  0xd4   : > { %4046 = vst [vmem:[#allocation13_spill] sm:$0xff] %v3150_v51  ;;  %4047 = vst [vmem:[#allocation14_spill] sm:$0xff] %v3152_v2 }
  0xd5   : > { %1626 = vrot.lane.b32.xlu1 %v1623_v49, %s2615_s13  ;;  %1624 = vrot.lane.b32.xlu0 %v1621_v50, %s2615_s13  ;;  %v1677_v50 = vmul.f32 %v1675_v37, %v2917_v38 }
  0xd7   : > { %v3161_v1 = vpop.permute.xlu1 %471  ;;  %v3163_v3 = vpop.permute.xlu0 %469  ;;  %v1683_v7 = vrot.slane %v1677_v50, 3 }
  0xd8   : > { %4048 = vst [vmem:[#allocation15_spill] sm:$0xff] %v3161_v1  ;;  %4049 = vst [vmem:[#allocation16_spill] sm:$0xff] %v3163_v3 }
  0xd9   : > { %696 = vrot.lane.b32.xlu1 %v693_v57, %s2617_s27  ;;  %694 = vrot.lane.b32.xlu0 %v691_v61, %s2617_s27  ;;  %v732_v57 = vrot.slane %v726_v42, 3  ;;  %v745_v61 = vstv %s2374_s5  ;;  %v1697_v42 = vmul.f32 %v1696_v15, %v2906_v31  ;;  %v1684_v27 = vsel %vm629_vm4, %v1682_v24, %v1683_v7  ;;  %s3287_s5 = sld [smem:[#allocation3 + $0x38]] }
  0xda   : > { %v747_v12 = vmul.f32 %v745_v61, %v2771_v23  ;;  %v748_v13 = vmul.f32 %v745_v61, %v2811_v45  ;;  %v746_v14 = vmul.f32 %v745_v61, %v2769_v22 }
  0xdb   : > { %v3172_v25 = vpop.permute.xlu1 %510  ;;  %v3174_v30 = vpop.permute.xlu0 %508  ;;  %v735_v18 = vsel %vm629_vm4, %v732_v57, %v734_v58 }
  0xdc   : > { %4050 = vst [vmem:[#allocation17_spill] sm:$0xff] %v3172_v25  ;;  %4051 = vst [vmem:[#allocation18_spill] sm:$0xff] %v3174_v30  ;;  %v753_v5 = vrot.slane %v747_v12, 3  ;;  %v755_v37 = vrot.slane %v748_v13, 3  ;;  %v1734_v13 = vstv %s2425_s9  ;;  %s3318_s9 = sld [smem:[#allocation3 + $0x21]] }
  0xdd   : > { %1647 = vrot.lane.b32.xlu1 %v1644_v9, %s2617_s27  ;;  %1645 = vrot.lane.b32.xlu0 %v1642_v19, %s2617_s27  ;;  %v733_v9 = vsel %vm629_vm4, %v731_v60, %v732_v57  ;;  %v1685_v19 = vrot.slane %v1678_v0, 3  ;;  %v1703_v60 = vrot.slane %v1697_v42, 3  ;;  %v1735_v24 = vmul.f32 %v1734_v13, %v2906_v31 }
  0xde   : > { %v756_v57 = vsel %vm629_vm4, %v753_v5, %v755_v37 }
  0xdf   : > { %v3183_v48 = vpop.permute.xlu1 %531  ;;  %v3185_v49 = vpop.permute.xlu0 %529  ;;  %v1686_v46 = vsel %vm629_vm4, %v1683_v7, %v1685_v19  ;;  %v1737_v19 = vmul.f32 %v1734_v13, %v2959_v59 }
  0xe0   : > { %4052 = vst [vmem:[#allocation19_spill] sm:$0xff] %v3183_v48  ;;  %4053 = vst [vmem:[#allocation20_spill] sm:$0xff] %v3185_v49  ;;  %v1776_v48 = vstv %s3255_s26  ;;  %s3410_s26 = sld [smem:[#allocation3 + $0x55]] }
  0xe1   : > { %717 = vrot.lane.b32.xlu1 %v714_v35, %s2618_s29  ;;  %715 = vrot.lane.b32.xlu0 %v712_v41, %s2618_s29  ;;  %v752_v41 = vrot.slane %v746_v14, 3 }
  0xe3   : > { %v3194_v62 = vpop.permute.xlu1 %1209  ;;  %v3196_v4 = vpop.permute.xlu0 %550  ;;  %v754_v58 = vsel %vm629_vm4, %v752_v41, %v753_v5 }
  0xe4   : > { %4054 = vst [vmem:[#allocation21_spill] sm:$0xff] %v3196_v4  ;;  %v826_v4 = vstv %s3242_s21  ;;  %s3390_s21 = sld [smem:[#allocation3 + $0x53]] }
  0xe5   : > { %1668 = vrot.lane.b32.xlu1 %v1665_v28, %s2618_s29  ;;  %1666 = vrot.lane.b32.xlu0 %v1663_v55, %s2618_s29  ;;  %v784_v28 = vstv %s2376_s8  ;;  %v1704_v55 = vrot.slane %v1698_v36, 3  ;;  %v805_v36 = vstv %s2377_s11  ;;  %v829_v49 = vmul.f32 %v826_v4, %v2811_v45  ;;  %s3309_s8 = sld [smem:[#allocation3 + $0x31]]  ;;  %s3332_s11 = sld [smem:[#allocation3 + $0x3f]] }
  0xe6   : > { %v786_v61 = vmul.f32 %v784_v28, %v2771_v23  ;;  %v787_v7 = vmul.f32 %v784_v28, %v2811_v45  ;;  %v785_v12 = vmul.f32 %v784_v28, %v2769_v22  ;;  %v808_v28 = vmul.f32 %v805_v36, %v2811_v45 }
  0xe7   : > { %v3205_v32 = vpop.permute.xlu1 %1223  ;;  %v3207_v35 = vpop.permute.xlu0 %1211  ;;  %v1705_v10 = vsel %vm629_vm4, %v1703_v60, %v1704_v55  ;;  %v827_v3 = vmul.f32 %v826_v4, %v2769_v22 }
  0xe8   : > { %v792_v5 = vrot.slane %v786_v61, 4  ;;  %v794_v37 = vrot.slane %v787_v7, 4  ;;  %v791_v41 = vrot.slane %v785_v12, 4 }
  0xe9   : > { %738 = vrot.lane.b32.xlu1 %v735_v18, %s2619_s4  ;;  %736 = vrot.lane.b32.xlu0 %v733_v9, %s2619_s4  ;;  %v1707_v18 = vsel %vm629_vm4, %v1704_v55, %v1706_v56  ;;  %v1736_v9 = vmul.f32 %v1734_v13, %v2917_v38  ;;  %v1744_v56 = vrot.slane %v1737_v19, 4  ;;  %v1755_v13 = vstv %s3231_s12  ;;  %s3355_s12 = sld [smem:[#allocation3 + $0x52]] }
  0xea   : > { %v795_v60 = vsel %vm773_vm5, %v792_v5, %v794_v37  ;;  %v793_v61 = vsel %vm773_vm5, %v791_v41, %v792_v5  ;;  %v815_v19 = vrot.slane %v808_v28, 4  ;;  %v1757_v5 = vmul.f32 %v1755_v13, %v2917_v38 }
  0xeb   : > { %v3216_v50 = vpop.permute.xlu1 %1237  ;;  %v3218_v0 = vpop.permute.xlu0 %1225  ;;  %v1742_v55 = vrot.slane %v1736_v9, 4  ;;  %v1758_v37 = vmul.f32 %v1755_v13, %v2959_v59  ;;  %v1756_v41 = vmul.f32 %v1755_v13, %v2906_v31  ;;  %v828_v13 = vmul.f32 %v826_v4, %v2771_v23 }
  0xed   : > { %1689 = vrot.lane.b32.xlu1 %v1686_v46, %s2619_s4  ;;  %1687 = vrot.lane.b32.xlu0 %v1684_v27, %s2619_s4  ;;  %v807_v27 = vmul.f32 %v805_v36, %v2771_v23  ;;  %v1765_v30 = vrot.slane %v1758_v37, 4  ;;  %v1762_v25 = vrot.slane %v1756_v41, 4  ;;  %v834_v4 = vrot.slane %v828_v13, 4 }
  0xee   : > { %v836_v37 = vrot.slane %v829_v49, 4  ;;  %v1779_v41 = vmul.f32 %v1776_v48, %v2959_v59 }
  0xef   : > { %v3227_v14 = vpop.permute.xlu1 %1251  ;;  %v3229_v15 = vpop.permute.xlu0 %1239  ;;  %v813_v9 = vrot.slane %v807_v27, 4 }
  0xf1   : > { %759 = vrot.lane.b32.xlu1 %v756_v57, %s2620_s6  ;;  %757 = vrot.lane.b32.xlu0 %v754_v58, %s2620_s6  ;;  %v1741_v57 = vrot.slane %v1735_v24, 4  ;;  %v806_v58 = vmul.f32 %v805_v36, %v2769_v22  ;;  %v1745_v24 = vsel %vm773_vm5, %v1742_v55, %v1744_v56 }
  0xf3   : > { %v3244_v42 = vpop.permute.xlu1 %1265  ;;  %v3246_v46 = vpop.permute.xlu0 %1253  ;;  %v1743_v36 = vsel %vm773_vm5, %v1741_v57, %v1742_v55  ;;  %v478_v57 = vstv %s3248_s25  ;;  %s3404_s25 = sld [smem:[#allocation3 + $0x24]] }
  0xf5   : > { %1710 = vrot.lane.b32.xlu1 %v1707_v18, %s2620_s6  ;;  %1708 = vrot.lane.b32.xlu0 %v1705_v10, %s2620_s6  ;;  %v334_v18 = vstv %s3233_s20  ;;  %v812_v10 = vrot.slane %v806_v58, 4  ;;  %v816_v58 = vsel %vm773_vm5, %v813_v9, %v815_v19  ;;  %v3300_v19 = vmul.f32 %v478_v57, %v2771_v23  ;;  %s3366_s20 = sld [smem:[#allocation3 + $0x22]] }
  0xf6   : > { %v3276_v27 = vmul.f32 %v334_v18, %v2771_v23  ;;  %v337_v55 = vmul.f32 %v334_v18, %v2811_v45  ;;  %v335_v56 = vmul.f32 %v334_v18, %v2769_v22  ;;  %v1763_v18 = vrot.slane %v1757_v5, 4 }
  0xf7   : > { %v3259_v7 = vpop.permute.xlu1 %1279  ;;  %v3261_v12 = vpop.permute.xlu0 %1267  ;;  %v1778_v5 = vmul.f32 %v1776_v48, %v2917_v38 }
  0xf8   : > { %v343_v1 = vrot.slane %v3276_v27, 1  ;;  %v345_v2 = vrot.slane %v337_v55, 1  ;;  %v342_v51 = vrot.slane %v335_v56, 1  ;;  %v1766_v27 = vsel %vm773_vm5, %v1763_v18, %v1765_v30 }
  0xf9   : > { %798 = vrot.lane.b32.xlu1 %v795_v60, %s2616_s18  ;;  %796 = vrot.lane.b32.xlu0 %v793_v61, %s2616_s18  ;;  %v814_v61 = vsel %vm773_vm5, %v812_v10, %v813_v9  ;;  %v244_v10 = vstv %s3264_s28  ;;  %v1764_v55 = vsel %vm773_vm5, %v1762_v25, %v1763_v18  ;;  %v1288_v25 = vstv %s3287_s5  ;;  %s3443_s28 = sld [smem:[#allocation3 + $0x25]]  ;;  %s3481_s5 = sld [smem:[#allocation3 + $0x26]] }
  0xfa   : > { %v246_v30 = vmul.f32 %v244_v10, %v2771_v23  ;;  %v837_v56 = vsel %vm773_vm5, %v834_v4, %v836_v37 }
  0xfb   : > { %v3278_v28 = vpop.permute.xlu1 %1317  ;;  %v3280_v60 = vpop.permute.xlu0 %1281 }
  0xfc   : > { %4055 = vst [vmem:[#allocation22_spill] sm:$0xff] %v3278_v28 }
  0xfd   : > { %1748 = vrot.lane.b32.xlu1 %v1745_v24, %s2616_s18  ;;  %1746 = vrot.lane.b32.xlu0 %v1743_v36, %s2616_s18  ;;  %v481_v24 = vmul.f32 %v478_v57, %v2811_v45 }
  0xff   : > { %v3303_v36 = vpop.permute.xlu1 %1338  ;;  %v3305_v9 = vpop.permute.xlu0 %1319  ;;  %v489_v28 = vrot.slane %v481_v24, 2 }
 0x100   : > { %4056 = vst [vmem:[#allocation23_spill] sm:$0xff] %v3303_v36  ;;  %4057 = vst [vmem:[#allocation24_spill] sm:$0xff] %v3305_v9  ;;  %v1777_v36 = vmul.f32 %v1776_v48, %v2906_v31  ;;  %v833_v9 = vrot.slane %v827_v3, 4  ;;  %v3328_v48 = vmul.f32 %v244_v10, %v2769_v22  ;;  %v1784_v3 = vrot.slane %v1778_v5, 4 }
 0x101   : > { %819 = vrot.lane.b32.xlu1 %v816_v58, %s2615_s13  ;;  %817 = vrot.lane.b32.xlu0 %v814_v61, %s2615_s13  ;;  %v487_v58 = vrot.slane %v3300_v19, 2  ;;  %v479_v61 = vmul.f32 %v478_v57, %v2769_v22  ;;  %v1786_v57 = vrot.slane %v1779_v41, 4  ;;  %v1797_v19 = vstv %s3296_s7  ;;  %s3501_s7 = sld [smem:[#allocation3 + $0x15]] }
 0x102   : > { %v1783_v18 = vrot.slane %v1777_v36, 4  ;;  %v835_v24 = vsel %vm773_vm5, %v833_v9, %v834_v4  ;;  %v850_v10 = vmul.f32 %v847_v40, %v2811_v45  ;;  %v848_v5 = vmul.f32 %v847_v40, %v2769_v22 }
 0x103   : > { %v3322_v49 = vpop.permute.xlu1 %1359  ;;  %v3324_v13 = vpop.permute.xlu0 %1340  ;;  %v486_v37 = vrot.slane %v479_v61, 2  ;;  %v1198_v4 = vstv %s3309_s8  ;;  %v1800_v41 = vmul.f32 %v1797_v19, %v2959_v59  ;;  %s3512_s8 = sld [smem:[#allocation3 + $0x57]] }
 0x104   : > { %4058 = vst [vmem:[#allocation25_spill] sm:$0xff] %v3322_v49  ;;  %4059 = vst [vmem:[#allocation26_spill] sm:$0xff] %v3324_v13  ;;  %v849_v49 = vmul.f32 %v847_v40, %v2771_v23  ;;  %v3343_v13 = vsel %vm341_vm2, %v343_v1, %v345_v2  ;;  %v1289_v40 = vmul.f32 %v1288_v25, %v2906_v31 }
 0x105   : > { %1769 = vrot.lane.b32.xlu1 %v1766_v27, %s2615_s13  ;;  %1767 = vrot.lane.b32.xlu0 %v1764_v55, %s2615_s13  ;;  %v3346_v27 = vsel %vm341_vm2, %v342_v51, %v343_v1  ;;  %v3349_v55 = vsel %vm485_vm3, %v487_v58, %v489_v28  ;;  %v1799_v2 = vmul.f32 %v1797_v19, %v2917_v38 }
 0x106   : > { %4060 = vst [vmem:[#allocation27_spill] sm:$0xff] %v3349_v55  ;;  %v1787_v51 = vsel %vm773_vm5, %v1784_v3, %v1786_v57  ;;  %v1785_v1 = vsel %vm773_vm5, %v1783_v18, %v1784_v3  ;;  %v1798_v28 = vmul.f32 %v1797_v19, %v2906_v31  ;;  %v855_v61 = vrot.slane %v849_v49, 4 }
 0x107   : > { %v3351_v36 = vpop.permute.xlu1 %1380  ;;  %v3353_v9 = vpop.permute.xlu0 %1361  ;;  %v857_v55 = vrot.slane %v850_v10, 4  ;;  %v3370_v39 = vsel %vm485_vm3, %v486_v37, %v487_v58  ;;  %v1291_v57 = vmul.f32 %v1288_v25, %v2959_v59  ;;  %v262_v18 = vadd.f32 %v3053_v54, %v246_v30 }
 0x108   : > { %4061 = vst [vmem:[#allocation28_spill] sm:$0xff] %v3351_v36  ;;  %4062 = vst [vmem:[#allocation29_spill] sm:$0xff] %v3353_v9  ;;  %v854_v36 = vrot.slane %v848_v5, 4  ;;  %v868_v9 = vstv %s3318_s9  ;;  %v1431_v49 = vstv %s3332_s11  ;;  %v1805_v19 = vrot.slane %v1799_v2, 4  ;;  %s3531_s9 = sld [smem:[#allocation3 + $0x46]]  ;;  %s3548_s11 = sld [smem:[#allocation3 + $0x27]] }
 0x109   : > { %840 = vrot.lane.b32.xlu1 %v837_v56, %s2617_s27  ;;  %838 = vrot.lane.b32.xlu0 %v835_v24, %s2617_s27  ;;  %4063 = vst [vmem:[#allocation30_spill] sm:$0xff] %v3370_v39  ;;  %v3373_v56 = vmul.f32 %v1198_v4, %v2906_v31  ;;  %v1290_v24 = vmul.f32 %v1288_v25, %v2917_v38  ;;  %v1807_v10 = vrot.slane %v1800_v41, 4  ;;  %v1804_v58 = vrot.slane %v1798_v28, 4 }
 0x10a   : > { %v3384_v5 = vmul.f32 %v1198_v4, %v2917_v38  ;;  %v870_v25 = vmul.f32 %v868_v9, %v2771_v23  ;;  %v871_v37 = vmul.f32 %v868_v9, %v2811_v45  ;;  %v1295_v39 = vrot.slane %v1289_v40, 1 }
 0x10b   : > { %v3377_v21 = vpop.permute.xlu1 %1401  ;;  %v3379_v3 = vpop.permute.xlu0 %1382  ;;  %v858_v54 = vsel %vm773_vm5, %v855_v61, %v857_v55  ;;  %v856_v30 = vsel %vm773_vm5, %v854_v36, %v855_v61  ;;  %v869_v4 = vmul.f32 %v868_v9, %v2769_v22  ;;  %v1296_v2 = vrot.slane %v1290_v24, 1 }
 0x10c   : > { %4064 = vst [vmem:[#allocation31_spill] sm:$0xff] %v3377_v21  ;;  %4065 = vst [vmem:[#allocation32_spill] sm:$0xff] %v3379_v3  ;;  %v1432_v41 = vmul.f32 %v1431_v49, %v2906_v31  ;;  %v1818_v21 = vstv %s3355_s12  ;;  %v261_v55 = vadd.f32 %v3042_v26, %v3328_v48  ;;  %v276_v36 = vadd.f32 %v3051_v53, %v262_v18  ;;  %s3578_s12 = sld [smem:[#allocation3 + $0x58]] }
 0x10d   : > { %1790 = vrot.lane.b32.xlu1 %v1787_v51, %s2617_s27  ;;  %1788 = vrot.lane.b32.xlu0 %v1785_v1, %s2617_s27  ;;  %v3397_v51 = vmul.f32 %v1431_v49, %v2917_v38  ;;  %v1298_v9 = vrot.slane %v1291_v57, 1  ;;  %v1808_v40 = vsel %vm773_vm5, %v1805_v19, %v1807_v10  ;;  %v1806_v61 = vsel %vm773_vm5, %v1804_v58, %v1805_v19 }
 0x10e   : > { %v876_v24 = vrot.slane %v870_v25, 4  ;;  %v875_v3 = vrot.slane %v869_v4, 4  ;;  %v1820_v20 = vmul.f32 %v1818_v21, %v2917_v38  ;;  %v1821_v26 = vmul.f32 %v1818_v21, %v2959_v59 }
 0x10f   : > { %v3399_v1 = vpop.permute.xlu1 %1422  ;;  %v3401_v28 = vpop.permute.xlu0 %1403  ;;  %v1819_v53 = vmul.f32 %v1818_v21, %v2906_v31  ;;  %v3420_v48 = vsel %vm341_vm2, %v1295_v39, %v1296_v2  ;;  %v1438_v57 = vrot.slane %v1432_v41, 2  ;;  %v4038_v18 = vrot.slane %v3397_v51, 2 }
 0x110   : > { %4066 = vst [vmem:[#allocation33_spill] sm:$0xff] %v3399_v1  ;;  %4067 = vst [vmem:[#allocation34_spill] sm:$0xff] %v3401_v28  ;;  %v878_v1 = vrot.slane %v871_v37, 4  ;;  %v889_v28 = vstv %s3366_s20  ;;  %v3426_v19 = vmul.f32 %v1431_v49, %v2959_v59  ;;  %v275_v25 = vadd.f32 %v3040_v47, %v261_v55  ;;  %s3595_s20 = sld [smem:[#allocation3 + $0x28]] }
 0x111   : > { %861 = vrot.lane.b32.xlu1 %v858_v54, %s2618_s29  ;;  %859 = vrot.lane.b32.xlu0 %v856_v30, %s2618_s29  ;;  %v290_v37 = vadd.f32 %v3062_v63, %v276_v36  ;;  %v3433_v21 = vsel %vm341_vm2, %v1296_v2, %v1298_v9  ;;  %v891_v39 = vmul.f32 %v889_v28, %v2771_v23  ;;  %v1839_v47 = vstv %s3390_s21  ;;  %s3605_s21 = sld [smem:[#allocation3 + $0x59]] }
 0x112   : > { %v879_v54 = vsel %vm773_vm5, %v876_v24, %v878_v1  ;;  %v892_v49 = vmul.f32 %v889_v28, %v2811_v45  ;;  %v890_v30 = vmul.f32 %v889_v28, %v2769_v22  ;;  %v877_v63 = vsel %vm773_vm5, %v875_v3, %v876_v24 }
 0x113   : > { %v3423_v10 = vpop.permute.xlu1 %1460  ;;  %v3428_v58 = vpop.permute.xlu0 %1424  ;;  %v1826_v4 = vrot.slane %v1820_v20, 4  ;;  %v1828_v2 = vrot.slane %v1821_v26, 4  ;;  %v1825_v41 = vrot.slane %v1819_v53, 4  ;;  %v289_v55 = vadd.f32 %v3064_v6, %v275_v25 }
 0x114   : > { %v3449_v36 = vsel %vm485_vm3, %v1438_v57, %v4038_v18  ;;  %v1441_v1 = vrot.slane %v3426_v19, 2  ;;  %v304_v20 = vadd.f32 %v3073_v16, %v290_v37  ;;  %v897_v3 = vrot.slane %v891_v39, 4 }
 0x115   : > { %1811 = vrot.lane.b32.xlu1 %v1808_v40, %s2618_s29  ;;  %1809 = vrot.lane.b32.xlu0 %v1806_v61, %s2618_s29  ;;  %v928_v40 = vstv %s3404_s25  ;;  %v1841_v61 = vmul.f32 %v1839_v47, %v2917_v38  ;;  %v1877_v24 = vstv %s3410_s26  ;;  %v899_v6 = vrot.slane %v892_v49, 4  ;;  %s3629_s25 = sld [smem:[#allocation3 + $0x29]]  ;;  %s3642_s26 = sld [smem:[#allocation3 + $0x5a]] }
 0x116   : > { %v896_v26 = vrot.slane %v890_v30, 4  ;;  %v1842_v53 = vmul.f32 %v1839_v47, %v2959_v59  ;;  %v1840_v57 = vmul.f32 %v1839_v47, %v2906_v31  ;;  %v303_v19 = vadd.f32 %v3075_v17, %v289_v55 }
 0x117   : > { %v3452_v9 = vpop.permute.xlu1 %1481  ;;  %v3454_v28 = vpop.permute.xlu0 %1462  ;;  %v1829_v25 = vsel %vm773_vm5, %v1826_v4, %v1828_v2  ;;  %v1827_v16 = vsel %vm773_vm5, %v1825_v41, %v1826_v4  ;;  %v930_v37 = vmul.f32 %v928_v40, %v2771_v23  ;;  %v931_v49 = vmul.f32 %v928_v40, %v2811_v45 }
 0x118   : > { %4068 = vst [vmem:[#allocation35_spill] sm:$0xff] %v3452_v9  ;;  %v929_v30 = vmul.f32 %v928_v40, %v2769_v22  ;;  %v1879_v47 = vmul.f32 %v1877_v24, %v2917_v38  ;;  %v1880_v17 = vmul.f32 %v1877_v24, %v2959_v59  ;;  %v317_v4 = vadd.f32 %v3086_v34, %v303_v19 }
 0x119   : > { %882 = vrot.lane.b32.xlu1 %v879_v54, %s2619_s4  ;;  %880 = vrot.lane.b32.xlu0 %v877_v63, %s2619_s4  ;;  %v318_v63 = vadd.f32 %v3084_v33, %v304_v20  ;;  %v1847_v2 = vrot.slane %v1841_v61, 4  ;;  %v1878_v41 = vmul.f32 %v1877_v24, %v2906_v31  ;;  %v900_v55 = vsel %vm773_vm5, %v897_v3, %v899_v6 }
 0x11a   : > { %v898_v40 = vsel %vm773_vm5, %v896_v26, %v897_v3  ;;  %v1849_v18 = vrot.slane %v1842_v53, 4  ;;  %v331_v33 = vadd.f32 %v3097_v44, %v317_v4  ;;  %v936_v34 = vrot.slane %v930_v37, 5 }
 0x11b   : > { %v3470_v39 = vpop.permute.xlu1 %552  ;;  %v3472_v54 = vpop.permute.xlu0 %1483  ;;  %v332_v9 = vadd.f32 %v3095_v43, %v318_v63  ;;  %v949_v20 = vstv %s3443_s28  ;;  %v938_v19 = vrot.slane %v931_v49, 5  ;;  %v1215_v3 = vadd.f32 %v3194_v62, %v3373_v56  ;;  %s3674_s28 = sld [smem:[#allocation3 + $0x2b]] }
 0x11c   : > { %4069 = vst [vmem:[#allocation36_spill] sm:$0xff] %v3470_v39  ;;  %4070 = vst [vmem:[#allocation37_spill] sm:$0xff] %v3472_v54  ;;  %v1846_v54 = vrot.slane %v1840_v57, 4  ;;  %v1887_v39 = vrot.slane %v1880_v17, 5  ;;  %v4071_v6 = vrot.slane %v3397_v51, 2  ;;  %v1884_v44 = vrot.slane %v1878_v41, 5 }
 0x11d   : > { %1832 = vrot.lane.b32.xlu1 %v1829_v25, %s2619_s4  ;;  %1830 = vrot.lane.b32.xlu0 %v1827_v16, %s2619_s4  ;;  %v935_v25 = vrot.slane %v929_v30, 5  ;;  %v1885_v16 = vrot.slane %v1879_v47, 5  ;;  %v1850_v26 = vsel %vm773_vm5, %v1847_v2, %v1849_v18  ;;  %v951_v53 = vmul.f32 %v949_v20, %v2771_v23 }
 0x11e   : > { %v3499_v43 = vsel %vm485_vm3, %v4071_v6, %v1441_v1  ;;  %v952_v62 = vmul.f32 %v949_v20, %v2811_v45  ;;  %v350_v56 = vadd.f32 %v3343_v13, %v332_v9  ;;  %v349_v51 = vadd.f32 %v3346_v27, %v331_v33 }
 0x11f   : > { %v3490_v61 = vpop.permute.xlu1 %1504  ;;  %v3492_v24 = vpop.permute.xlu0 %1502  ;;  %v1848_v1 = vsel %vm773_vm5, %v1846_v54, %v1847_v2  ;;  %v1898_v57 = vstv %s3468_s30  ;;  %v939_v18 = vsel %vm917_vm6, %v936_v34, %v938_v19  ;;  %v937_v30 = vsel %vm917_vm6, %v935_v25, %v936_v34  ;;  %s3693_s30 = sld [smem:[#allocation3 + $0x5c]] }
 0x120   : > { %v1888_v47 = vsel %vm917_vm6, %v1885_v16, %v1887_v39  ;;  %v950_v17 = vmul.f32 %v949_v20, %v2769_v22  ;;  %v1229_v13 = vadd.f32 %v3205_v32, %v1215_v3  ;;  %v1216_v27 = vadd.f32 %v3207_v35, %v3384_v5 }
 0x121   : > { %903 = vrot.lane.b32.xlu1 %v900_v55, %s2620_s6  ;;  %901 = vrot.lane.b32.xlu0 %v898_v40, %s2620_s6  ;;  %v1886_v9 = vsel %vm917_vm6, %v1884_v44, %v1885_v16  ;;  %v970_v54 = vstv %s3481_s5  ;;  %v957_v63 = vrot.slane %v951_v53, 5  ;;  %v959_v4 = vrot.slane %v952_v62, 5  ;;  %s3710_s5 = sld [smem:[#allocation3 + $0x2c]] }
 0x122   : > { %v1900_v2 = vmul.f32 %v1898_v57, %v2917_v38  ;;  %v1901_v39 = vmul.f32 %v1898_v57, %v2959_v59  ;;  %v371_v32 = vadd.f32 %v3106_v52, %v350_v56  ;;  %v370_v35 = vadd.f32 %v3108_v29, %v349_v51 }
 0x123   : > { %v3514_v37 = vpop.permute.xlu1 %573  ;;  %v3516_v49 = vpop.permute.xlu0 %571  ;;  %v1230_v5 = vadd.f32 %v3218_v0, %v1216_v27  ;;  %v1899_v41 = vmul.f32 %v1898_v57, %v2906_v31  ;;  %v956_v33 = vrot.slane %v950_v17, 5  ;;  %v3542_v34 = vmul.f32 %v970_v54, %v2771_v23 }
 0x124   : > { %v973_v20 = vmul.f32 %v970_v54, %v2811_v45  ;;  %v3546_v19 = vmul.f32 %v970_v54, %v2769_v22  ;;  %v392_v52 = vadd.f32 %v3117_v8, %v371_v32  ;;  %v1243_v29 = vadd.f32 %v3216_v50, %v1229_v13 }
 0x125   : > { %1853 = vrot.lane.b32.xlu1 %v1850_v26, %s2620_s6  ;;  %1851 = vrot.lane.b32.xlu0 %v1848_v1, %s2620_s6  ;;  %v1244_v0 = vadd.f32 %v3229_v15, %v1230_v5  ;;  %v622_v25 = vstv %s3501_s7  ;;  %v391_v16 = vadd.f32 %v3119_v11, %v370_v35  ;;  %v960_v3 = vsel %vm917_vm6, %v957_v63, %v959_v4  ;;  %v4072_v35 = vld [vmem:[#allocation9_spill] sm:$0xff]  ;;  %s3730_s7 = sld [smem:[#allocation3 + $0x5d]] }
 0x126   : > { %v1906_v6 = vrot.slane %v1900_v2, 5  ;;  %v1908_v44 = vrot.slane %v1901_v39, 5  ;;  %v1257_v26 = vadd.f32 %v3227_v14, %v1243_v29  ;;  %v1905_v8 = vrot.slane %v1899_v41, 5  ;;  %v4073_v41 = vld [vmem:[#allocation10_spill] sm:$0xff] }
 0x127   : > { %v3537_v55 = vpop.permute.xlu1 %1525  ;;  %v3539_v40 = vpop.permute.xlu0 %1523  ;;  %v1258_v53 = vadd.f32 %v3246_v46, %v1244_v0  ;;  %v1919_v62 = vstv %s3512_s8  ;;  %v958_v11 = vsel %vm917_vm6, %v956_v33, %v957_v63  ;;  %v978_v56 = vrot.slane %v3542_v34, 5  ;;  %s3757_s8 = sld [smem:[#allocation3 + $0x2d]] }
 0x128   : > { %v624_v51 = vmul.f32 %v622_v25, %v2771_v23  ;;  %v625_v1 = vmul.f32 %v622_v25, %v2811_v45  ;;  %v1271_v57 = vadd.f32 %v3244_v42, %v1257_v26  ;;  %v980_v46 = vrot.slane %v973_v20, 5 }
 0x129   : > { %942 = vrot.lane.b32.xlu1 %v939_v18, %s2616_s18  ;;  %940 = vrot.lane.b32.xlu0 %v937_v30, %s2616_s18  ;;  %v1272_v14 = vadd.f32 %v3261_v12, %v1258_v53  ;;  %v623_v18 = vmul.f32 %v622_v25, %v2769_v22  ;;  %v977_v30 = vrot.slane %v3546_v19, 5  ;;  %v1921_v17 = vmul.f32 %v1919_v62, %v2917_v38 }
 0x12a   : > { %v1922_v13 = vmul.f32 %v1919_v62, %v2959_v59  ;;  %v1574_v27 = vstv %s3531_s9  ;;  %v1285_v42 = vadd.f32 %v3259_v7, %v1271_v57  ;;  %v1909_v54 = vsel %vm917_vm6, %v1906_v6, %v1908_v44  ;;  %s3762_s9 = sld [smem:[#allocation3 + $0x1c]] }
 0x12b   : > { %v3561_v50 = vpop.permute.xlu1 %594  ;;  %v3563_v15 = vpop.permute.xlu0 %592  ;;  %v1286_v12 = vadd.f32 %v3280_v60, %v1272_v14  ;;  %v631_v4 = vrot.slane %v624_v51, 3  ;;  %v633_v2 = vrot.slane %v625_v1, 3  ;;  %v1920_v39 = vmul.f32 %v1919_v62, %v2906_v31  ;;  %v4075_v62 = vld [vmem:[#allocation12_spill] sm:$0xff] }
 0x12c   : > { %v991_v32 = vstv %s3548_s11  ;;  %v413_v5 = vadd.f32 %v4072_v35, %v392_v52  ;;  %v412_v33 = vadd.f32 %v4073_v41, %v391_v16  ;;  %v630_v7 = vrot.slane %v623_v18, 3  ;;  %v4076_v18 = vld [vmem:[#allocation22_spill] sm:$0xff]  ;;  %s3788_s11 = sld [smem:[#allocation3 + $0x5e]] }
 0x12d   : > { %1891 = vrot.lane.b32.xlu1 %v1888_v47, %s2616_s18  ;;  %1889 = vrot.lane.b32.xlu0 %v1886_v9, %s2616_s18  ;;  %v1907_v47 = vsel %vm917_vm6, %v1905_v8, %v1906_v6  ;;  %v3593_v60 = vmul.f32 %v1574_v27, %v2917_v38  ;;  %v981_v34 = vsel %vm917_vm6, %v978_v56, %v980_v46  ;;  %v1927_v20 = vrot.slane %v1921_v17, 5  ;;  %v4077_v17 = vld [vmem:[#allocation24_spill] sm:$0xff] }
 0x12e   : > { %v1929_v19 = vrot.slane %v1922_v13, 5  ;;  %v1577_v29 = vmul.f32 %v1574_v27, %v2959_v59  ;;  %v1302_v52 = vadd.f32 %v3420_v48, %v1285_v42  ;;  %v1303_v0 = vadd.f32 %v3433_v21, %v1286_v12  ;;  %v4074_v21 = vld [vmem:[#allocation11_spill] sm:$0xff] }
 0x12f   : > { %v3584_v63 = vpop.permute.xlu1 %1546  ;;  %v3586_v9 = vpop.permute.xlu0 %1544  ;;  %v993_v25 = vmul.f32 %v991_v32, %v2771_v23  ;;  %v994_v16 = vmul.f32 %v991_v32, %v2811_v45  ;;  %v979_v44 = vsel %vm917_vm6, %v977_v30, %v978_v56  ;;  %v3613_v26 = vsel %vm629_vm4, %v631_v4, %v633_v2 }
 0x130   : > { %v1926_v53 = vrot.slane %v1920_v39, 5  ;;  %v992_v48 = vmul.f32 %v991_v32, %v2769_v22  ;;  %v434_v8 = vadd.f32 %v4074_v21, %v413_v5  ;;  %v3619_v51 = vsel %vm629_vm4, %v630_v7, %v631_v4  ;;  %v4078_v4 = vld [vmem:[#allocation13_spill] sm:$0xff]  ;;  %v4080_v5 = vld [vmem:[#allocation23_spill] sm:$0xff] }
 0x131   : > { %963 = vrot.lane.b32.xlu1 %v960_v3, %s2615_s13  ;;  %961 = vrot.lane.b32.xlu0 %v958_v11, %s2615_s13  ;;  %v433_v11 = vadd.f32 %v4075_v62, %v412_v33  ;;  %v1582_v1 = vrot.slane %v3593_v60, 3  ;;  %v1930_v56 = vsel %vm917_vm6, %v1927_v20, %v1929_v19  ;;  %v1584_v57 = vrot.slane %v1577_v29, 3  ;;  %v4081_v33 = vld [vmem:[#allocation26_spill] sm:$0xff]  ;;  %v4084_v62 = vld [vmem:[#allocation15_spill] sm:$0xff] }
 0x132   : > { %v1575_v14 = vmul.f32 %v1574_v27, %v2906_v31  ;;  %v1940_v46 = vstv %s3578_s12  ;;  %v1323_v30 = vadd.f32 %v4076_v18, %v1302_v52  ;;  %v1324_v13 = vadd.f32 %v4077_v17, %v1303_v0  ;;  %s3807_s12 = sld [smem:[#allocation3 + $0x4d]] }
 0x133   : > { %v3607_v3 = vpop.permute.xlu1 %615  ;;  %v3609_v6 = vpop.permute.xlu0 %613  ;;  %v999_v42 = vrot.slane %v993_v25, 5  ;;  %v1001_v12 = vrot.slane %v994_v16, 5  ;;  %v455_v2 = vadd.f32 %v4078_v4, %v434_v8  ;;  %v1928_v27 = vsel %vm917_vm6, %v1926_v53, %v1927_v20  ;;  %v4082_v25 = vld [vmem:[#allocation25_spill] sm:$0xff] }
 0x134   : > { %v998_v35 = vrot.slane %v992_v48, 5  ;;  %v1344_v41 = vadd.f32 %v4080_v5, %v1323_v30  ;;  %v1345_v7 = vadd.f32 %v4081_v33, %v1324_v13  ;;  %v1942_v60 = vmul.f32 %v1940_v46, %v2917_v38  ;;  %v4083_v53 = vld [vmem:[#allocation29_spill] sm:$0xff]  ;;  %v4086_v30 = vld [vmem:[#allocation28_spill] sm:$0xff]  ;;  %v4089_v33 = vld [vmem:[#allocation34_spill] sm:$0xff] }
 0x135   : > { %1912 = vrot.lane.b32.xlu1 %v1909_v54, %s2615_s13  ;;  %1910 = vrot.lane.b32.xlu0 %v1907_v47, %s2615_s13  ;;  %v4079_v54 = vld [vmem:[#allocation14_spill] sm:$0xff]  ;;  %v1012_v19 = vstv %s3595_s20  ;;  %v3647_v29 = vsel %vm629_vm4, %v1582_v1, %v1584_v57  ;;  %v1581_v52 = vrot.slane %v1575_v14, 3  ;;  %v1943_v20 = vmul.f32 %v1940_v46, %v2959_v59  ;;  %v4087_v13 = vld [vmem:[#allocation32_spill] sm:$0xff]  ;;  %s3809_s20 = sld [smem:[#allocation3 + $0x2e]] }
 0x136   : > { %v454_v39 = vadd.f32 %v4079_v54, %v433_v11  ;;  %v1941_v0 = vmul.f32 %v1940_v46, %v2906_v31  ;;  %v1365_v16 = vadd.f32 %v4082_v25, %v1344_v41  ;;  %v1366_v48 = vadd.f32 %v4083_v53, %v1345_v7  ;;  %v4091_v53 = vld [vmem:[#allocation30_spill] sm:$0xff] }
 0x137   : > { %v3633_v47 = vpop.permute.xlu1 %1567  ;;  %v3635_v32 = vpop.permute.xlu0 %1565  ;;  %v1002_v21 = vsel %vm917_vm6, %v999_v42, %v1001_v12  ;;  %v1961_v8 = vstv %s3605_s21  ;;  %v476_v11 = vadd.f32 %v4084_v62, %v455_v2  ;;  %v1000_v14 = vsel %vm917_vm6, %v998_v35, %v999_v42  ;;  %v4088_v35 = vld [vmem:[#allocation31_spill] sm:$0xff]  ;;  %v4092_v62 = vld [vmem:[#allocation33_spill] sm:$0xff]  ;;  %s3835_s21 = sld [smem:[#allocation3 + $0x5f]] }
 0x138   : > { %v1014_v46 = vmul.f32 %v1012_v19, %v2771_v23  ;;  %v1386_v17 = vadd.f32 %v4086_v30, %v1365_v16  ;;  %v1387_v4 = vadd.f32 %v4087_v13, %v1366_v48  ;;  %v1948_v54 = vrot.slane %v1942_v60, 5  ;;  %v4090_v16 = vld [vmem:[#allocation27_spill] sm:$0xff] }
 0x139   : > { %984 = vrot.lane.b32.xlu1 %v981_v34, %s2617_s27  ;;  %982 = vrot.lane.b32.xlu0 %v979_v44, %s2617_s27  ;;  %v4085_v34 = vld [vmem:[#allocation16_spill] sm:$0xff]  ;;  %v1015_v12 = vmul.f32 %v1012_v19, %v2811_v45  ;;  %v1950_v2 = vrot.slane %v1943_v20, 5  ;;  %v1013_v5 = vmul.f32 %v1012_v19, %v2769_v22  ;;  %v1963_v42 = vmul.f32 %v1961_v8, %v2917_v38 }
 0x13a   : > { %v475_v18 = vadd.f32 %v4085_v34, %v454_v39  ;;  %v1947_v39 = vrot.slane %v1941_v0, 5  ;;  %v1407_v41 = vadd.f32 %v4088_v35, %v1386_v17  ;;  %v1408_v7 = vadd.f32 %v4089_v33, %v1387_v4 }
 0x13b   : > { %v3657_v44 = vpop.permute.xlu1 %654  ;;  %v3659_v57 = vpop.permute.xlu0 %652  ;;  %v1964_v25 = vmul.f32 %v1961_v8, %v2959_v59  ;;  %v1033_v60 = vstv %s3629_s25  ;;  %v3681_v19 = vsel %vm629_vm4, %v1581_v52, %v1582_v1  ;;  %v1020_v48 = vrot.slane %v1014_v46, 5  ;;  %s3861_s25 = sld [smem:[#allocation3 + $0x60]] }
 0x13c   : > { %v1428_v34 = vadd.f32 %v4092_v62, %v1407_v41  ;;  %v1429_v30 = vadd.f32 %v3428_v58, %v1408_v7  ;;  %v1962_v17 = vmul.f32 %v1961_v8, %v2906_v31  ;;  %v1982_v13 = vstv %s3642_s26  ;;  %v4093_v8 = vld [vmem:[#allocation17_spill] sm:$0xff]  ;;  %v4094_v7 = vld [vmem:[#allocation18_spill] sm:$0xff]  ;;  %s2444_s26 = sld [smem:[#allocation3 + $0x61]] }
 0x13d   : > { %1933 = vrot.lane.b32.xlu1 %v1930_v56, %s2617_s27  ;;  %1931 = vrot.lane.b32.xlu0 %v1928_v27, %s2617_s27  ;;  %v494_v56 = vadd.f32 %v4090_v16, %v476_v11  ;;  %v493_v27 = vadd.f32 %v4091_v53, %v475_v18  ;;  %v1022_v11 = vrot.slane %v1015_v12, 5  ;;  %v1019_v18 = vrot.slane %v1013_v5, 5  ;;  %v4095_v53 = vld [vmem:[#allocation19_spill] sm:$0xff] }
 0x13e   : > { %v1035_v4 = vmul.f32 %v1033_v60, %v2771_v23  ;;  %v1036_v1 = vmul.f32 %v1033_v60, %v2811_v45  ;;  %v1951_v52 = vsel %vm917_vm6, %v1948_v54, %v1950_v2  ;;  %v1949_v46 = vsel %vm917_vm6, %v1947_v39, %v1948_v54 }
 0x13f   : > { %v3678_v20 = vpop.permute.xlu1 %1605  ;;  %v3683_v0 = vpop.permute.xlu0 %1603  ;;  %v1969_v58 = vrot.slane %v1963_v42, 5  ;;  %v1971_v35 = vrot.slane %v1964_v25, 5  ;;  %v515_v41 = vadd.f32 %v4093_v8, %v494_v56  ;;  %v3704_v12 = vmul.f32 %v1982_v13, %v2917_v38 }
 0x140   : > { %v1985_v5 = vmul.f32 %v1982_v13, %v2959_v59  ;;  %v514_v2 = vadd.f32 %v4094_v7, %v493_v27  ;;  %v1445_v54 = vadd.f32 %v3449_v36, %v1428_v34  ;;  %v1446_v39 = vadd.f32 %v3499_v43, %v1429_v30  ;;  %v4096_v27 = vld [vmem:[#allocation20_spill] sm:$0xff] }
 0x141   : > { %1005 = vrot.lane.b32.xlu1 %v1002_v21, %s2618_s29  ;;  %1003 = vrot.lane.b32.xlu0 %v1000_v14, %s2618_s29  ;;  %v1034_v14 = vmul.f32 %v1033_v60, %v2769_v22  ;;  %v1968_v42 = vrot.slane %v1962_v17, 5  ;;  %v1023_v25 = vsel %vm917_vm6, %v1020_v48, %v1022_v11  ;;  %v1021_v60 = vsel %vm917_vm6, %v1019_v18, %v1020_v48 }
 0x142   : > { %v1041_v16 = vrot.slane %v1035_v4, 5  ;;  %v1043_v56 = vrot.slane %v1036_v1, 5  ;;  %v536_v62 = vadd.f32 %v4095_v53, %v515_v41  ;;  %v535_v8 = vadd.f32 %v4096_v27, %v514_v2  ;;  %v4097_v1 = vld [vmem:[#allocation36_spill] sm:$0xff]  ;;  %v4100_v27 = vld [vmem:[#allocation21_spill] sm:$0xff] }
 0x143   : > { %v3698_v33 = vpop.permute.xlu1 %675  ;;  %v3700_v21 = vpop.permute.xlu0 %673  ;;  %v1972_v36 = vsel %vm917_vm6, %v1969_v58, %v1971_v35  ;;  %v1072_v43 = vstv %s3674_s28  ;;  %v1040_v17 = vrot.slane %v1034_v14, 5  ;;  %v1992_v11 = vrot.slane %v1985_v5, 5  ;;  %s2438_s28 = sld [smem:[#allocation3 + $0x5b]] }
 0x144   : > { %v1983_v48 = vmul.f32 %v1982_v13, %v2906_v31  ;;  %v1466_v18 = vadd.f32 %v3423_v10, %v1445_v54  ;;  %v1467_v4 = vadd.f32 %v3454_v28, %v1446_v39  ;;  %v1970_v35 = vsel %vm917_vm6, %v1968_v42, %v1969_v58  ;;  %v4098_v10 = vld [vmem:[#allocation35_spill] sm:$0xff]  ;;  %v4099_v28 = vld [vmem:[#allocation37_spill] sm:$0xff] }
 0x145   : > { %1954 = vrot.lane.b32.xlu1 %v1951_v52, %s2618_s29  ;;  %1952 = vrot.lane.b32.xlu0 %v1949_v46, %s2618_s29  ;;  %v1990_v52 = vrot.slane %v3704_v12, 5  ;;  %v557_v46 = vadd.f32 %v4097_v1, %v536_v62  ;;  %v1044_v41 = vsel %vm917_vm6, %v1041_v16, %v1043_v56  ;;  %v1074_v13 = vmul.f32 %v1072_v43, %v2771_v23 }
 0x146   : > { %v2020_v14 = vstv %s3693_s30  ;;  %v1487_v12 = vadd.f32 %v4098_v10, %v1466_v18  ;;  %v1488_v5 = vadd.f32 %v4099_v28, %v1467_v4  ;;  %v1075_v58 = vmul.f32 %v1072_v43, %v2811_v45  ;;  %s2147_s30 = sld [smem:[#allocation2]] }
 0x147   : > { %v3720_v34 = vpop.permute.xlu1 %1626  ;;  %v3722_v30 = vpop.permute.xlu0 %1624  ;;  %v578_v7 = vadd.f32 %v3514_v37, %v557_v46  ;;  %v1042_v39 = vsel %vm917_vm6, %v1040_v17, %v1041_v16  ;;  %v1993_v42 = vsel %vm917_vm6, %v1990_v52, %v1992_v11  ;;  %v1093_v37 = vstv %s3710_s5  ;;  %s2621_s5 = smov 3  }
 0x148   : > { %v1509_v56 = vadd.f32 %v3490_v61, %v1488_v5  ;;  %v1508_v53 = vadd.f32 %v3492_v24, %v1487_v12  ;;  %v556_v18 = vadd.f32 %v4100_v27, %v535_v8  ;;  %v1080_v4 = vrot.slane %v1074_v13, 6 }
 0x149   : > { %1026 = vrot.lane.b32.xlu1 %v1023_v25, %s2619_s4  ;;  %1024 = vrot.lane.b32.xlu0 %v1021_v60, %s2619_s4  ;;  %v1989_v25 = vrot.slane %v1983_v48, 5  ;;  %v1073_v60 = vmul.f32 %v1072_v43, %v2769_v22  ;;  %v599_v62 = vadd.f32 %v3561_v50, %v578_v7  ;;  %v2022_v16 = vmul.f32 %v2020_v14, %v2917_v38 }
 0x14a   : > { %v2023_v17 = vmul.f32 %v2020_v14, %v2959_v59  ;;  %v1530_v61 = vadd.f32 %v3537_v55, %v1509_v56  ;;  %v1529_v24 = vadd.f32 %v3539_v40, %v1508_v53  ;;  %v1082_v43 = vrot.slane %v1075_v58, 6 }
 0x14b   : > { %v3741_v2 = vpop.permute.xlu1 %696  ;;  %v3743_v54 = vpop.permute.xlu0 %694  ;;  %v620_v50 = vadd.f32 %v3607_v3, %v599_v62  ;;  %v1079_v11 = vrot.slane %v1073_v60, 6  ;;  %v2021_v48 = vmul.f32 %v2020_v14, %v2906_v31  ;;  %v1095_v1 = vmul.f32 %v1093_v37, %v2771_v23 }
 0x14c   : > { %v1096_v46 = vmul.f32 %v1093_v37, %v2811_v45  ;;  %v577_v55 = vadd.f32 %v3516_v49, %v556_v18  ;;  %v1551_v40 = vadd.f32 %v3584_v63, %v1530_v61  ;;  %v1550_v3 = vadd.f32 %v3586_v9, %v1529_v24 }
 0x14d   : > { %1975 = vrot.lane.b32.xlu1 %v1972_v36, %s2619_s4  ;;  %1973 = vrot.lane.b32.xlu0 %v1970_v35, %s2619_s4  ;;  %v2041_v35 = vstv %s3730_s7  ;;  %v1991_v13 = vsel %vm917_vm6, %v1989_v25, %v1990_v52  ;;  %v2028_v10 = vrot.slane %v2022_v16, 6  ;;  %v2030_v12 = vrot.slane %v2023_v17, 6  ;;  %s176_s7 = sand.u32 1, %s2604_s15  }
 0x14e   : > { %v1094_v14 = vmul.f32 %v1093_v37, %v2769_v22  ;;  %v598_v28 = vadd.f32 %v3563_v15, %v577_v55  ;;  %v1572_v5 = vadd.f32 %v3633_v47, %v1551_v40  ;;  %v1571_v49 = vadd.f32 %v3635_v32, %v1550_v3 }
 0x14f   : > { %v3764_v8 = vpop.permute.xlu1 %1647  ;;  %v3766_v36 = vpop.permute.xlu0 %1645  ;;  %v638_v63 = vadd.f32 %v3613_v26, %v620_v50  ;;  %v1101_v58 = vrot.slane %v1095_v1, 6  ;;  %v3786_v52 = vmul.f32 %v2041_v35, %v2917_v38  ;;  %v1083_v32 = vsel %vm1061_vm7, %v1080_v4, %v1082_v43 }
 0x150   : > { %v619_v15 = vadd.f32 %v3609_v6, %v598_v28  ;;  %v1081_v26 = vsel %vm1061_vm7, %v1079_v11, %v1080_v4  ;;  %v2031_v25 = vsel %vm1061_vm7, %v2028_v10, %v2030_v12  ;;  %v1100_v60 = vrot.slane %v1094_v14, 6 }
 0x151   : > { %1047 = vrot.lane.b32.xlu1 %v1044_v41, %s2620_s6  ;;  %1045 = vrot.lane.b32.xlu0 %v1042_v39, %s2620_s6  ;;  %v2027_v41 = vrot.slane %v2021_v48, 6  ;;  %v1103_v39 = vrot.slane %v1096_v46, 6  ;;  %v659_v47 = vadd.f32 %v3657_v44, %v638_v63  ;;  %v2044_v56 = vmul.f32 %v2041_v35, %v2959_v59 }
 0x152   : > { %v1114_v53 = vstv %s3757_s8  ;;  %v1589_v62 = vadd.f32 %v3647_v29, %v1572_v5  ;;  %v1588_v6 = vadd.f32 %v3681_v19, %v1571_v49  ;;  %v766_v37 = vstv %s3762_s9  ;;  %s2346_s8 = sshll.u32 %s176_s7, 6 }
 0x153   : > { %v718_v9 = vpop.permute.xlu1 %717  ;;  %v3783_v7 = vpop.permute.xlu0 %715  ;;  %v680_v44 = vadd.f32 %v3698_v33, %v659_v47  ;;  %v2029_v4 = vsel %vm1061_vm7, %v2027_v41, %v2028_v10  ;;  %v2049_v16 = vrot.slane %v3786_v52, 6  ;;  %v2042_v17 = vmul.f32 %v2041_v35, %v2906_v31  ;;  %s178_s9 = scalar_lea.vmem [#allocation6], %s2346_s8 }
 0x154   : > { %v637_v29 = vadd.f32 %v3619_v51, %v619_v15  ;;  %v1610_v19 = vadd.f32 %v3678_v20, %v1589_v62  ;;  %v1609_v33 = vadd.f32 %v3683_v0, %v1588_v6  ;;  %v1102_v24 = vsel %vm1061_vm7, %v1100_v60, %v1101_v58 }
 0x155   : > { %1996 = vrot.lane.b32.xlu1 %v1993_v42, %s2620_s6  ;;  %1994 = vrot.lane.b32.xlu0 %v1991_v13, %s2620_s6  ;;  %v1104_v42 = vsel %vm1061_vm7, %v1101_v58, %v1103_v39  ;;  %v701_v61 = vadd.f32 %v3741_v2, %v680_v44  ;;  %v2051_v50 = vrot.slane %v2044_v56, 6  ;;  %v1116_v43 = vmul.f32 %v1114_v53, %v2771_v23 }
 0x156   : > { %v1117_v11 = vmul.f32 %v1114_v53, %v2811_v45  ;;  %v658_v51 = vadd.f32 %v3659_v57, %v637_v29  ;;  %v1631_v20 = vadd.f32 %v3720_v34, %v1610_v19  ;;  %v1630_v0 = vadd.f32 %v3722_v30, %v1609_v33 }
 0x157   : > { %v1669_v27 = vpop.permute.xlu1 %1668  ;;  %v1667_v18 = vpop.permute.xlu0 %1666  ;;  %v722_v48 = vadd.f32 %v718_v9, %v701_v61  ;;  %v2048_v46 = vrot.slane %v2042_v17, 6  ;;  %v1115_v55 = vmul.f32 %v1114_v53, %v2769_v22  ;;  %v768_v40 = vmul.f32 %v766_v37, %v2771_v23 }
 0x158   : > { %v2062_v3 = vstv %s3788_s11  ;;  %v679_v35 = vadd.f32 %v3700_v21, %v658_v51  ;;  %v1652_v13 = vadd.f32 %v3764_v8, %v1631_v20  ;;  %v1651_v10 = vadd.f32 %v3766_v36, %v1630_v0 }
 0x159   : > { %1086 = vrot.lane.b32.xlu1 %v1083_v32, %s2616_s18  ;;  %1084 = vrot.lane.b32.xlu0 %v1081_v26, %s2616_s18  ;;  %v2052_v34 = vsel %vm1061_vm7, %v2049_v16, %v2051_v50  ;;  %v1122_v30 = vrot.slane %v1116_v43, 6  ;;  %v1124_v12 = vrot.slane %v1117_v11, 6  ;;  %v769_v14 = vmul.f32 %v766_v37, %v2811_v45 }
 0x15a   : > { %v700_v28 = vadd.f32 %v3743_v54, %v679_v35  ;;  %v1673_v21 = vadd.f32 %v1669_v27, %v1652_v13  ;;  %v1672_v5 = vadd.f32 %v1667_v18, %v1651_v10  ;;  %v767_v8 = vmul.f32 %v766_v37, %v2769_v22 }
 0x15b   : > { %v739_v2 = vpop.permute.xlu1 %738  ;;  %v737_v1 = vpop.permute.xlu0 %736  ;;  %v2050_v63 = vsel %vm1061_vm7, %v2048_v46, %v2049_v16  ;;  %v2064_v9 = vmul.f32 %v2062_v3, %v2917_v38  ;;  %v1717_v41 = vstv %s3807_s12  ;;  %v1135_v58 = vstv %s3809_s20 }
 0x15c   : > { %v743_v57 = vadd.f32 %v739_v2, %v722_v48  ;;  %v721_v39 = vadd.f32 %v3783_v7, %v700_v28  ;;  %v2065_v54 = vmul.f32 %v2062_v3, %v2959_v59  ;;  %v1125_v47 = vsel %vm1061_vm7, %v1122_v30, %v1124_v12 }
 0x15d   : > { %2034 = vrot.lane.b32.xlu1 %v2031_v25, %s2616_s18  ;;  %2032 = vrot.lane.b32.xlu0 %v2029_v4, %s2616_s18  ;;  %v1121_v32 = vrot.slane %v1115_v55, 6  ;;  %v775_v26 = vrot.slane %v768_v40, 4  ;;  %v777_v25 = vrot.slane %v769_v14, 4  ;;  %s3846_s18 = sld [smem:[#allocation3 + $0x2f]]  ;;  %v774_v56 = vrot.slane %v767_v8, 4 }
 0x15e   : > { %v742_v60 = vadd.f32 %v737_v1, %v721_v39  ;;  %v2063_v53 = vmul.f32 %v2062_v3, %v2906_v31  ;;  %v1719_v7 = vmul.f32 %v1717_v41, %v2917_v38  ;;  %v1720_v44 = vmul.f32 %v1717_v41, %v2959_v59 }
 0x15f   : > { %v1690_v36 = vpop.permute.xlu1 %1689  ;;  %v1688_v49 = vpop.permute.xlu0 %1687  ;;  %v1718_v37 = vmul.f32 %v1717_v41, %v2906_v31  ;;  %v1137_v27 = vmul.f32 %v1135_v58, %v2771_v23  ;;  %v1138_v18 = vmul.f32 %v1135_v58, %v2811_v45  ;;  %v2070_v16 = vrot.slane %v2064_v9, 6 }
 0x160   : > { %v1694_v52 = vadd.f32 %v1690_v36, %v1673_v21  ;;  %v1693_v15 = vadd.f32 %v1688_v49, %v1672_v5  ;;  %v2072_v17 = vrot.slane %v2065_v54, 6  ;;  %v1123_v29 = vsel %vm1061_vm7, %v1121_v32, %v1122_v30 }
 0x161   : > { %1107 = vrot.lane.b32.xlu1 %v1104_v42, %s2615_s13  ;;  %1105 = vrot.lane.b32.xlu0 %v1102_v24, %s2615_s13  ;;  %v778_v19 = vsel %vm773_vm5, %v775_v26, %v777_v25  ;;  %v1136_v33 = vmul.f32 %v1135_v58, %v2769_v22  ;;  %v776_v61 = vsel %vm773_vm5, %v774_v56, %v775_v26  ;;  %v2069_v24 = vrot.slane %v2063_v53, 6 }
 0x162   : > { %v1725_v50 = vrot.slane %v1719_v7, 4  ;;  %v2083_v43 = vstv %s3835_s21  ;;  %v1727_v20 = vrot.slane %v1720_v44, 4  ;;  %v1724_v0 = vrot.slane %v1718_v37, 4 }
 0x163   : > { %v760_v62 = vpop.permute.xlu1 %759  ;;  %v758_v6 = vpop.permute.xlu0 %757  ;;  %v1143_v48 = vrot.slane %v1137_v27, 6  ;;  %v1145_v2 = vrot.slane %v1138_v18, 6  ;;  %v2073_v55 = vsel %vm1061_vm7, %v2070_v16, %v2072_v17  ;;  %v1142_v40 = vrot.slane %v1136_v33, 6 }
 0x164   : > { %v764_v4 = vadd.f32 %v760_v62, %v743_v57  ;;  %v763_v42 = vadd.f32 %v758_v6, %v742_v60  ;;  %v2085_v3 = vmul.f32 %v2083_v43, %v2917_v38  ;;  %v2086_v35 = vmul.f32 %v2083_v43, %v2959_v59 }
 0x165   : > { %2055 = vrot.lane.b32.xlu1 %v2052_v34, %s2615_s13  ;;  %2053 = vrot.lane.b32.xlu0 %v2050_v63, %s2615_s13  ;;  %v1156_v13 = vstv %s3846_s18  ;;  %v2071_v34 = vsel %vm1061_vm7, %v2069_v24, %v2070_v16  ;;  %v2084_v30 = vmul.f32 %v2083_v43, %v2906_v31  ;;  %s3871_s13 = sld [smem:[#allocation3 + $0x30]]  ;;  %v1728_v28 = vsel %vm773_vm5, %v1725_v50, %v1727_v20  ;;  %s2622_s18 = smov [#allocation6]  }
 0x166   : > { %v782_v10 = vadd.f32 %v778_v19, %v764_v4  ;;  %v781_v57 = vadd.f32 %v776_v61, %v763_v42  ;;  %v1726_v21 = vsel %vm773_vm5, %v1724_v0, %v1725_v50  ;;  %v1146_v5 = vsel %vm1061_vm7, %v1143_v48, %v1145_v2 }
 0x167   : > { %v1711_v11 = vpop.permute.xlu1 %1710  ;;  %v1709_v51 = vpop.permute.xlu0 %1708  ;;  %v1158_v49 = vmul.f32 %v1156_v13, %v2771_v23  ;;  %v1159_v63 = vmul.f32 %v1156_v13, %v2811_v45  ;;  %v1144_v9 = vsel %vm1061_vm7, %v1142_v40, %v1143_v48  ;;  %v2091_v41 = vrot.slane %v2085_v3, 6 }
 0x168   : > { %v1715_v1 = vadd.f32 %v1711_v11, %v1694_v52  ;;  %v1714_v46 = vadd.f32 %v1709_v51, %v1693_v15  ;;  %v2093_v58 = vrot.slane %v2086_v35, 6  ;;  %v1157_v39 = vmul.f32 %v1156_v13, %v2769_v22 }
 0x169   : > { %1128 = vrot.lane.b32.xlu1 %v1125_v47, %s2617_s27  ;;  %1126 = vrot.lane.b32.xlu0 %v1123_v29, %s2617_s27  ;;  %v2090_v54 = vrot.slane %v2084_v30, 6  ;;  %v2104_v47 = vstv %s3861_s25  ;;  %v1164_v56 = vrot.slane %v1158_v49, 6  ;;  %v1166_v53 = vrot.slane %v1159_v63, 6  ;;  %s2550_s25 = sshll.u32 %s2622_s18, 4  ;;  %s2551_s25 = int_to_ptr.vmem [resolvable:$false] %s2550_s25 }
 0x16a   : > { %v1732_v52 = vadd.f32 %v1728_v28, %v1715_v1  ;;  %v1731_v15 = vadd.f32 %v1726_v21, %v1714_v46  ;;  %v2106_v7 = vmul.f32 %v2104_v47, %v2917_v38  ;;  %v2107_v62 = vmul.f32 %v2104_v47, %v2959_v59 }
 0x16b   : > { %v799_v12 = vpop.permute.xlu1 %798  ;;  %v797_v14 = vpop.permute.xlu0 %796  ;;  %v2105_v6 = vmul.f32 %v2104_v47, %v2906_v31  ;;  %v2094_v44 = vsel %vm1061_vm7, %v2091_v41, %v2093_v58  ;;  %v2092_v37 = vsel %vm1061_vm7, %v2090_v54, %v2091_v41  ;;  %v1163_v27 = vrot.slane %v1157_v39, 6 }
 0x16c   : > { %v803_v8 = vadd.f32 %v799_v12, %v782_v10  ;;  %v802_v36 = vadd.f32 %v797_v14, %v781_v57  ;;  %v1177_v18 = vstv %s3871_s13  ;;  %v1167_v29 = vsel %vm1061_vm7, %v1164_v56, %v1166_v53  ;;  %s2552_s13 = scalar_lea.vmem %s2551_s25, 2048 }
 0x16d   : > { %2076 = vrot.lane.b32.xlu1 %v2073_v55, %s2617_s27  ;;  %2074 = vrot.lane.b32.xlu0 %v2071_v34, %s2617_s27  ;;  %v2112_v19 = vrot.slane %v2106_v7, 6  ;;  %v2114_v33 = vrot.slane %v2107_v62, 6  ;;  %v2111_v61 = vrot.slane %v2105_v6, 6  ;;  %v1179_v24 = vmul.f32 %v1177_v18, %v2771_v23 }
 0x16e   : > { %v1165_v50 = vsel %vm1061_vm7, %v1163_v27, %v1164_v56  ;;  %v1180_v43 = vmul.f32 %v1177_v18, %v2811_v45  ;;  %v1178_v11 = vmul.f32 %v1177_v18, %v2769_v22  ;;  %v2125_v51 = vstv %s2444_s26 }
 0x16f   : > { %v1749_v32 = vpop.permute.xlu1 %1748  ;;  %v1747_v26 = vpop.permute.xlu0 %1746  ;;  %v2115_v1 = vsel %vm1061_vm7, %v2112_v19, %v2114_v33  ;;  %v2113_v46 = vsel %vm1061_vm7, %v2111_v61, %v2112_v19  ;;  %v1185_v55 = vrot.slane %v1179_v24, 6  ;;  %v2127_v40 = vmul.f32 %v2125_v51, %v2917_v38 }
 0x170   : > { %v1753_v25 = vadd.f32 %v1749_v32, %v1732_v52  ;;  %v1752_v60 = vadd.f32 %v1747_v26, %v1731_v15  ;;  %v1187_v3 = vrot.slane %v1180_v43, 6  ;;  %v1184_v35 = vrot.slane %v1178_v11, 6 }
 0x171   : > { %1149 = vrot.lane.b32.xlu1 %v1146_v5, %s2618_s29  ;;  %1147 = vrot.lane.b32.xlu0 %v1144_v9, %s2618_s29  ;;  %v2128_v13 = vmul.f32 %v2125_v51, %v2959_v59  ;;  %v2126_v10 = vmul.f32 %v2125_v51, %v2906_v31  ;;  %v2133_v14 = vrot.slane %v2127_v40, 6 }
 0x172   : > { %v1188_v28 = vsel %vm1061_vm7, %v1185_v55, %v1187_v3  ;;  %v1186_v21 = vsel %vm1061_vm7, %v1184_v35, %v1185_v55 }
 0x173   : > { %v820_v4 = vpop.permute.xlu1 %819  ;;  %v818_v42 = vpop.permute.xlu0 %817  ;;  %v2135_v5 = vrot.slane %v2128_v13, 6 }
 0x174   : > { %v824_v16 = vadd.f32 %v820_v4, %v803_v8  ;;  %v823_v17 = vadd.f32 %v818_v42, %v802_v36  ;;  %v2132_v8 = vrot.slane %v2126_v10, 6 }
 0x175   : > { %2097 = vrot.lane.b32.xlu1 %v2094_v44, %s2618_s29  ;;  %2095 = vrot.lane.b32.xlu0 %v2092_v37, %s2618_s29  ;;  %v2136_v41 = vsel %vm1061_vm7, %v2133_v14, %v2135_v5  ;;  %s2382_s29 = sld [smem:[#allocation3 + $0x23]] }
 0x176   : > { %v2134_v58 = vsel %vm1061_vm7, %v2132_v8, %v2133_v14 }
 0x177   : > { %v1770_v20 = vpop.permute.xlu1 %1769  ;;  %v1768_v0 = vpop.permute.xlu0 %1767 }
 0x178   : > { %v1774_v48 = vadd.f32 %v1770_v20, %v1753_v25  ;;  %v1773_v2 = vadd.f32 %v1768_v0, %v1752_v60 }
 0x179   : > { %1170 = vrot.lane.b32.xlu1 %v1167_v29, %s2619_s4  ;;  %1168 = vrot.lane.b32.xlu0 %v1165_v50, %s2619_s4 }
 0x17b   : > { %v841_v57 = vpop.permute.xlu1 %840  ;;  %v839_v34 = vpop.permute.xlu0 %838  ;;  %v910_v53 = vstv %s2382_s29 }
 0x17c   : > { %v845_v30 = vadd.f32 %v841_v57, %v824_v16  ;;  %v844_v12 = vadd.f32 %v839_v34, %v823_v17  ;;  %v912_v6 = vmul.f32 %v910_v53, %v2771_v23  ;;  %v913_v44 = vmul.f32 %v910_v53, %v2811_v45 }
 0x17d   : > { %2118 = vrot.lane.b32.xlu1 %v2115_v1, %s2619_s4  ;;  %2116 = vrot.lane.b32.xlu0 %v2113_v46, %s2619_s4  ;;  %s2431_s4 = sld [smem:[#allocation3 + $0x54]]  ;;  %v911_v18 = vmul.f32 %v910_v53, %v2769_v22 }
 0x17e   : > { %v919_v17 = vrot.slane %v912_v6, 5  ;;  %v921_v29 = vrot.slane %v913_v44, 5 }
 0x17f   : > { %v1791_v36 = vpop.permute.xlu1 %1790  ;;  %v1789_v49 = vpop.permute.xlu0 %1788  ;;  %v918_v61 = vrot.slane %v911_v18, 5 }
 0x180   : > { %v1795_v63 = vadd.f32 %v1791_v36, %v1774_v48  ;;  %v1794_v9 = vadd.f32 %v1789_v49, %v1773_v2  ;;  %v922_v20 = vsel %vm917_vm6, %v919_v17, %v921_v29 }
 0x181   : > { %1191 = vrot.lane.b32.xlu1 %v1188_v28, %s2620_s6  ;;  %1189 = vrot.lane.b32.xlu0 %v1186_v21, %s2620_s6  ;;  %v920_v2 = vsel %vm917_vm6, %v918_v61, %v919_v17 }
 0x183   : > { %v862_v39 = vpop.permute.xlu1 %861  ;;  %v860_v52 = vpop.permute.xlu0 %859  ;;  %v1860_v16 = vstv %s2431_s4 }
 0x184   : > { %v866_v15 = vadd.f32 %v862_v39, %v845_v30  ;;  %v865_v54 = vadd.f32 %v860_v52, %v844_v12  ;;  %v1862_v24 = vmul.f32 %v1860_v16, %v2917_v38  ;;  %v1863_v50 = vmul.f32 %v1860_v16, %v2959_v59 }
 0x185   : > { %2139 = vrot.lane.b32.xlu1 %v2136_v41, %s2620_s6  ;;  %2137 = vrot.lane.b32.xlu0 %v2134_v58, %s2620_s6  ;;  %v1861_v43 = vmul.f32 %v1860_v16, %v2906_v31  ;;  %s2389_s6 = sld [smem:[#allocation3 + $0x2a]] }
 0x186   : > { %v1868_v1 = vrot.slane %v1862_v24, 5  ;;  %v1870_v46 = vrot.slane %v1863_v50, 5  ;;  %v2003_v50 = vstv %s2438_s28 }
 0x187   : > { %v1812_v47 = vpop.permute.xlu1 %1811  ;;  %v1810_v32 = vpop.permute.xlu0 %1809  ;;  %v1867_v55 = vrot.slane %v1861_v43, 5 }
 0x188   : > { %v1816_v26 = vadd.f32 %v1812_v47, %v1795_v63  ;;  %v1815_v25 = vadd.f32 %v1810_v32, %v1794_v9  ;;  %v1871_v34 = vsel %vm917_vm6, %v1868_v1, %v1870_v46 }
 0x189   : > { %v1869_v30 = vsel %vm917_vm6, %v1867_v55, %v1868_v1  ;;  %v2005_v55 = vmul.f32 %v2003_v50, %v2917_v38 }
 0x18b   : > { %v883_v60 = vpop.permute.xlu1 %882  ;;  %v881_v56 = vpop.permute.xlu0 %880  ;;  %v1054_v24 = vstv %s2389_s6 }
 0x18c   : > { %v887_v7 = vadd.f32 %v883_v60, %v866_v15  ;;  %v886_v62 = vadd.f32 %v881_v56, %v865_v54  ;;  %v1056_v43 = vmul.f32 %v1054_v24, %v2771_v23  ;;  %v1055_v46 = vmul.f32 %v1054_v24, %v2769_v22 }
 0x18d   : > { %v2011_v22 = vrot.slane %v2005_v55, 6 }
 0x18f   : > { %v1833_v37 = vpop.permute.xlu1 %1832  ;;  %v1831_v27 = vpop.permute.xlu0 %1830 }
 0x190   : > { %v1837_v4 = vadd.f32 %v1833_v37, %v1816_v26  ;;  %v1836_v42 = vadd.f32 %v1831_v27, %v1815_v25 }
 0x193   : > { %v904_v19 = vpop.permute.xlu1 %903  ;;  %v902_v33 = vpop.permute.xlu0 %901 }
 0x194   : > { %v908_v11 = vadd.f32 %v904_v19, %v887_v7  ;;  %v907_v51 = vadd.f32 %v902_v33, %v886_v62 }
 0x196   : > { %v926_v35 = vadd.f32 %v922_v20, %v908_v11  ;;  %v925_v13 = vadd.f32 %v920_v2, %v907_v51  ;;  %v1057_v11 = vmul.f32 %v1054_v24, %v2811_v45 }
 0x197   : > { %v1854_v0 = vpop.permute.xlu1 %1853  ;;  %v1852_v48 = vpop.permute.xlu0 %1851 }
 0x198   : > { %v1858_v40 = vadd.f32 %v1854_v0, %v1837_v4  ;;  %v1857_v3 = vadd.f32 %v1852_v48, %v1836_v42  ;;  %v1065_v45 = vrot.slane %v1057_v11, 6 }
 0x19a   : > { %v1875_v28 = vadd.f32 %v1871_v34, %v1858_v40  ;;  %v1874_v21 = vadd.f32 %v1869_v30, %v1857_v3  ;;  %v2006_v40 = vmul.f32 %v2003_v50, %v2959_v59  ;;  %v2004_v3 = vmul.f32 %v2003_v50, %v2906_v31 }
 0x19b   : > { %v943_v10 = vpop.permute.xlu1 %942  ;;  %v941_v57 = vpop.permute.xlu0 %940 }
 0x19c   : > { %v947_v12 = vadd.f32 %v943_v10, %v926_v35  ;;  %v946_v14 = vadd.f32 %v941_v57, %v925_v13  ;;  %v1063_v57 = vrot.slane %v1056_v43, 6  ;;  %v2010_v38 = vrot.slane %v2004_v3, 6 }
 0x19f   : > { %v1892_v5 = vpop.permute.xlu1 %1891  ;;  %v1890_v8 = vpop.permute.xlu0 %1889 }
 0x1a0   : > { %v1896_v36 = vadd.f32 %v1892_v5, %v1875_v28  ;;  %v1895_v49 = vadd.f32 %v1890_v8, %v1874_v21  ;;  %v1062_v5 = vrot.slane %v1055_v46, 6  ;;  %v2013_v8 = vrot.slane %v2006_v40, 6 }
 0x1a3   : > { %v964_v63 = vpop.permute.xlu1 %963  ;;  %v962_v9 = vpop.permute.xlu0 %961 }
 0x1a4   : > { %v968_v0 = vadd.f32 %v964_v63, %v947_v12  ;;  %v967_v48 = vadd.f32 %v962_v9, %v946_v14 }
 0x1a7   : > { %v1913_v41 = vpop.permute.xlu1 %1912  ;;  %v1911_v58 = vpop.permute.xlu0 %1910 }
 0x1a8   : > { %v1917_v2 = vadd.f32 %v1913_v41, %v1896_v36  ;;  %v1916_v1 = vadd.f32 %v1911_v58, %v1895_v49 }
 0x1ab   : > { %v985_v39 = vpop.permute.xlu1 %984  ;;  %v983_v52 = vpop.permute.xlu0 %982 }
 0x1ac   : > { %v989_v35 = vadd.f32 %v985_v39, %v968_v0  ;;  %v988_v13 = vadd.f32 %v983_v52, %v967_v48 }
 0x1af   : > { %v1934_v15 = vpop.permute.xlu1 %1933  ;;  %v1932_v54 = vpop.permute.xlu0 %1931 }
 0x1b0   : > { %v1938_v10 = vadd.f32 %v1934_v15, %v1917_v2  ;;  %v1937_v23 = vadd.f32 %v1932_v54, %v1916_v1  ;;  %v1066_v15 = vsel %vm1061_vm7, %v1063_v57, %v1065_v45  ;;  %v1064_v54 = vsel %vm1061_vm7, %v1062_v5, %v1063_v57 }
 0x1b1   : > { %v2148_v45 = vstv %s2147_s30 }
 0x1b3   : > { %v1006_v47 = vpop.permute.xlu1 %1005  ;;  %v1004_v32 = vpop.permute.xlu0 %1003 }
 0x1b4   : > { %v1010_v12 = vadd.f32 %v1006_v47, %v989_v35  ;;  %v1009_v14 = vadd.f32 %v1004_v32, %v988_v13  ;;  %v2014_v47 = vsel %vm1061_vm7, %v2011_v22, %v2013_v8  ;;  %v2012_v32 = vsel %vm1061_vm7, %v2010_v38, %v2011_v22 }
 0x1b7   : > { %v1955_v26 = vpop.permute.xlu1 %1954  ;;  %v1953_v25 = vpop.permute.xlu0 %1952 }
 0x1b8   : > { %v1959_v28 = vadd.f32 %v1955_v26, %v1938_v10  ;;  %v1958_v21 = vadd.f32 %v1953_v25, %v1937_v23 }
 0x1bb   : > { %v1027_v60 = vpop.permute.xlu1 %1026  ;;  %v1025_v56 = vpop.permute.xlu0 %1024 }
 0x1bc   : > { %v1031_v36 = vadd.f32 %v1027_v60, %v1010_v12  ;;  %v1030_v59 = vadd.f32 %v1025_v56, %v1009_v14 }
 0x1bf   : > { %v1976_v53 = vpop.permute.xlu1 %1975  ;;  %v1974_v7 = vpop.permute.xlu0 %1973 }
 0x1c0   : > { %v1980_v49 = vadd.f32 %v1976_v53, %v1959_v28  ;;  %v1979_v31 = vadd.f32 %v1974_v7, %v1958_v21 }
 0x1c3   : > { %v1048_v62 = vpop.permute.xlu1 %1047  ;;  %v1046_v6 = vpop.permute.xlu0 %1045 }
 0x1c4   : > { %v1052_v41 = vadd.f32 %v1048_v62, %v1031_v36  ;;  %v1051_v58 = vadd.f32 %v1046_v6, %v1030_v59 }
 0x1c6   : > { %v1070_v60 = vadd.f32 %v1066_v15, %v1052_v41  ;;  %v1069_v56 = vadd.f32 %v1064_v54, %v1051_v58  ;;  %v2520_v58 = vld [vmem:[%s2723_s10 + $0x18] sm:$0xff]  ;;  %v2521_v15 = vld [vmem:[%s2723_s10 + $0x10] sm:$0x3f] }
 0x1c7   : > { %v1997_v44 = vpop.permute.xlu1 %1996  ;;  %v1995_v37 = vpop.permute.xlu0 %1994 }
 0x1c8   : > { %v2001_v39 = vadd.f32 %v1997_v44, %v1980_v49  ;;  %v2000_v52 = vadd.f32 %v1995_v37, %v1979_v31 }
 0x1ca   : > { %v2018_v53 = vadd.f32 %v2014_v47, %v2001_v39  ;;  %v2017_v7 = vadd.f32 %v2012_v32, %v2000_v52  ;;  %v2522_v47 = vld [vmem:[%s2723_s10 + $0x28] sm:$0x3f] }
 0x1cb   : > { %v1087_v27 = vpop.permute.xlu1 %1086  ;;  %v1085_v18 = vpop.permute.xlu0 %1084 }
 0x1cc   : > { %v1091_v24 = vadd.f32 %v1087_v27, %v1070_v60  ;;  %v1090_v50 = vadd.f32 %v1085_v18, %v1069_v56  ;;  %v2524_v60 = vld [vmem:[%s2723_s10 + $0x48] sm:$0xff] }
 0x1cf   : > { %v2035_v4 = vpop.permute.xlu1 %2034  ;;  %v2033_v42 = vpop.permute.xlu0 %2032 }
 0x1d0   : > { %v2039_v62 = vadd.f32 %v2035_v4, %v2018_v53  ;;  %v2038_v6 = vadd.f32 %v2033_v42, %v2017_v7  ;;  %v2525_v7 = vld [vmem:[%s2723_s10 + $0x8] sm:$0xff] }
 0x1d3   : > { %v3925_v16 = vpop.permute.xlu1 %1107  ;;  %v3927_v17 = vpop.permute.xlu0 %1105 }
 0x1d4   : > { %v1112_v43 = vadd.f32 %v3925_v16, %v1091_v24  ;;  %v1111_v11 = vadd.f32 %v3927_v17, %v1090_v50  ;;  %v2526_v50 = vld [vmem:[%s2723_s10 + $0x40] sm:$0x3f] }
 0x1d7   : > { %v2056_v29 = vpop.permute.xlu1 %2055  ;;  %v2054_v19 = vpop.permute.xlu0 %2053 }
 0x1d8   : > { %v2060_v0 = vadd.f32 %v2056_v29, %v2039_v62  ;;  %v2059_v48 = vadd.f32 %v2054_v19, %v2038_v6  ;;  %v2527_v6 = vld [vmem:[%s2723_s10 + $0x20] sm:$0xff] }
 0x1db   : > { %v3929_v33 = vpop.permute.xlu1 %1128  ;;  %v3931_v61 = vpop.permute.xlu0 %1126 }
 0x1dc   : > { %v1133_v2 = vadd.f32 %v3929_v33, %v1112_v43  ;;  %v1132_v1 = vadd.f32 %v3931_v61, %v1111_v11  ;;  %v2529_v11 = vld [vmem:[%s2723_s10 + $0x50] sm:$0xff] }
 0x1df   : > { %v2077_v51 = vpop.permute.xlu1 %2076  ;;  %v2075_v20 = vpop.permute.xlu0 %2074 }
 0x1e0   : > { %v2081_v46 = vadd.f32 %v2077_v51, %v2060_v0  ;;  %v2080_v55 = vadd.f32 %v2075_v20, %v2059_v48  ;;  %v2530_v48 = vld [vmem:[%s2723_s10 + $0x58] sm:$0x3f] }
 0x1e3   : > { %v1150_v34 = vpop.permute.xlu1 %1149  ;;  %v1148_v30 = vpop.permute.xlu0 %1147 }
 0x1e4   : > { %v1154_v18 = vadd.f32 %v1150_v34, %v1133_v2  ;;  %v1153_v4 = vadd.f32 %v1148_v30, %v1132_v1 }
 0x1e7   : > { %v2098_v63 = vpop.permute.xlu1 %2097  ;;  %v2096_v9 = vpop.permute.xlu0 %2095 }
 0x1e8   : > { %v2102_v42 = vadd.f32 %v2098_v63, %v2081_v46  ;;  %v2101_v3 = vadd.f32 %v2096_v9, %v2080_v55  ;;  %v2519_v9 = vld [vmem:[%s2723_s10] sm:$0xff] }
 0x1eb   : > { %v1171_v26 = vpop.permute.xlu1 %1170  ;;  %v1169_v25 = vpop.permute.xlu0 %1168 }
 0x1ec   : > { %v1175_v35 = vadd.f32 %v1171_v26, %v1154_v18  ;;  %v1174_v13 = vadd.f32 %v1169_v25, %v1153_v4  ;;  %v2523_v26 = vld [vmem:[%s2723_s10 + $0x30] sm:$0xff] }
 0x1ef   : > { %v2119_v44 = vpop.permute.xlu1 %2118  ;;  %v2117_v37 = vpop.permute.xlu0 %2116 }
 0x1f0   : > { %v2123_v16 = vadd.f32 %v2119_v44, %v2102_v42  ;;  %v2122_v10 = vadd.f32 %v2117_v37, %v2101_v3  ;;  %v2528_v37 = vld [vmem:[%s2723_s10 + $0x38] sm:$0xff]  ;;  %s2450_s10 = sshll.u32 %s2669_s1, 10  ;;  %s3993_s1 = scalar_lea.sflag [#allocation4], %s176_s7 }
 0x1f1   : > { %s3985_s20 = scalar_lea.hbm %s4037_s3, %s2450_s10 }
 0x1f3   : > { %v1192_v40 = vpop.permute.xlu1 %1191  ;;  %v1190_v27 = vpop.permute.xlu0 %1189 }
 0x1f4   : > { %v1196_v19 = vadd.f32 %v1192_v40, %v1175_v35  ;;  %v1195_v23 = vadd.f32 %v1190_v27, %v1174_v13 }
 0x1f7   : > { %v2140_v17 = vpop.permute.xlu1 %2139  ;;  %v2138_v29 = vpop.permute.xlu0 %2137 }
 0x1f8   : > { %v2144_v57 = vadd.f32 %v2140_v17, %v2123_v16  ;;  %v2143_v33 = vadd.f32 %v2138_v29, %v2122_v10 }
 0x1fa   : > { %v2146_v61 = vadd.f32 %v2144_v57, %v1196_v19  ;;  %v2145_v51 = vadd.f32 %v2143_v33, %v1195_v23 }
 0x1fc   : > { %v2150_v20 = vadd.f32 %v2148_v45, %v2146_v61  ;;  %v2149_v12 = vadd.f32 %v2148_v45, %v2145_v51 }
 0x1fe   : > { %v2152_v14 = vsub.f32 0.0, %v2150_v20  ;;  %v2151_v34 = vsub.f32 0.0, %v2149_v12 }
 0x200   : > { %v2155_v30 = vmul.f32 1.442695, %v2152_v14  ;;  %v2153_v28 = vmul.f32 1.442695, %v2151_v34 }
 0x202   : > { %2511 = vpow2.f32 %v2155_v30 }
 0x203   : > { %2513 = vpow2.f32 %v2153_v28 }
 0x20c   : > { %v2512_v21 = vpop.eup %2511 }
 0x20d   : > { %v2514_v5 = vpop.eup %2513  ;;  %v2158_v22 = vadd.f32 1.0, %v2512_v21 }
 0x20e   : > { %v2157_v8 = vadd.f32 1.0, %v2514_v5 }
 0x20f   : > { %2515 = vrcp.f32 %v2158_v22 }
 0x210   : > { %2517 = vrcp.f32 %v2157_v8 }
 0x219   : > { %v2516_v38 = vpop.eup %2515 }
 0x21a   : > { %v2518_v36 = vpop.eup %2517  ;;  %v2166_v59 = vrot.slane %v2516_v38, 5 }
 0x21b   : > { %v2165_v49 = vrot.slane %v2518_v36, 5 }
 0x21d   : > { %2168 = vrot.lane.b32.xlu0 %v2165_v49, %s2621_s5  ;;  %v2167_v31 = vsel %vm917_vm6, %v2165_v49, %v2166_v59 }
 0x21e   : > { %2170 = vrot.lane.b32.xlu1 %v2167_v31, %s2621_s5 }
 0x221   : > { %2172 = vrot.lane.b32.xlu0 %v2166_v59, %s2621_s5 }
 0x28f   : > { %v2169_v63 = vpop.permute.xlu0 %2168 }
 0x290   : > { %v2177_v41 = vmul.f32 %v2519_v9, %v2169_v63  ;;  %v2180_v39 = vmul.f32 %v2520_v58, %v2169_v63  ;;  %v2183_v25 = vmul.f32 %v2523_v26, %v2169_v63  ;;  %v2186_v56 = vmul.f32 %v2524_v60, %v2169_v63  ;;  %v2171_v53 = vpop.permute.xlu1 %2170 }
 0x291   : > { %v2178_v24 = vmul.f32 %v2525_v7, %v2171_v53  ;;  %v2181_v44 = vmul.f32 %v2527_v6, %v2171_v53  ;;  %v2184_v43 = vmul.f32 %v2528_v37, %v2171_v53  ;;  %v2187_v0 = vmul.f32 %v2529_v11, %v2171_v53 }
 0x292   : > { %2207 = vrot.lane.b32.xlu0 %v2180_v39, %s2617_s27  ;;  %2201 = vrot.lane.b32.xlu1 %v2177_v41, %s2617_s27 }
 0x293   : > { %v2173_v52 = vpop.permute.xlu0 %2172 }
 0x294   : > { %v2179_v54 = vmul.f32 %v2521_v15, %v2173_v52  ;;  %v2182_v32 = vmul.f32 %v2522_v47, %v2173_v52  ;;  %v2185_v62 = vmul.f32 %v2526_v50, %v2173_v52  ;;  %v2188_v2 = vmul.f32 %v2530_v48, %v2173_v52 }
 0x296   : > { %2211 = vrot.lane.b32.xlu0 %v2182_v32, %s2617_s27  ;;  %2205 = vrot.lane.b32.xlu1 %v2179_v54, %s2617_s27 }
 0x29a   : > { %2219 = vrot.lane.b32.xlu0 %v2186_v56, %s2617_s27  ;;  %2213 = vrot.lane.b32.xlu1 %v2183_v25, %s2617_s27 }
 0x29e   : > { %2217 = vrot.lane.b32.xlu1 %v2185_v62, %s2617_s27  ;;  %2203 = vrot.lane.b32.xlu0 %v2178_v24, %s2617_s27 }
 0x2a2   : > { %2209 = vrot.lane.b32.xlu1 %v2181_v44, %s2617_s27  ;;  %2215 = vrot.lane.b32.xlu0 %v2184_v43, %s2617_s27 }
 0x2a6   : > { %2221 = vrot.lane.b32.xlu1 %v2187_v0, %s2617_s27  ;;  %2223 = vrot.lane.b32.xlu0 %v2188_v2, %s2617_s27  ;;  %s2266_s27 = sshll.u32 %s178_s9, 4  ;;  %s3987_s27 = int_to_ptr.vmem [resolvable:$true] %s2266_s27 }
 0x2a7   : > { %s2546_s21 = scalar_lea.vmem %s3987_s27, 1024  ;;  %p2553_p13 = scmp.lt.s32.totalorder %s3987_s27, %s2551_s25 }
 0x2a8   : > { %p2547_p9 = scmp.ne.s32.totalorder %s3987_s27, %s2546_s21  ;;  %p2554_p0 = scmp.lt.s32.totalorder %s2552_s13, %s2546_s21 }
 0x2aa   : > { %p2548_p10 = pnand %p2547_p9, %p2686_p5  ;;  %p2555_p1 = por %p2554_p0, %p2553_p13 }
 0x2ac   : > { %p2549_p12 = pneg %p2548_p10 }
 0x2ae   : > { %p2556_p2 = pnand %p2555_p1, %p2549_p12 }
 0x304   : > { %v2208_v1 = vpop.permute.xlu0 %2207  ;;  %v2202_v46 = vpop.permute.xlu1 %2201 }
 0x305   : > { %2243 = vst.msk [vmem:[%s178_s9 + $0xd] sm:$0xf8] %vm2237_vm8, %v2208_v1  ;;  %2238 = vst.msk [vmem:[%s178_s9 - $0x3] sm:$0xf8] %vm2237_vm8, %v2202_v46 }
 0x308   : > { %v2212_v55 = vpop.permute.xlu0 %2211  ;;  %v2206_v40 = vpop.permute.xlu1 %2205 }
 0x309   : > { %2245 = vst.msk [vmem:[%s178_s9 + $0x1d] sm:$0x7] %vm2241_vm9, %v2212_v55  ;;  %2242 = vst.msk [vmem:[%s178_s9 + $0xd] sm:$0x7] %vm2241_vm9, %v2206_v40 }
 0x30c   : > { %v2220_v27 = vpop.permute.xlu0 %2219  ;;  %v2214_v18 = vpop.permute.xlu1 %2213 }
 0x30d   : > { %2249 = vst.msk [vmem:[%s178_s9 + $0x2d] sm:$0xf8] %vm2237_vm8, %v2220_v27  ;;  %2246 = vst.msk [vmem:[%s178_s9 + $0x1d] sm:$0xf8] %vm2237_vm8, %v2214_v18 }
 0x310   : > { %v2204_v4 = vpop.permute.xlu0 %2203  ;;  %v2218_v42 = vpop.permute.xlu1 %2217 }
 0x311   : > { %2240 = vst.msk [vmem:[%s178_s9 + $0x5] sm:$0xff] %vm2239_vm10, %v2204_v4 }
 0x312   : > { %2248 = vst.msk [vmem:[%s178_s9 + $0x2d] sm:$0x7] %vm2241_vm9, %v2218_v42 }
 0x314   : > { %v2216_v3 = vpop.permute.xlu0 %2215  ;;  %v2210_v35 = vpop.permute.xlu1 %2209 }
 0x315   : > { %2247 = vst.msk [vmem:[%s178_s9 + $0x25] sm:$0xff] %vm2239_vm10, %v2216_v3  ;;  %2244 = vst.msk [vmem:[%s178_s9 + $0x15] sm:$0xff] %vm2239_vm10, %v2210_v35 }
 0x318   : > { %v2224_v13 = vpop.permute.xlu0 %2223  ;;  %v2222_v16 = vpop.permute.xlu1 %2221 }
 0x319   : > { %2251 = vst.msk [vmem:[%s178_s9 + $0x3d] sm:$0x7] %vm2241_vm9, %v2224_v13 }
 0x31a   : > { %2250 = vst.msk [vmem:[%s178_s9 + $0x35] sm:$0xff] %vm2239_vm10, %v2222_v16 }
 0x31b   : > { %2559 = shalt.err (!%p2556_p2)
}
 0x31c   : > { %s2560_s26 = scalar_lea.hbm %s3985_s20, 1024  ;;  %s2564_s6 = scalar_lea.hbm %s4037_s3, 2048 }
 0x31d   : > { %p2561_p3 = scmp.ne.s32.totalorder %s3985_s20, %s2560_s26  ;;  %p2565_p8 = scmp.lt.u32.totalorder %s3985_s20, %s4037_s3 }
 0x31e   : > { %p2566_p11 = scmp.lt.u32.totalorder %s2564_s6, %s2560_s26  ;;  %p2568_p10 = scmp.lt.u32.totalorder %s2560_s26, %s3985_s20 }
 0x31f   : > { %p2562_p4 = pnand %p2561_p3, %p2686_p5 }
 0x320   : > { %p2567_p9 = por %p2566_p11, %p2565_p8 }
 0x321   : > { %p2563_p7 = pneg %p2562_p4 }
 0x322   : > { %p2569_p12 = por %p2568_p10, %p2567_p9 }
 0x324   : > { %p2570_p13 = pnand %p2569_p12, %p2563_p7 }
 0x326   : > { %2573 = shalt.err (!%p2570_p13)
}
 0x327   : > { %s2623_s5 = smov 128   ;;  %s2624_s7 = smov 8  }
 0x328   : > { %2456 = dma.vmem_to_hbm [thread:$0]  (%p2686_p5), %s3987_s27, 1024, %s3985_s20, %s3993_s1, %s2623_s5, %s2623_s5, %s2624_s7  }
 0x329 PF: > { %p2468_p0 = scmp.ge.s32.totalorder %s2612_s17, 2  ;;  %s2281_s8 = sand.u32 1, %s2600_s14  }
 0x32a   : > { %s2282_s9 = scalar_lea.sflag [#allocation4], %s2281_s8 }
 0x32b   : > { %p2463_p1 = pnand %p2468_p0, %p2690_p6 }
 0x32d   : > { %2595 = dma.done.wait (!%p2463_p1), %s2282_s9, 1024  }
 0x32e   : > { %2597 = vsyncadd (!%p2463_p1), %s2282_s9, 4294966272  ;;  %p15_p2 = scmp.ge.s32.totalorder %s2673_s19, 4   ;;  %s4101_s14 = smov %s2604_s15 }
 0x32f   : > { %s4102_s15 = smov %s2608_s16  ;;  %s4103_s16 = smov %s2684_s22 }
 0x330   : > { %s4104_s17 = smov %s2673_s19  ;;  %17 = sbr.rel (!%p15_p2) target bundleno = 6 (0x6), region = 72 }
 0x337   :  { %2287 = vsyncpa [#allocation4], 1 }
 0x338   :  { %2289 = vsyncpa [#allocation4 + $0x1], 1 }
 0x339   :  { %2290 = vsyncpa [#allocation5], 1 }
 0x33a   :  { %2292 = vsyncpa [#allocation5 + $0x1], 1 }

</bundles_post_ra>
